<compile_context>
chip_gen: v6e
topology: v6e:2x2x1
jax: 0.10.0
libtpu: 0.0.40
codegen_flags: <defaults>
</compile_context>

<pallas_src>
import jax
import jax.numpy as jnp
import numpy as np
from jax import lax
from jax.experimental import pallas as pl
from jax.experimental.pallas import tpu as pltpu

# 3x3 tap offsets (ky, kx); tap index t = dy*3 + dx matches the weight layout.
_TAPS = tuple((dy - 1, dx - 1) for dy in range(3) for dx in range(3))


def _border_masks(C, H, W, batch_block):
    """(9*C, batch_block*H*W) f32 {0,1}; rows [t*C, (t+1)*C) hold tap t's mask.

    Pre-broadcast over channels and pre-tiled over the samples folded into the
    lane axis, so the kernel applies each tap's mask with a single multiply
    (no iota / compares / selects / sublane broadcasts at runtime).
    """
    HW = H * W
    pos = np.arange(HW)
    row, col = pos // W, pos % W
    m = np.empty((9, HW), np.float32)
    for t, (ky, kx) in enumerate(_TAPS):
        valid = (row + ky >= 0) & (row + ky < H) & (col + kx >= 0) & (col + kx < W)
        m[t] = valid.astype(np.float32)
    m = np.repeat(m, C, axis=0)            # broadcast over channels -> (9C, HW)
    return np.tile(m, (1, batch_block))    # tile per sample in the lane axis


def _pick_batch_block(N, C, HW):
    """Samples folded into one grid step.

    Whole batch per step while the per-step block is small (amortizes the
    ~0.35 us/step overhead).  For larger N, keep >= 2 'parallel' steps so both
    v7x TensorCores get work, and cap the block so double-buffered in+out
    blocks stay well inside the v7x 64 MiB-physical / 32 MiB-scoped VMEM.
    """
    bytes_per_sample = 2 * C * HW * 4              # in + out block, f32
    cap = max(1, (4 * 1024 * 1024) // max(bytes_per_sample, 1))
    bb = min(N, cap)
    if bb == N and N >= 4:
        bb = max(1, N // 2)                        # >= 2 steps for v7x megacore
    while N % bb:                                  # grid must divide exactly
        bb -= 1
    return bb


def _make_resblock_kernel(C, H, W, L):
    """Kernel over a (C, L) block, L = batch_block * H * W folded into lanes."""
    shifts = tuple((-(ky * W + kx)) % L for ky, kx in _TAPS)

    def kernel(x_ref, w1_ref, b1_ref, w2_ref, b2_ref, mask_ref, o_ref):
        # x_ref / o_ref : (C, L) f32 VMEM block (batch folded into lanes).
        # w*_ref        : (C, 9*C) f32, column (dy*3+dx)*C + ci = w[:, ci, dy, dx].
        # b*_ref        : (C, 1) f32.
        # mask_ref      : (9*C, L) f32 {0,1} precomputed border masks (resident).
        x = x_ref[...]                                          # (C, L)

        def conv3x3(a, w_ref, b_ref):
            """bias + 3x3 'same' conv of a: (C, L) -> (C, L), VPU/XLU only."""
            w = w_ref[...]                  # hoisted: ONE (C, 9C) load per conv
            accs = [None] * C               # per-input-channel partial accums
            for t in range(9):
                if shifts[t] == 0:
                    sh = a                                       # centre tap
                else:
                    # Static lane roll (XLU) + precomputed border mask (1 mul).
                    # Rolls wrap across the samples folded into the lane axis,
                    # but every wrapped position is zeroed by the mask.
                    sh = (pltpu.roll(a, shifts[t], 1)
                          * mask_ref[pl.ds(t * C, C), :])
                for ci in range(C):
                    j = t * C + ci
                    # (C,1) weight column x (1,L) shifted row -> broadcast MAC.
                    term = w[:, j:j + 1] * sh[ci:ci + 1, :]
                    accs[ci] = term if accs[ci] is None else accs[ci] + term
            # Tree-combine the independent partials, then add the bias once.
            while len(accs) > 1:
                accs = [accs[i] + accs[i + 1] if i + 1 < len(accs) else accs[i]
                        for i in range(0, len(accs), 2)]
            return accs[0] + jnp.broadcast_to(b_ref[...], a.shape)

        h = conv3x3(x, w1_ref, b1_ref)
        h = jnp.maximum(h, 0.2 * h)                              # LeakyReLU(0.2)
        h = conv3x3(h, w2_ref, b2_ref)
        o_ref[...] = (x + 0.1 * h).astype(o_ref.dtype)           # residual

    return kernel


@jax.jit
def mapping_res_block(x_nchw, w1_oihw, b1, w2_oihw, b2):
    """x: (N,C,H,W) f32; w*: (C,C,3,3) OIHW (PyTorch layout); b*: (C,)."""
    N, C, H, W = x_nchw.shape
    HW = H * W
    bb = _pick_batch_block(N, C, HW)
    L = bb * HW
    # Fold batch into the lane axis: (N,C,H,W) -> (C, N*H*W).  Keeps the last
    # axis lane-dense (multiple of 128 whenever H*W is) and lets one grid step
    # process bb samples with full-width VPU/XLU ops.
    x_flat = jnp.transpose(x_nchw, (1, 0, 2, 3)).reshape(C, N * HW)

    def prep_w(w):  # OIHW (co,ci,dy,dx) -> (C, 9*C), column (dy*3+dx)*C + ci
        return jnp.transpose(w, (0, 2, 3, 1)).reshape(C, 9 * C)

    mask = jnp.asarray(_border_masks(C, H, W, bb))               # (9C, L)

    out = pl.pallas_call(
        _make_resblock_kernel(C, H, W, L),
        out_shape=jax.ShapeDtypeStruct((C, N * HW), jnp.float32),
        grid=(N // bb,),
        in_specs=[
            pl.BlockSpec((C, L), lambda n: (0, n)),       # x: bb samples / step
            pl.BlockSpec((C, 9 * C), lambda n: (0, 0)),   # w1 (resident)
            pl.BlockSpec((C, 1), lambda n: (0, 0)),       # b1 (resident)
            pl.BlockSpec((C, 9 * C), lambda n: (0, 0)),   # w2 (resident)
            pl.BlockSpec((C, 1), lambda n: (0, 0)),       # b2 (resident)
            pl.BlockSpec((9 * C, L), lambda n: (0, 0)),   # masks (resident)
        ],
        out_specs=pl.BlockSpec((C, L), lambda n: (0, n)),
        compiler_params=pltpu.CompilerParams(
            dimension_semantics=("parallel",),    # batch blocks are independent
            vmem_limit_bytes=32 * 1024 * 1024,    # explicit; safe on v5e/v6e/v7x
        ),
    )(x_flat, prep_w(w1_oihw), b1.reshape(C, 1),
      prep_w(w2_oihw), b2.reshape(C, 1), mask)

    return jnp.transpose(out.reshape(C, N, H, W), (1, 0, 2, 3))


def _reference(x_nchw, w1_oihw, b1, w2_oihw, b2):
    """Pure-JAX reference (NCHW / OIHW, 'same' conv, full f32 precision)."""
    dn = lax.conv_dimension_numbers(x_nchw.shape, w1_oihw.shape,
                                    ("NCHW", "OIHW", "NCHW"))
    h = lax.conv_general_dilated(x_nchw, w1_oihw, (1, 1), "SAME",
                                 dimension_numbers=dn,
                                 precision=lax.Precision.HIGHEST)
    h = h + b1[None, :, None, None]
    h = jnp.where(h > 0, h, 0.2 * h)
    h = lax.conv_general_dilated(h, w2_oihw, (1, 1), "SAME",
                                 dimension_numbers=dn,
                                 precision=lax.Precision.HIGHEST)
    h = h + b2[None, :, None, None]
    return 0.1 * h + x_nchw


if __name__ == "__main__":
    key = jax.random.PRNGKey(0)
    k_x, k_w1, k_b1, k_w2, k_b2 = jax.random.split(key, 5)

    N, C, H, W = 2, 4, 16, 16
    ksize = 3
    bound = 1.0 / np.sqrt(C * ksize * ksize)   # PyTorch-style uniform init bound

    x = jax.random.normal(k_x, (N, C, H, W), dtype=jnp.float32)
    w1 = jax.random.uniform(k_w1, (C, C, ksize, ksize), jnp.float32, -bound, bound)
    b1 = jax.random.uniform(k_b1, (C,), jnp.float32, -bound, bound)
    w2 = jax.random.uniform(k_w2, (C, C, ksize, ksize), jnp.float32, -bound, bound)
    b2 = jax.random.uniform(k_b2, (C,), jnp.float32, -bound, bound)

    out = mapping_res_block(x, w1, b1, w2, b2)
    jax.block_until_ready(out)

    ref = _reference(x, w1, b1, w2, b2)
    np.testing.assert_allclose(np.asarray(out), np.asarray(ref),
                               rtol=1e-5, atol=1e-5)

    print("KERNEL_OK")
</pallas_src>

<mosaic_0001>
module attributes {stable_mosaic.version = 11 : i64} {
  func.func @kernel(%arg0: i32, %arg1: memref<4x512xf32, #tpu.memory_space<vmem>>, %arg2: memref<4x36xf32, #tpu.memory_space<vmem>>, %arg3: memref<4x1xf32, #tpu.memory_space<vmem>>, %arg4: memref<4x36xf32, #tpu.memory_space<vmem>>, %arg5: memref<4x1xf32, #tpu.memory_space<vmem>>, %arg6: memref<36x512xf32, #tpu.memory_space<vmem>>, %arg7: memref<4x512xf32, #tpu.memory_space<vmem>>) attributes {dimension_semantics = [#tpu.dimension_semantics<parallel>], iteration_bounds = array<i64: 1>, scalar_prefetch = 0 : i64, scratch_operands = 0 : i64, tpu.core_type = #tpu.core_type<tc>, window_params = [{transform_indices = @transform_0, window_bounds = array<i64: 4, 512>}, {pipeline_mode = #tpu.pipeline_mode<synchronous>, transform_indices = @transform_1, window_bounds = array<i64: 4, 36>}, {pipeline_mode = #tpu.pipeline_mode<synchronous>, transform_indices = @transform_2, window_bounds = array<i64: 4, 1>}, {pipeline_mode = #tpu.pipeline_mode<synchronous>, transform_indices = @transform_3, window_bounds = array<i64: 4, 36>}, {pipeline_mode = #tpu.pipeline_mode<synchronous>, transform_indices = @transform_4, window_bounds = array<i64: 4, 1>}, {pipeline_mode = #tpu.pipeline_mode<synchronous>, transform_indices = @transform_5, window_bounds = array<i64: 36, 512>}, {transform_indices = @transform_6, window_bounds = array<i64: 4, 512>}]} {
    %c0 = arith.constant 0 : index
    %c0_0 = arith.constant 0 : index
    %0 = vector.load %arg1[%c0, %c0_0] : memref<4x512xf32, #tpu.memory_space<vmem>>, vector<4x512xf32>
    %c0_1 = arith.constant 0 : index
    %c0_2 = arith.constant 0 : index
    %1 = vector.load %arg2[%c0_1, %c0_2] : memref<4x36xf32, #tpu.memory_space<vmem>>, vector<4x36xf32>
    %c17_i32 = arith.constant 17 : i32
    %2 = tpu.dynamic_rotate %0 by %c17_i32 dim 1 : vector<4x512xf32>, i32 -> vector<4x512xf32>
    %c0_3 = arith.constant 0 : index
    %c0_4 = arith.constant 0 : index
    %3 = vector.load %arg6[%c0_3, %c0_4] : memref<36x512xf32, #tpu.memory_space<vmem>>, vector<4x512xf32>
    %4 = arith.mulf %2, %3 : vector<4x512xf32>
    %5 = vector.extract_strided_slice %1 {offsets = [0, 0], sizes = [4, 1], strides = [1, 1]} : vector<4x36xf32> to vector<4x1xf32>
    %6 = vector.extract_strided_slice %4 {offsets = [0, 0], sizes = [1, 512], strides = [1, 1]} : vector<4x512xf32> to vector<1x512xf32>
    %7 = vector.broadcast %5 : vector<4x1xf32> to vector<4x512xf32>
    %8 = vector.broadcast %6 : vector<1x512xf32> to vector<4x512xf32>
    %9 = arith.mulf %7, %8 : vector<4x512xf32>
    %10 = vector.extract_strided_slice %1 {offsets = [0, 1], sizes = [4, 1], strides = [1, 1]} : vector<4x36xf32> to vector<4x1xf32>
    %11 = vector.extract_strided_slice %4 {offsets = [1, 0], sizes = [1, 512], strides = [1, 1]} : vector<4x512xf32> to vector<1x512xf32>
    %12 = vector.broadcast %10 : vector<4x1xf32> to vector<4x512xf32>
    %13 = vector.broadcast %11 : vector<1x512xf32> to vector<4x512xf32>
    %14 = arith.mulf %12, %13 : vector<4x512xf32>
    %15 = vector.extract_strided_slice %1 {offsets = [0, 2], sizes = [4, 1], strides = [1, 1]} : vector<4x36xf32> to vector<4x1xf32>
    %16 = vector.extract_strided_slice %4 {offsets = [2, 0], sizes = [1, 512], strides = [1, 1]} : vector<4x512xf32> to vector<1x512xf32>
    %17 = vector.broadcast %15 : vector<4x1xf32> to vector<4x512xf32>
    %18 = vector.broadcast %16 : vector<1x512xf32> to vector<4x512xf32>
    %19 = arith.mulf %17, %18 : vector<4x512xf32>
    %20 = vector.extract_strided_slice %1 {offsets = [0, 3], sizes = [4, 1], strides = [1, 1]} : vector<4x36xf32> to vector<4x1xf32>
    %21 = vector.extract_strided_slice %4 {offsets = [3, 0], sizes = [1, 512], strides = [1, 1]} : vector<4x512xf32> to vector<1x512xf32>
    %22 = vector.broadcast %20 : vector<4x1xf32> to vector<4x512xf32>
    %23 = vector.broadcast %21 : vector<1x512xf32> to vector<4x512xf32>
    %24 = arith.mulf %22, %23 : vector<4x512xf32>
    %c16_i32 = arith.constant 16 : i32
    %25 = tpu.dynamic_rotate %0 by %c16_i32 dim 1 : vector<4x512xf32>, i32 -> vector<4x512xf32>
    %c4 = arith.constant 4 : index
    %c0_5 = arith.constant 0 : index
    %26 = vector.load %arg6[%c4, %c0_5] : memref<36x512xf32, #tpu.memory_space<vmem>>, vector<4x512xf32>
    %27 = arith.mulf %25, %26 : vector<4x512xf32>
    %28 = vector.extract_strided_slice %1 {offsets = [0, 4], sizes = [4, 1], strides = [1, 1]} : vector<4x36xf32> to vector<4x1xf32>
    %29 = vector.extract_strided_slice %27 {offsets = [0, 0], sizes = [1, 512], strides = [1, 1]} : vector<4x512xf32> to vector<1x512xf32>
    %30 = vector.broadcast %28 : vector<4x1xf32> to vector<4x512xf32>
    %31 = vector.broadcast %29 : vector<1x512xf32> to vector<4x512xf32>
    %32 = arith.mulf %30, %31 : vector<4x512xf32>
    %33 = arith.addf %9, %32 : vector<4x512xf32>
    %34 = vector.extract_strided_slice %1 {offsets = [0, 5], sizes = [4, 1], strides = [1, 1]} : vector<4x36xf32> to vector<4x1xf32>
    %35 = vector.extract_strided_slice %27 {offsets = [1, 0], sizes = [1, 512], strides = [1, 1]} : vector<4x512xf32> to vector<1x512xf32>
    %36 = vector.broadcast %34 : vector<4x1xf32> to vector<4x512xf32>
    %37 = vector.broadcast %35 : vector<1x512xf32> to vector<4x512xf32>
    %38 = arith.mulf %36, %37 : vector<4x512xf32>
    %39 = arith.addf %14, %38 : vector<4x512xf32>
    %40 = vector.extract_strided_slice %1 {offsets = [0, 6], sizes = [4, 1], strides = [1, 1]} : vector<4x36xf32> to vector<4x1xf32>
    %41 = vector.extract_strided_slice %27 {offsets = [2, 0], sizes = [1, 512], strides = [1, 1]} : vector<4x512xf32> to vector<1x512xf32>
    %42 = vector.broadcast %40 : vector<4x1xf32> to vector<4x512xf32>
    %43 = vector.broadcast %41 : vector<1x512xf32> to vector<4x512xf32>
    %44 = arith.mulf %42, %43 : vector<4x512xf32>
    %45 = arith.addf %19, %44 : vector<4x512xf32>
    %46 = vector.extract_strided_slice %1 {offsets = [0, 7], sizes = [4, 1], strides = [1, 1]} : vector<4x36xf32> to vector<4x1xf32>
    %47 = vector.extract_strided_slice %27 {offsets = [3, 0], sizes = [1, 512], strides = [1, 1]} : vector<4x512xf32> to vector<1x512xf32>
    %48 = vector.broadcast %46 : vector<4x1xf32> to vector<4x512xf32>
    %49 = vector.broadcast %47 : vector<1x512xf32> to vector<4x512xf32>
    %50 = arith.mulf %48, %49 : vector<4x512xf32>
    %51 = arith.addf %24, %50 : vector<4x512xf32>
    %c15_i32 = arith.constant 15 : i32
    %52 = tpu.dynamic_rotate %0 by %c15_i32 dim 1 : vector<4x512xf32>, i32 -> vector<4x512xf32>
    %c8 = arith.constant 8 : index
    %c0_6 = arith.constant 0 : index
    %53 = vector.load %arg6[%c8, %c0_6] : memref<36x512xf32, #tpu.memory_space<vmem>>, vector<4x512xf32>
    %54 = arith.mulf %52, %53 : vector<4x512xf32>
    %55 = vector.extract_strided_slice %1 {offsets = [0, 8], sizes = [4, 1], strides = [1, 1]} : vector<4x36xf32> to vector<4x1xf32>
    %56 = vector.extract_strided_slice %54 {offsets = [0, 0], sizes = [1, 512], strides = [1, 1]} : vector<4x512xf32> to vector<1x512xf32>
    %57 = vector.broadcast %55 : vector<4x1xf32> to vector<4x512xf32>
    %58 = vector.broadcast %56 : vector<1x512xf32> to vector<4x512xf32>
    %59 = arith.mulf %57, %58 : vector<4x512xf32>
    %60 = arith.addf %33, %59 : vector<4x512xf32>
    %61 = vector.extract_strided_slice %1 {offsets = [0, 9], sizes = [4, 1], strides = [1, 1]} : vector<4x36xf32> to vector<4x1xf32>
    %62 = vector.extract_strided_slice %54 {offsets = [1, 0], sizes = [1, 512], strides = [1, 1]} : vector<4x512xf32> to vector<1x512xf32>
    %63 = vector.broadcast %61 : vector<4x1xf32> to vector<4x512xf32>
    %64 = vector.broadcast %62 : vector<1x512xf32> to vector<4x512xf32>
    %65 = arith.mulf %63, %64 : vector<4x512xf32>
    %66 = arith.addf %39, %65 : vector<4x512xf32>
    %67 = vector.extract_strided_slice %1 {offsets = [0, 10], sizes = [4, 1], strides = [1, 1]} : vector<4x36xf32> to vector<4x1xf32>
    %68 = vector.extract_strided_slice %54 {offsets = [2, 0], sizes = [1, 512], strides = [1, 1]} : vector<4x512xf32> to vector<1x512xf32>
    %69 = vector.broadcast %67 : vector<4x1xf32> to vector<4x512xf32>
    %70 = vector.broadcast %68 : vector<1x512xf32> to vector<4x512xf32>
    %71 = arith.mulf %69, %70 : vector<4x512xf32>
    %72 = arith.addf %45, %71 : vector<4x512xf32>
    %73 = vector.extract_strided_slice %1 {offsets = [0, 11], sizes = [4, 1], strides = [1, 1]} : vector<4x36xf32> to vector<4x1xf32>
    %74 = vector.extract_strided_slice %54 {offsets = [3, 0], sizes = [1, 512], strides = [1, 1]} : vector<4x512xf32> to vector<1x512xf32>
    %75 = vector.broadcast %73 : vector<4x1xf32> to vector<4x512xf32>
    %76 = vector.broadcast %74 : vector<1x512xf32> to vector<4x512xf32>
    %77 = arith.mulf %75, %76 : vector<4x512xf32>
    %78 = arith.addf %51, %77 : vector<4x512xf32>
    %c1_i32 = arith.constant 1 : i32
    %79 = tpu.dynamic_rotate %0 by %c1_i32 dim 1 : vector<4x512xf32>, i32 -> vector<4x512xf32>
    %c12 = arith.constant 12 : index
    %c0_7 = arith.constant 0 : index
    %80 = vector.load %arg6[%c12, %c0_7] : memref<36x512xf32, #tpu.memory_space<vmem>>, vector<4x512xf32>
    %81 = arith.mulf %79, %80 : vector<4x512xf32>
    %82 = vector.extract_strided_slice %1 {offsets = [0, 12], sizes = [4, 1], strides = [1, 1]} : vector<4x36xf32> to vector<4x1xf32>
    %83 = vector.extract_strided_slice %81 {offsets = [0, 0], sizes = [1, 512], strides = [1, 1]} : vector<4x512xf32> to vector<1x512xf32>
    %84 = vector.broadcast %82 : vector<4x1xf32> to vector<4x512xf32>
    %85 = vector.broadcast %83 : vector<1x512xf32> to vector<4x512xf32>
    %86 = arith.mulf %84, %85 : vector<4x512xf32>
    %87 = arith.addf %60, %86 : vector<4x512xf32>
    %88 = vector.extract_strided_slice %1 {offsets = [0, 13], sizes = [4, 1], strides = [1, 1]} : vector<4x36xf32> to vector<4x1xf32>
    %89 = vector.extract_strided_slice %81 {offsets = [1, 0], sizes = [1, 512], strides = [1, 1]} : vector<4x512xf32> to vector<1x512xf32>
    %90 = vector.broadcast %88 : vector<4x1xf32> to vector<4x512xf32>
    %91 = vector.broadcast %89 : vector<1x512xf32> to vector<4x512xf32>
    %92 = arith.mulf %90, %91 : vector<4x512xf32>
    %93 = arith.addf %66, %92 : vector<4x512xf32>
    %94 = vector.extract_strided_slice %1 {offsets = [0, 14], sizes = [4, 1], strides = [1, 1]} : vector<4x36xf32> to vector<4x1xf32>
    %95 = vector.extract_strided_slice %81 {offsets = [2, 0], sizes = [1, 512], strides = [1, 1]} : vector<4x512xf32> to vector<1x512xf32>
    %96 = vector.broadcast %94 : vector<4x1xf32> to vector<4x512xf32>
    %97 = vector.broadcast %95 : vector<1x512xf32> to vector<4x512xf32>
    %98 = arith.mulf %96, %97 : vector<4x512xf32>
    %99 = arith.addf %72, %98 : vector<4x512xf32>
    %100 = vector.extract_strided_slice %1 {offsets = [0, 15], sizes = [4, 1], strides = [1, 1]} : vector<4x36xf32> to vector<4x1xf32>
    %101 = vector.extract_strided_slice %81 {offsets = [3, 0], sizes = [1, 512], strides = [1, 1]} : vector<4x512xf32> to vector<1x512xf32>
    %102 = vector.broadcast %100 : vector<4x1xf32> to vector<4x512xf32>
    %103 = vector.broadcast %101 : vector<1x512xf32> to vector<4x512xf32>
    %104 = arith.mulf %102, %103 : vector<4x512xf32>
    %105 = arith.addf %78, %104 : vector<4x512xf32>
    %106 = vector.extract_strided_slice %1 {offsets = [0, 16], sizes = [4, 1], strides = [1, 1]} : vector<4x36xf32> to vector<4x1xf32>
    %107 = vector.extract_strided_slice %0 {offsets = [0, 0], sizes = [1, 512], strides = [1, 1]} : vector<4x512xf32> to vector<1x512xf32>
    %108 = vector.broadcast %106 : vector<4x1xf32> to vector<4x512xf32>
    %109 = vector.broadcast %107 : vector<1x512xf32> to vector<4x512xf32>
    %110 = arith.mulf %108, %109 : vector<4x512xf32>
    %111 = arith.addf %87, %110 : vector<4x512xf32>
    %112 = vector.extract_strided_slice %1 {offsets = [0, 17], sizes = [4, 1], strides = [1, 1]} : vector<4x36xf32> to vector<4x1xf32>
    %113 = vector.extract_strided_slice %0 {offsets = [1, 0], sizes = [1, 512], strides = [1, 1]} : vector<4x512xf32> to vector<1x512xf32>
    %114 = vector.broadcast %112 : vector<4x1xf32> to vector<4x512xf32>
    %115 = vector.broadcast %113 : vector<1x512xf32> to vector<4x512xf32>
    %116 = arith.mulf %114, %115 : vector<4x512xf32>
    %117 = arith.addf %93, %116 : vector<4x512xf32>
    %118 = vector.extract_strided_slice %1 {offsets = [0, 18], sizes = [4, 1], strides = [1, 1]} : vector<4x36xf32> to vector<4x1xf32>
    %119 = vector.extract_strided_slice %0 {offsets = [2, 0], sizes = [1, 512], strides = [1, 1]} : vector<4x512xf32> to vector<1x512xf32>
    %120 = vector.broadcast %118 : vector<4x1xf32> to vector<4x512xf32>
    %121 = vector.broadcast %119 : vector<1x512xf32> to vector<4x512xf32>
    %122 = arith.mulf %120, %121 : vector<4x512xf32>
    %123 = arith.addf %99, %122 : vector<4x512xf32>
    %124 = vector.extract_strided_slice %1 {offsets = [0, 19], sizes = [4, 1], strides = [1, 1]} : vector<4x36xf32> to vector<4x1xf32>
    %125 = vector.extract_strided_slice %0 {offsets = [3, 0], sizes = [1, 512], strides = [1, 1]} : vector<4x512xf32> to vector<1x512xf32>
    %126 = vector.broadcast %124 : vector<4x1xf32> to vector<4x512xf32>
    %127 = vector.broadcast %125 : vector<1x512xf32> to vector<4x512xf32>
    %128 = arith.mulf %126, %127 : vector<4x512xf32>
    %129 = arith.addf %105, %128 : vector<4x512xf32>
    %c511_i32 = arith.constant 511 : i32
    %130 = tpu.dynamic_rotate %0 by %c511_i32 dim 1 : vector<4x512xf32>, i32 -> vector<4x512xf32>
    %c20 = arith.constant 20 : index
    %c0_8 = arith.constant 0 : index
    %131 = vector.load %arg6[%c20, %c0_8] : memref<36x512xf32, #tpu.memory_space<vmem>>, vector<4x512xf32>
    %132 = arith.mulf %130, %131 : vector<4x512xf32>
    %133 = vector.extract_strided_slice %1 {offsets = [0, 20], sizes = [4, 1], strides = [1, 1]} : vector<4x36xf32> to vector<4x1xf32>
    %134 = vector.extract_strided_slice %132 {offsets = [0, 0], sizes = [1, 512], strides = [1, 1]} : vector<4x512xf32> to vector<1x512xf32>
    %135 = vector.broadcast %133 : vector<4x1xf32> to vector<4x512xf32>
    %136 = vector.broadcast %134 : vector<1x512xf32> to vector<4x512xf32>
    %137 = arith.mulf %135, %136 : vector<4x512xf32>
    %138 = arith.addf %111, %137 : vector<4x512xf32>
    %139 = vector.extract_strided_slice %1 {offsets = [0, 21], sizes = [4, 1], strides = [1, 1]} : vector<4x36xf32> to vector<4x1xf32>
    %140 = vector.extract_strided_slice %132 {offsets = [1, 0], sizes = [1, 512], strides = [1, 1]} : vector<4x512xf32> to vector<1x512xf32>
    %141 = vector.broadcast %139 : vector<4x1xf32> to vector<4x512xf32>
    %142 = vector.broadcast %140 : vector<1x512xf32> to vector<4x512xf32>
    %143 = arith.mulf %141, %142 : vector<4x512xf32>
    %144 = arith.addf %117, %143 : vector<4x512xf32>
    %145 = vector.extract_strided_slice %1 {offsets = [0, 22], sizes = [4, 1], strides = [1, 1]} : vector<4x36xf32> to vector<4x1xf32>
    %146 = vector.extract_strided_slice %132 {offsets = [2, 0], sizes = [1, 512], strides = [1, 1]} : vector<4x512xf32> to vector<1x512xf32>
    %147 = vector.broadcast %145 : vector<4x1xf32> to vector<4x512xf32>
    %148 = vector.broadcast %146 : vector<1x512xf32> to vector<4x512xf32>
    %149 = arith.mulf %147, %148 : vector<4x512xf32>
    %150 = arith.addf %123, %149 : vector<4x512xf32>
    %151 = vector.extract_strided_slice %1 {offsets = [0, 23], sizes = [4, 1], strides = [1, 1]} : vector<4x36xf32> to vector<4x1xf32>
    %152 = vector.extract_strided_slice %132 {offsets = [3, 0], sizes = [1, 512], strides = [1, 1]} : vector<4x512xf32> to vector<1x512xf32>
    %153 = vector.broadcast %151 : vector<4x1xf32> to vector<4x512xf32>
    %154 = vector.broadcast %152 : vector<1x512xf32> to vector<4x512xf32>
    %155 = arith.mulf %153, %154 : vector<4x512xf32>
    %156 = arith.addf %129, %155 : vector<4x512xf32>
    %c497_i32 = arith.constant 497 : i32
    %157 = tpu.dynamic_rotate %0 by %c497_i32 dim 1 : vector<4x512xf32>, i32 -> vector<4x512xf32>
    %c24 = arith.constant 24 : index
    %c0_9 = arith.constant 0 : index
    %158 = vector.load %arg6[%c24, %c0_9] : memref<36x512xf32, #tpu.memory_space<vmem>>, vector<4x512xf32>
    %159 = arith.mulf %157, %158 : vector<4x512xf32>
    %160 = vector.extract_strided_slice %1 {offsets = [0, 24], sizes = [4, 1], strides = [1, 1]} : vector<4x36xf32> to vector<4x1xf32>
    %161 = vector.extract_strided_slice %159 {offsets = [0, 0], sizes = [1, 512], strides = [1, 1]} : vector<4x512xf32> to vector<1x512xf32>
    %162 = vector.broadcast %160 : vector<4x1xf32> to vector<4x512xf32>
    %163 = vector.broadcast %161 : vector<1x512xf32> to vector<4x512xf32>
    %164 = arith.mulf %162, %163 : vector<4x512xf32>
    %165 = arith.addf %138, %164 : vector<4x512xf32>
    %166 = vector.extract_strided_slice %1 {offsets = [0, 25], sizes = [4, 1], strides = [1, 1]} : vector<4x36xf32> to vector<4x1xf32>
    %167 = vector.extract_strided_slice %159 {offsets = [1, 0], sizes = [1, 512], strides = [1, 1]} : vector<4x512xf32> to vector<1x512xf32>
    %168 = vector.broadcast %166 : vector<4x1xf32> to vector<4x512xf32>
    %169 = vector.broadcast %167 : vector<1x512xf32> to vector<4x512xf32>
    %170 = arith.mulf %168, %169 : vector<4x512xf32>
    %171 = arith.addf %144, %170 : vector<4x512xf32>
    %172 = vector.extract_strided_slice %1 {offsets = [0, 26], sizes = [4, 1], strides = [1, 1]} : vector<4x36xf32> to vector<4x1xf32>
    %173 = vector.extract_strided_slice %159 {offsets = [2, 0], sizes = [1, 512], strides = [1, 1]} : vector<4x512xf32> to vector<1x512xf32>
    %174 = vector.broadcast %172 : vector<4x1xf32> to vector<4x512xf32>
    %175 = vector.broadcast %173 : vector<1x512xf32> to vector<4x512xf32>
    %176 = arith.mulf %174, %175 : vector<4x512xf32>
    %177 = arith.addf %150, %176 : vector<4x512xf32>
    %178 = vector.extract_strided_slice %1 {offsets = [0, 27], sizes = [4, 1], strides = [1, 1]} : vector<4x36xf32> to vector<4x1xf32>
    %179 = vector.extract_strided_slice %159 {offsets = [3, 0], sizes = [1, 512], strides = [1, 1]} : vector<4x512xf32> to vector<1x512xf32>
    %180 = vector.broadcast %178 : vector<4x1xf32> to vector<4x512xf32>
    %181 = vector.broadcast %179 : vector<1x512xf32> to vector<4x512xf32>
    %182 = arith.mulf %180, %181 : vector<4x512xf32>
    %183 = arith.addf %156, %182 : vector<4x512xf32>
    %c496_i32 = arith.constant 496 : i32
    %184 = tpu.dynamic_rotate %0 by %c496_i32 dim 1 : vector<4x512xf32>, i32 -> vector<4x512xf32>
    %c28 = arith.constant 28 : index
    %c0_10 = arith.constant 0 : index
    %185 = vector.load %arg6[%c28, %c0_10] : memref<36x512xf32, #tpu.memory_space<vmem>>, vector<4x512xf32>
    %186 = arith.mulf %184, %185 : vector<4x512xf32>
    %187 = vector.extract_strided_slice %1 {offsets = [0, 28], sizes = [4, 1], strides = [1, 1]} : vector<4x36xf32> to vector<4x1xf32>
    %188 = vector.extract_strided_slice %186 {offsets = [0, 0], sizes = [1, 512], strides = [1, 1]} : vector<4x512xf32> to vector<1x512xf32>
    %189 = vector.broadcast %187 : vector<4x1xf32> to vector<4x512xf32>
    %190 = vector.broadcast %188 : vector<1x512xf32> to vector<4x512xf32>
    %191 = arith.mulf %189, %190 : vector<4x512xf32>
    %192 = arith.addf %165, %191 : vector<4x512xf32>
    %193 = vector.extract_strided_slice %1 {offsets = [0, 29], sizes = [4, 1], strides = [1, 1]} : vector<4x36xf32> to vector<4x1xf32>
    %194 = vector.extract_strided_slice %186 {offsets = [1, 0], sizes = [1, 512], strides = [1, 1]} : vector<4x512xf32> to vector<1x512xf32>
    %195 = vector.broadcast %193 : vector<4x1xf32> to vector<4x512xf32>
    %196 = vector.broadcast %194 : vector<1x512xf32> to vector<4x512xf32>
    %197 = arith.mulf %195, %196 : vector<4x512xf32>
    %198 = arith.addf %171, %197 : vector<4x512xf32>
    %199 = vector.extract_strided_slice %1 {offsets = [0, 30], sizes = [4, 1], strides = [1, 1]} : vector<4x36xf32> to vector<4x1xf32>
    %200 = vector.extract_strided_slice %186 {offsets = [2, 0], sizes = [1, 512], strides = [1, 1]} : vector<4x512xf32> to vector<1x512xf32>
    %201 = vector.broadcast %199 : vector<4x1xf32> to vector<4x512xf32>
    %202 = vector.broadcast %200 : vector<1x512xf32> to vector<4x512xf32>
    %203 = arith.mulf %201, %202 : vector<4x512xf32>
    %204 = arith.addf %177, %203 : vector<4x512xf32>
    %205 = vector.extract_strided_slice %1 {offsets = [0, 31], sizes = [4, 1], strides = [1, 1]} : vector<4x36xf32> to vector<4x1xf32>
    %206 = vector.extract_strided_slice %186 {offsets = [3, 0], sizes = [1, 512], strides = [1, 1]} : vector<4x512xf32> to vector<1x512xf32>
    %207 = vector.broadcast %205 : vector<4x1xf32> to vector<4x512xf32>
    %208 = vector.broadcast %206 : vector<1x512xf32> to vector<4x512xf32>
    %209 = arith.mulf %207, %208 : vector<4x512xf32>
    %210 = arith.addf %183, %209 : vector<4x512xf32>
    %c495_i32 = arith.constant 495 : i32
    %211 = tpu.dynamic_rotate %0 by %c495_i32 dim 1 : vector<4x512xf32>, i32 -> vector<4x512xf32>
    %c32 = arith.constant 32 : index
    %c0_11 = arith.constant 0 : index
    %212 = vector.load %arg6[%c32, %c0_11] : memref<36x512xf32, #tpu.memory_space<vmem>>, vector<4x512xf32>
    %213 = arith.mulf %211, %212 : vector<4x512xf32>
    %214 = vector.extract_strided_slice %1 {offsets = [0, 32], sizes = [4, 1], strides = [1, 1]} : vector<4x36xf32> to vector<4x1xf32>
    %215 = vector.extract_strided_slice %213 {offsets = [0, 0], sizes = [1, 512], strides = [1, 1]} : vector<4x512xf32> to vector<1x512xf32>
    %216 = vector.broadcast %214 : vector<4x1xf32> to vector<4x512xf32>
    %217 = vector.broadcast %215 : vector<1x512xf32> to vector<4x512xf32>
    %218 = arith.mulf %216, %217 : vector<4x512xf32>
    %219 = arith.addf %192, %218 : vector<4x512xf32>
    %220 = vector.extract_strided_slice %1 {offsets = [0, 33], sizes = [4, 1], strides = [1, 1]} : vector<4x36xf32> to vector<4x1xf32>
    %221 = vector.extract_strided_slice %213 {offsets = [1, 0], sizes = [1, 512], strides = [1, 1]} : vector<4x512xf32> to vector<1x512xf32>
    %222 = vector.broadcast %220 : vector<4x1xf32> to vector<4x512xf32>
    %223 = vector.broadcast %221 : vector<1x512xf32> to vector<4x512xf32>
    %224 = arith.mulf %222, %223 : vector<4x512xf32>
    %225 = arith.addf %198, %224 : vector<4x512xf32>
    %226 = vector.extract_strided_slice %1 {offsets = [0, 34], sizes = [4, 1], strides = [1, 1]} : vector<4x36xf32> to vector<4x1xf32>
    %227 = vector.extract_strided_slice %213 {offsets = [2, 0], sizes = [1, 512], strides = [1, 1]} : vector<4x512xf32> to vector<1x512xf32>
    %228 = vector.broadcast %226 : vector<4x1xf32> to vector<4x512xf32>
    %229 = vector.broadcast %227 : vector<1x512xf32> to vector<4x512xf32>
    %230 = arith.mulf %228, %229 : vector<4x512xf32>
    %231 = arith.addf %204, %230 : vector<4x512xf32>
    %232 = vector.extract_strided_slice %1 {offsets = [0, 35], sizes = [4, 1], strides = [1, 1]} : vector<4x36xf32> to vector<4x1xf32>
    %233 = vector.extract_strided_slice %213 {offsets = [3, 0], sizes = [1, 512], strides = [1, 1]} : vector<4x512xf32> to vector<1x512xf32>
    %234 = vector.broadcast %232 : vector<4x1xf32> to vector<4x512xf32>
    %235 = vector.broadcast %233 : vector<1x512xf32> to vector<4x512xf32>
    %236 = arith.mulf %234, %235 : vector<4x512xf32>
    %237 = arith.addf %210, %236 : vector<4x512xf32>
    %238 = arith.addf %219, %225 : vector<4x512xf32>
    %239 = arith.addf %231, %237 : vector<4x512xf32>
    %240 = arith.addf %238, %239 : vector<4x512xf32>
    %c0_12 = arith.constant 0 : index
    %c0_13 = arith.constant 0 : index
    %241 = vector.load %arg3[%c0_12, %c0_13] : memref<4x1xf32, #tpu.memory_space<vmem>>, vector<4x1xf32>
    %242 = vector.shape_cast %241 : vector<4x1xf32> to vector<4x1xf32>
    %243 = vector.broadcast %242 : vector<4x1xf32> to vector<4x512xf32>
    %244 = arith.addf %240, %243 : vector<4x512xf32>
    %cst = arith.constant 2.000000e-01 : f32
    %245 = vector.broadcast %cst : f32 to vector<4x512xf32>
    %246 = arith.mulf %245, %244 : vector<4x512xf32>
    %247 = arith.maximumf %244, %246 : vector<4x512xf32>
    %c0_14 = arith.constant 0 : index
    %c0_15 = arith.constant 0 : index
    %248 = vector.load %arg4[%c0_14, %c0_15] : memref<4x36xf32, #tpu.memory_space<vmem>>, vector<4x36xf32>
    %c17_i32_16 = arith.constant 17 : i32
    %249 = tpu.dynamic_rotate %247 by %c17_i32_16 dim 1 : vector<4x512xf32>, i32 -> vector<4x512xf32>
    %c0_17 = arith.constant 0 : index
    %c0_18 = arith.constant 0 : index
    %250 = vector.load %arg6[%c0_17, %c0_18] : memref<36x512xf32, #tpu.memory_space<vmem>>, vector<4x512xf32>
    %251 = arith.mulf %249, %250 : vector<4x512xf32>
    %252 = vector.extract_strided_slice %248 {offsets = [0, 0], sizes = [4, 1], strides = [1, 1]} : vector<4x36xf32> to vector<4x1xf32>
    %253 = vector.extract_strided_slice %251 {offsets = [0, 0], sizes = [1, 512], strides = [1, 1]} : vector<4x512xf32> to vector<1x512xf32>
    %254 = vector.broadcast %252 : vector<4x1xf32> to vector<4x512xf32>
    %255 = vector.broadcast %253 : vector<1x512xf32> to vector<4x512xf32>
    %256 = arith.mulf %254, %255 : vector<4x512xf32>
    %257 = vector.extract_strided_slice %248 {offsets = [0, 1], sizes = [4, 1], strides = [1, 1]} : vector<4x36xf32> to vector<4x1xf32>
    %258 = vector.extract_strided_slice %251 {offsets = [1, 0], sizes = [1, 512], strides = [1, 1]} : vector<4x512xf32> to vector<1x512xf32>
    %259 = vector.broadcast %257 : vector<4x1xf32> to vector<4x512xf32>
    %260 = vector.broadcast %258 : vector<1x512xf32> to vector<4x512xf32>
    %261 = arith.mulf %259, %260 : vector<4x512xf32>
    %262 = vector.extract_strided_slice %248 {offsets = [0, 2], sizes = [4, 1], strides = [1, 1]} : vector<4x36xf32> to vector<4x1xf32>
    %263 = vector.extract_strided_slice %251 {offsets = [2, 0], sizes = [1, 512], strides = [1, 1]} : vector<4x512xf32> to vector<1x512xf32>
    %264 = vector.broadcast %262 : vector<4x1xf32> to vector<4x512xf32>
    %265 = vector.broadcast %263 : vector<1x512xf32> to vector<4x512xf32>
    %266 = arith.mulf %264, %265 : vector<4x512xf32>
    %267 = vector.extract_strided_slice %248 {offsets = [0, 3], sizes = [4, 1], strides = [1, 1]} : vector<4x36xf32> to vector<4x1xf32>
    %268 = vector.extract_strided_slice %251 {offsets = [3, 0], sizes = [1, 512], strides = [1, 1]} : vector<4x512xf32> to vector<1x512xf32>
    %269 = vector.broadcast %267 : vector<4x1xf32> to vector<4x512xf32>
    %270 = vector.broadcast %268 : vector<1x512xf32> to vector<4x512xf32>
    %271 = arith.mulf %269, %270 : vector<4x512xf32>
    %c16_i32_19 = arith.constant 16 : i32
    %272 = tpu.dynamic_rotate %247 by %c16_i32_19 dim 1 : vector<4x512xf32>, i32 -> vector<4x512xf32>
    %c4_20 = arith.constant 4 : index
    %c0_21 = arith.constant 0 : index
    %273 = vector.load %arg6[%c4_20, %c0_21] : memref<36x512xf32, #tpu.memory_space<vmem>>, vector<4x512xf32>
    %274 = arith.mulf %272, %273 : vector<4x512xf32>
    %275 = vector.extract_strided_slice %248 {offsets = [0, 4], sizes = [4, 1], strides = [1, 1]} : vector<4x36xf32> to vector<4x1xf32>
    %276 = vector.extract_strided_slice %274 {offsets = [0, 0], sizes = [1, 512], strides = [1, 1]} : vector<4x512xf32> to vector<1x512xf32>
    %277 = vector.broadcast %275 : vector<4x1xf32> to vector<4x512xf32>
    %278 = vector.broadcast %276 : vector<1x512xf32> to vector<4x512xf32>
    %279 = arith.mulf %277, %278 : vector<4x512xf32>
    %280 = arith.addf %256, %279 : vector<4x512xf32>
    %281 = vector.extract_strided_slice %248 {offsets = [0, 5], sizes = [4, 1], strides = [1, 1]} : vector<4x36xf32> to vector<4x1xf32>
    %282 = vector.extract_strided_slice %274 {offsets = [1, 0], sizes = [1, 512], strides = [1, 1]} : vector<4x512xf32> to vector<1x512xf32>
    %283 = vector.broadcast %281 : vector<4x1xf32> to vector<4x512xf32>
    %284 = vector.broadcast %282 : vector<1x512xf32> to vector<4x512xf32>
    %285 = arith.mulf %283, %284 : vector<4x512xf32>
    %286 = arith.addf %261, %285 : vector<4x512xf32>
    %287 = vector.extract_strided_slice %248 {offsets = [0, 6], sizes = [4, 1], strides = [1, 1]} : vector<4x36xf32> to vector<4x1xf32>
    %288 = vector.extract_strided_slice %274 {offsets = [2, 0], sizes = [1, 512], strides = [1, 1]} : vector<4x512xf32> to vector<1x512xf32>
    %289 = vector.broadcast %287 : vector<4x1xf32> to vector<4x512xf32>
    %290 = vector.broadcast %288 : vector<1x512xf32> to vector<4x512xf32>
    %291 = arith.mulf %289, %290 : vector<4x512xf32>
    %292 = arith.addf %266, %291 : vector<4x512xf32>
    %293 = vector.extract_strided_slice %248 {offsets = [0, 7], sizes = [4, 1], strides = [1, 1]} : vector<4x36xf32> to vector<4x1xf32>
    %294 = vector.extract_strided_slice %274 {offsets = [3, 0], sizes = [1, 512], strides = [1, 1]} : vector<4x512xf32> to vector<1x512xf32>
    %295 = vector.broadcast %293 : vector<4x1xf32> to vector<4x512xf32>
    %296 = vector.broadcast %294 : vector<1x512xf32> to vector<4x512xf32>
    %297 = arith.mulf %295, %296 : vector<4x512xf32>
    %298 = arith.addf %271, %297 : vector<4x512xf32>
    %c15_i32_22 = arith.constant 15 : i32
    %299 = tpu.dynamic_rotate %247 by %c15_i32_22 dim 1 : vector<4x512xf32>, i32 -> vector<4x512xf32>
    %c8_23 = arith.constant 8 : index
    %c0_24 = arith.constant 0 : index
    %300 = vector.load %arg6[%c8_23, %c0_24] : memref<36x512xf32, #tpu.memory_space<vmem>>, vector<4x512xf32>
    %301 = arith.mulf %299, %300 : vector<4x512xf32>
    %302 = vector.extract_strided_slice %248 {offsets = [0, 8], sizes = [4, 1], strides = [1, 1]} : vector<4x36xf32> to vector<4x1xf32>
    %303 = vector.extract_strided_slice %301 {offsets = [0, 0], sizes = [1, 512], strides = [1, 1]} : vector<4x512xf32> to vector<1x512xf32>
    %304 = vector.broadcast %302 : vector<4x1xf32> to vector<4x512xf32>
    %305 = vector.broadcast %303 : vector<1x512xf32> to vector<4x512xf32>
    %306 = arith.mulf %304, %305 : vector<4x512xf32>
    %307 = arith.addf %280, %306 : vector<4x512xf32>
    %308 = vector.extract_strided_slice %248 {offsets = [0, 9], sizes = [4, 1], strides = [1, 1]} : vector<4x36xf32> to vector<4x1xf32>
    %309 = vector.extract_strided_slice %301 {offsets = [1, 0], sizes = [1, 512], strides = [1, 1]} : vector<4x512xf32> to vector<1x512xf32>
    %310 = vector.broadcast %308 : vector<4x1xf32> to vector<4x512xf32>
    %311 = vector.broadcast %309 : vector<1x512xf32> to vector<4x512xf32>
    %312 = arith.mulf %310, %311 : vector<4x512xf32>
    %313 = arith.addf %286, %312 : vector<4x512xf32>
    %314 = vector.extract_strided_slice %248 {offsets = [0, 10], sizes = [4, 1], strides = [1, 1]} : vector<4x36xf32> to vector<4x1xf32>
    %315 = vector.extract_strided_slice %301 {offsets = [2, 0], sizes = [1, 512], strides = [1, 1]} : vector<4x512xf32> to vector<1x512xf32>
    %316 = vector.broadcast %314 : vector<4x1xf32> to vector<4x512xf32>
    %317 = vector.broadcast %315 : vector<1x512xf32> to vector<4x512xf32>
    %318 = arith.mulf %316, %317 : vector<4x512xf32>
    %319 = arith.addf %292, %318 : vector<4x512xf32>
    %320 = vector.extract_strided_slice %248 {offsets = [0, 11], sizes = [4, 1], strides = [1, 1]} : vector<4x36xf32> to vector<4x1xf32>
    %321 = vector.extract_strided_slice %301 {offsets = [3, 0], sizes = [1, 512], strides = [1, 1]} : vector<4x512xf32> to vector<1x512xf32>
    %322 = vector.broadcast %320 : vector<4x1xf32> to vector<4x512xf32>
    %323 = vector.broadcast %321 : vector<1x512xf32> to vector<4x512xf32>
    %324 = arith.mulf %322, %323 : vector<4x512xf32>
    %325 = arith.addf %298, %324 : vector<4x512xf32>
    %c1_i32_25 = arith.constant 1 : i32
    %326 = tpu.dynamic_rotate %247 by %c1_i32_25 dim 1 : vector<4x512xf32>, i32 -> vector<4x512xf32>
    %c12_26 = arith.constant 12 : index
    %c0_27 = arith.constant 0 : index
    %327 = vector.load %arg6[%c12_26, %c0_27] : memref<36x512xf32, #tpu.memory_space<vmem>>, vector<4x512xf32>
    %328 = arith.mulf %326, %327 : vector<4x512xf32>
    %329 = vector.extract_strided_slice %248 {offsets = [0, 12], sizes = [4, 1], strides = [1, 1]} : vector<4x36xf32> to vector<4x1xf32>
    %330 = vector.extract_strided_slice %328 {offsets = [0, 0], sizes = [1, 512], strides = [1, 1]} : vector<4x512xf32> to vector<1x512xf32>
    %331 = vector.broadcast %329 : vector<4x1xf32> to vector<4x512xf32>
    %332 = vector.broadcast %330 : vector<1x512xf32> to vector<4x512xf32>
    %333 = arith.mulf %331, %332 : vector<4x512xf32>
    %334 = arith.addf %307, %333 : vector<4x512xf32>
    %335 = vector.extract_strided_slice %248 {offsets = [0, 13], sizes = [4, 1], strides = [1, 1]} : vector<4x36xf32> to vector<4x1xf32>
    %336 = vector.extract_strided_slice %328 {offsets = [1, 0], sizes = [1, 512], strides = [1, 1]} : vector<4x512xf32> to vector<1x512xf32>
    %337 = vector.broadcast %335 : vector<4x1xf32> to vector<4x512xf32>
    %338 = vector.broadcast %336 : vector<1x512xf32> to vector<4x512xf32>
    %339 = arith.mulf %337, %338 : vector<4x512xf32>
    %340 = arith.addf %313, %339 : vector<4x512xf32>
    %341 = vector.extract_strided_slice %248 {offsets = [0, 14], sizes = [4, 1], strides = [1, 1]} : vector<4x36xf32> to vector<4x1xf32>
    %342 = vector.extract_strided_slice %328 {offsets = [2, 0], sizes = [1, 512], strides = [1, 1]} : vector<4x512xf32> to vector<1x512xf32>
    %343 = vector.broadcast %341 : vector<4x1xf32> to vector<4x512xf32>
    %344 = vector.broadcast %342 : vector<1x512xf32> to vector<4x512xf32>
    %345 = arith.mulf %343, %344 : vector<4x512xf32>
    %346 = arith.addf %319, %345 : vector<4x512xf32>
    %347 = vector.extract_strided_slice %248 {offsets = [0, 15], sizes = [4, 1], strides = [1, 1]} : vector<4x36xf32> to vector<4x1xf32>
    %348 = vector.extract_strided_slice %328 {offsets = [3, 0], sizes = [1, 512], strides = [1, 1]} : vector<4x512xf32> to vector<1x512xf32>
    %349 = vector.broadcast %347 : vector<4x1xf32> to vector<4x512xf32>
    %350 = vector.broadcast %348 : vector<1x512xf32> to vector<4x512xf32>
    %351 = arith.mulf %349, %350 : vector<4x512xf32>
    %352 = arith.addf %325, %351 : vector<4x512xf32>
    %353 = vector.extract_strided_slice %248 {offsets = [0, 16], sizes = [4, 1], strides = [1, 1]} : vector<4x36xf32> to vector<4x1xf32>
    %354 = vector.extract_strided_slice %247 {offsets = [0, 0], sizes = [1, 512], strides = [1, 1]} : vector<4x512xf32> to vector<1x512xf32>
    %355 = vector.broadcast %353 : vector<4x1xf32> to vector<4x512xf32>
    %356 = vector.broadcast %354 : vector<1x512xf32> to vector<4x512xf32>
    %357 = arith.mulf %355, %356 : vector<4x512xf32>
    %358 = arith.addf %334, %357 : vector<4x512xf32>
    %359 = vector.extract_strided_slice %248 {offsets = [0, 17], sizes = [4, 1], strides = [1, 1]} : vector<4x36xf32> to vector<4x1xf32>
    %360 = vector.extract_strided_slice %247 {offsets = [1, 0], sizes = [1, 512], strides = [1, 1]} : vector<4x512xf32> to vector<1x512xf32>
    %361 = vector.broadcast %359 : vector<4x1xf32> to vector<4x512xf32>
    %362 = vector.broadcast %360 : vector<1x512xf32> to vector<4x512xf32>
    %363 = arith.mulf %361, %362 : vector<4x512xf32>
    %364 = arith.addf %340, %363 : vector<4x512xf32>
    %365 = vector.extract_strided_slice %248 {offsets = [0, 18], sizes = [4, 1], strides = [1, 1]} : vector<4x36xf32> to vector<4x1xf32>
    %366 = vector.extract_strided_slice %247 {offsets = [2, 0], sizes = [1, 512], strides = [1, 1]} : vector<4x512xf32> to vector<1x512xf32>
    %367 = vector.broadcast %365 : vector<4x1xf32> to vector<4x512xf32>
    %368 = vector.broadcast %366 : vector<1x512xf32> to vector<4x512xf32>
    %369 = arith.mulf %367, %368 : vector<4x512xf32>
    %370 = arith.addf %346, %369 : vector<4x512xf32>
    %371 = vector.extract_strided_slice %248 {offsets = [0, 19], sizes = [4, 1], strides = [1, 1]} : vector<4x36xf32> to vector<4x1xf32>
    %372 = vector.extract_strided_slice %247 {offsets = [3, 0], sizes = [1, 512], strides = [1, 1]} : vector<4x512xf32> to vector<1x512xf32>
    %373 = vector.broadcast %371 : vector<4x1xf32> to vector<4x512xf32>
    %374 = vector.broadcast %372 : vector<1x512xf32> to vector<4x512xf32>
    %375 = arith.mulf %373, %374 : vector<4x512xf32>
    %376 = arith.addf %352, %375 : vector<4x512xf32>
    %c511_i32_28 = arith.constant 511 : i32
    %377 = tpu.dynamic_rotate %247 by %c511_i32_28 dim 1 : vector<4x512xf32>, i32 -> vector<4x512xf32>
    %c20_29 = arith.constant 20 : index
    %c0_30 = arith.constant 0 : index
    %378 = vector.load %arg6[%c20_29, %c0_30] : memref<36x512xf32, #tpu.memory_space<vmem>>, vector<4x512xf32>
    %379 = arith.mulf %377, %378 : vector<4x512xf32>
    %380 = vector.extract_strided_slice %248 {offsets = [0, 20], sizes = [4, 1], strides = [1, 1]} : vector<4x36xf32> to vector<4x1xf32>
    %381 = vector.extract_strided_slice %379 {offsets = [0, 0], sizes = [1, 512], strides = [1, 1]} : vector<4x512xf32> to vector<1x512xf32>
    %382 = vector.broadcast %380 : vector<4x1xf32> to vector<4x512xf32>
    %383 = vector.broadcast %381 : vector<1x512xf32> to vector<4x512xf32>
    %384 = arith.mulf %382, %383 : vector<4x512xf32>
    %385 = arith.addf %358, %384 : vector<4x512xf32>
    %386 = vector.extract_strided_slice %248 {offsets = [0, 21], sizes = [4, 1], strides = [1, 1]} : vector<4x36xf32> to vector<4x1xf32>
    %387 = vector.extract_strided_slice %379 {offsets = [1, 0], sizes = [1, 512], strides = [1, 1]} : vector<4x512xf32> to vector<1x512xf32>
    %388 = vector.broadcast %386 : vector<4x1xf32> to vector<4x512xf32>
    %389 = vector.broadcast %387 : vector<1x512xf32> to vector<4x512xf32>
    %390 = arith.mulf %388, %389 : vector<4x512xf32>
    %391 = arith.addf %364, %390 : vector<4x512xf32>
    %392 = vector.extract_strided_slice %248 {offsets = [0, 22], sizes = [4, 1], strides = [1, 1]} : vector<4x36xf32> to vector<4x1xf32>
    %393 = vector.extract_strided_slice %379 {offsets = [2, 0], sizes = [1, 512], strides = [1, 1]} : vector<4x512xf32> to vector<1x512xf32>
    %394 = vector.broadcast %392 : vector<4x1xf32> to vector<4x512xf32>
    %395 = vector.broadcast %393 : vector<1x512xf32> to vector<4x512xf32>
    %396 = arith.mulf %394, %395 : vector<4x512xf32>
    %397 = arith.addf %370, %396 : vector<4x512xf32>
    %398 = vector.extract_strided_slice %248 {offsets = [0, 23], sizes = [4, 1], strides = [1, 1]} : vector<4x36xf32> to vector<4x1xf32>
    %399 = vector.extract_strided_slice %379 {offsets = [3, 0], sizes = [1, 512], strides = [1, 1]} : vector<4x512xf32> to vector<1x512xf32>
    %400 = vector.broadcast %398 : vector<4x1xf32> to vector<4x512xf32>
    %401 = vector.broadcast %399 : vector<1x512xf32> to vector<4x512xf32>
    %402 = arith.mulf %400, %401 : vector<4x512xf32>
    %403 = arith.addf %376, %402 : vector<4x512xf32>
    %c497_i32_31 = arith.constant 497 : i32
    %404 = tpu.dynamic_rotate %247 by %c497_i32_31 dim 1 : vector<4x512xf32>, i32 -> vector<4x512xf32>
    %c24_32 = arith.constant 24 : index
    %c0_33 = arith.constant 0 : index
    %405 = vector.load %arg6[%c24_32, %c0_33] : memref<36x512xf32, #tpu.memory_space<vmem>>, vector<4x512xf32>
    %406 = arith.mulf %404, %405 : vector<4x512xf32>
    %407 = vector.extract_strided_slice %248 {offsets = [0, 24], sizes = [4, 1], strides = [1, 1]} : vector<4x36xf32> to vector<4x1xf32>
    %408 = vector.extract_strided_slice %406 {offsets = [0, 0], sizes = [1, 512], strides = [1, 1]} : vector<4x512xf32> to vector<1x512xf32>
    %409 = vector.broadcast %407 : vector<4x1xf32> to vector<4x512xf32>
    %410 = vector.broadcast %408 : vector<1x512xf32> to vector<4x512xf32>
    %411 = arith.mulf %409, %410 : vector<4x512xf32>
    %412 = arith.addf %385, %411 : vector<4x512xf32>
    %413 = vector.extract_strided_slice %248 {offsets = [0, 25], sizes = [4, 1], strides = [1, 1]} : vector<4x36xf32> to vector<4x1xf32>
    %414 = vector.extract_strided_slice %406 {offsets = [1, 0], sizes = [1, 512], strides = [1, 1]} : vector<4x512xf32> to vector<1x512xf32>
    %415 = vector.broadcast %413 : vector<4x1xf32> to vector<4x512xf32>
    %416 = vector.broadcast %414 : vector<1x512xf32> to vector<4x512xf32>
    %417 = arith.mulf %415, %416 : vector<4x512xf32>
    %418 = arith.addf %391, %417 : vector<4x512xf32>
    %419 = vector.extract_strided_slice %248 {offsets = [0, 26], sizes = [4, 1], strides = [1, 1]} : vector<4x36xf32> to vector<4x1xf32>
    %420 = vector.extract_strided_slice %406 {offsets = [2, 0], sizes = [1, 512], strides = [1, 1]} : vector<4x512xf32> to vector<1x512xf32>
    %421 = vector.broadcast %419 : vector<4x1xf32> to vector<4x512xf32>
    %422 = vector.broadcast %420 : vector<1x512xf32> to vector<4x512xf32>
    %423 = arith.mulf %421, %422 : vector<4x512xf32>
    %424 = arith.addf %397, %423 : vector<4x512xf32>
    %425 = vector.extract_strided_slice %248 {offsets = [0, 27], sizes = [4, 1], strides = [1, 1]} : vector<4x36xf32> to vector<4x1xf32>
    %426 = vector.extract_strided_slice %406 {offsets = [3, 0], sizes = [1, 512], strides = [1, 1]} : vector<4x512xf32> to vector<1x512xf32>
    %427 = vector.broadcast %425 : vector<4x1xf32> to vector<4x512xf32>
    %428 = vector.broadcast %426 : vector<1x512xf32> to vector<4x512xf32>
    %429 = arith.mulf %427, %428 : vector<4x512xf32>
    %430 = arith.addf %403, %429 : vector<4x512xf32>
    %c496_i32_34 = arith.constant 496 : i32
    %431 = tpu.dynamic_rotate %247 by %c496_i32_34 dim 1 : vector<4x512xf32>, i32 -> vector<4x512xf32>
    %c28_35 = arith.constant 28 : index
    %c0_36 = arith.constant 0 : index
    %432 = vector.load %arg6[%c28_35, %c0_36] : memref<36x512xf32, #tpu.memory_space<vmem>>, vector<4x512xf32>
    %433 = arith.mulf %431, %432 : vector<4x512xf32>
    %434 = vector.extract_strided_slice %248 {offsets = [0, 28], sizes = [4, 1], strides = [1, 1]} : vector<4x36xf32> to vector<4x1xf32>
    %435 = vector.extract_strided_slice %433 {offsets = [0, 0], sizes = [1, 512], strides = [1, 1]} : vector<4x512xf32> to vector<1x512xf32>
    %436 = vector.broadcast %434 : vector<4x1xf32> to vector<4x512xf32>
    %437 = vector.broadcast %435 : vector<1x512xf32> to vector<4x512xf32>
    %438 = arith.mulf %436, %437 : vector<4x512xf32>
    %439 = arith.addf %412, %438 : vector<4x512xf32>
    %440 = vector.extract_strided_slice %248 {offsets = [0, 29], sizes = [4, 1], strides = [1, 1]} : vector<4x36xf32> to vector<4x1xf32>
    %441 = vector.extract_strided_slice %433 {offsets = [1, 0], sizes = [1, 512], strides = [1, 1]} : vector<4x512xf32> to vector<1x512xf32>
    %442 = vector.broadcast %440 : vector<4x1xf32> to vector<4x512xf32>
    %443 = vector.broadcast %441 : vector<1x512xf32> to vector<4x512xf32>
    %444 = arith.mulf %442, %443 : vector<4x512xf32>
    %445 = arith.addf %418, %444 : vector<4x512xf32>
    %446 = vector.extract_strided_slice %248 {offsets = [0, 30], sizes = [4, 1], strides = [1, 1]} : vector<4x36xf32> to vector<4x1xf32>
    %447 = vector.extract_strided_slice %433 {offsets = [2, 0], sizes = [1, 512], strides = [1, 1]} : vector<4x512xf32> to vector<1x512xf32>
    %448 = vector.broadcast %446 : vector<4x1xf32> to vector<4x512xf32>
    %449 = vector.broadcast %447 : vector<1x512xf32> to vector<4x512xf32>
    %450 = arith.mulf %448, %449 : vector<4x512xf32>
    %451 = arith.addf %424, %450 : vector<4x512xf32>
    %452 = vector.extract_strided_slice %248 {offsets = [0, 31], sizes = [4, 1], strides = [1, 1]} : vector<4x36xf32> to vector<4x1xf32>
    %453 = vector.extract_strided_slice %433 {offsets = [3, 0], sizes = [1, 512], strides = [1, 1]} : vector<4x512xf32> to vector<1x512xf32>
    %454 = vector.broadcast %452 : vector<4x1xf32> to vector<4x512xf32>
    %455 = vector.broadcast %453 : vector<1x512xf32> to vector<4x512xf32>
    %456 = arith.mulf %454, %455 : vector<4x512xf32>
    %457 = arith.addf %430, %456 : vector<4x512xf32>
    %c495_i32_37 = arith.constant 495 : i32
    %458 = tpu.dynamic_rotate %247 by %c495_i32_37 dim 1 : vector<4x512xf32>, i32 -> vector<4x512xf32>
    %c32_38 = arith.constant 32 : index
    %c0_39 = arith.constant 0 : index
    %459 = vector.load %arg6[%c32_38, %c0_39] : memref<36x512xf32, #tpu.memory_space<vmem>>, vector<4x512xf32>
    %460 = arith.mulf %458, %459 : vector<4x512xf32>
    %461 = vector.extract_strided_slice %248 {offsets = [0, 32], sizes = [4, 1], strides = [1, 1]} : vector<4x36xf32> to vector<4x1xf32>
    %462 = vector.extract_strided_slice %460 {offsets = [0, 0], sizes = [1, 512], strides = [1, 1]} : vector<4x512xf32> to vector<1x512xf32>
    %463 = vector.broadcast %461 : vector<4x1xf32> to vector<4x512xf32>
    %464 = vector.broadcast %462 : vector<1x512xf32> to vector<4x512xf32>
    %465 = arith.mulf %463, %464 : vector<4x512xf32>
    %466 = arith.addf %439, %465 : vector<4x512xf32>
    %467 = vector.extract_strided_slice %248 {offsets = [0, 33], sizes = [4, 1], strides = [1, 1]} : vector<4x36xf32> to vector<4x1xf32>
    %468 = vector.extract_strided_slice %460 {offsets = [1, 0], sizes = [1, 512], strides = [1, 1]} : vector<4x512xf32> to vector<1x512xf32>
    %469 = vector.broadcast %467 : vector<4x1xf32> to vector<4x512xf32>
    %470 = vector.broadcast %468 : vector<1x512xf32> to vector<4x512xf32>
    %471 = arith.mulf %469, %470 : vector<4x512xf32>
    %472 = arith.addf %445, %471 : vector<4x512xf32>
    %473 = vector.extract_strided_slice %248 {offsets = [0, 34], sizes = [4, 1], strides = [1, 1]} : vector<4x36xf32> to vector<4x1xf32>
    %474 = vector.extract_strided_slice %460 {offsets = [2, 0], sizes = [1, 512], strides = [1, 1]} : vector<4x512xf32> to vector<1x512xf32>
    %475 = vector.broadcast %473 : vector<4x1xf32> to vector<4x512xf32>
    %476 = vector.broadcast %474 : vector<1x512xf32> to vector<4x512xf32>
    %477 = arith.mulf %475, %476 : vector<4x512xf32>
    %478 = arith.addf %451, %477 : vector<4x512xf32>
    %479 = vector.extract_strided_slice %248 {offsets = [0, 35], sizes = [4, 1], strides = [1, 1]} : vector<4x36xf32> to vector<4x1xf32>
    %480 = vector.extract_strided_slice %460 {offsets = [3, 0], sizes = [1, 512], strides = [1, 1]} : vector<4x512xf32> to vector<1x512xf32>
    %481 = vector.broadcast %479 : vector<4x1xf32> to vector<4x512xf32>
    %482 = vector.broadcast %480 : vector<1x512xf32> to vector<4x512xf32>
    %483 = arith.mulf %481, %482 : vector<4x512xf32>
    %484 = arith.addf %457, %483 : vector<4x512xf32>
    %485 = arith.addf %466, %472 : vector<4x512xf32>
    %486 = arith.addf %478, %484 : vector<4x512xf32>
    %487 = arith.addf %485, %486 : vector<4x512xf32>
    %c0_40 = arith.constant 0 : index
    %c0_41 = arith.constant 0 : index
    %488 = vector.load %arg5[%c0_40, %c0_41] : memref<4x1xf32, #tpu.memory_space<vmem>>, vector<4x1xf32>
    %489 = vector.shape_cast %488 : vector<4x1xf32> to vector<4x1xf32>
    %490 = vector.broadcast %489 : vector<4x1xf32> to vector<4x512xf32>
    %491 = arith.addf %487, %490 : vector<4x512xf32>
    %cst_42 = arith.constant 1.000000e-01 : f32
    %492 = vector.broadcast %cst_42 : f32 to vector<4x512xf32>
    %493 = arith.mulf %492, %491 : vector<4x512xf32>
    %494 = arith.addf %0, %493 : vector<4x512xf32>
    %c0_43 = arith.constant 0 : index
    %c0_44 = arith.constant 0 : index
    %495 = vector.load %arg7[%c0_43, %c0_44] : memref<4x512xf32, #tpu.memory_space<vmem>>, vector<4x512xf32>
    tpu.vector_store %arg7[%c0_43, %c0_44], %494 {strides = array<i32>} : memref<4x512xf32, #tpu.memory_space<vmem>>, vector<4x512xf32>,
    return
  }
  func.func @transform_0(%arg0: i32) -> (i32, i32) {
    %c0_i32 = arith.constant 0 : i32
    %c0_i32_0 = arith.constant 0 : i32
    return %c0_i32, %arg0 : i32, i32
  }
  func.func @transform_1(%arg0: i32) -> (i32, i32) {
    %c0_i32 = arith.constant 0 : i32
    %c0_i32_0 = arith.constant 0 : i32
    %c0_i32_1 = arith.constant 0 : i32
    return %c0_i32, %c0_i32_0 : i32, i32
  }
  func.func @transform_2(%arg0: i32) -> (i32, i32) {
    %c0_i32 = arith.constant 0 : i32
    %c0_i32_0 = arith.constant 0 : i32
    %c0_i32_1 = arith.constant 0 : i32
    return %c0_i32, %c0_i32_0 : i32, i32
  }
  func.func @transform_3(%arg0: i32) -> (i32, i32) {
    %c0_i32 = arith.constant 0 : i32
    %c0_i32_0 = arith.constant 0 : i32
    %c0_i32_1 = arith.constant 0 : i32
    return %c0_i32, %c0_i32_0 : i32, i32
  }
  func.func @transform_4(%arg0: i32) -> (i32, i32) {
    %c0_i32 = arith.constant 0 : i32
    %c0_i32_0 = arith.constant 0 : i32
    %c0_i32_1 = arith.constant 0 : i32
    return %c0_i32, %c0_i32_0 : i32, i32
  }
  func.func @transform_5(%arg0: i32) -> (i32, i32) {
    %c0_i32 = arith.constant 0 : i32
    %c0_i32_0 = arith.constant 0 : i32
    %c0_i32_1 = arith.constant 0 : i32
    return %c0_i32, %c0_i32_0 : i32, i32
  }
  func.func @transform_6(%arg0: i32) -> (i32, i32) {
    %c0_i32 = arith.constant 0 : i32
    %c0_i32_0 = arith.constant 0 : i32
    return %c0_i32, %arg0 : i32, i32
  }
}

</mosaic_0001>

<bundles_post_ra>
// kernel: mapping_res_block.1
= control target key start
LH: loop header
LB: loop body
LE: loop exit
PB: predicated region body
PF: predicated region fallthrough
CT: control target
= control target key end

     0   :  { %v2655_v2 = vmov 1   ;;  %v4649_v3 = vmov 0   ;;  %s2657_s25 = smov 17   ;;  %v4668_v7 = vmov 2   ;;  %v4666_v8 = vmov 3   ;;  %s2660_s28 = smov 16   ;;  %s4624_s0 = inlined_call_operand.vmem [shape: f32[4,512], index: 0, kind: input, shape index: {}]   ;;  %s4625_s1 = inlined_call_operand.vmem [shape: f32[4,36], index: 1, kind: input, shape index: {}]   ;;  %s4626_s5 = inlined_call_operand.vmem [shape: f32[36,512], index: 5, kind: input, shape index: {}]   ;;  %s4627_s2 = inlined_call_operand.vmem [shape: f32[4,1], index: 2, kind: input, shape index: {}]   ;;  %s4628_s3 = inlined_call_operand.vmem [shape: f32[4,36], index: 3, kind: input, shape index: {}]   ;;  %s4629_s4 = inlined_call_operand.vmem [shape: f32[4,1], index: 4, kind: input, shape index: {}]   ;;  %s4630_s6 = inlined_call_operand.vmem [shape: f32[4,512], index: 6, kind: output, shape index: {}]  }
   0x1   :  { %v2737_v0 = vld [vmem:[%s4624_s0 + $0x8] sm:$0xff]  ;;  %v2742_v1 = vld [vmem:[%s4624_s0] sm:$0xff]  ;;  %2562 = vset.pattern.permute.xlu1 %v2655_v2  ;;  %2561 = vset.pattern.permute.xlu0 %v4649_v3  ;;  %v4667_v9 = vmov 4   ;;  %v4665_v10 = vmov 5   ;;  %v4664_v11 = vmov 7   ;;  %v4663_v12 = vmov 8  }
   0x2   :  { %36 = vrot.lane.b32.xlu1 %v2737_v0, %s2657_s25  ;;  %32 = vrot.lane.b32.xlu0 %v2742_v1, %s2657_s25  ;;  %v2752_v4 = vcombine.high %v2737_v0, %v2737_v0  ;;  %v2756_v5 = vcombine.high %v2742_v1, %v2742_v1  ;;  %v2765_v6 = vld [vmem:[%s4625_s1] sm:$0xf]  ;;  %s2664_s1 = smov 15   ;;  %v4662_v13 = vmov 6   ;;  %v4661_v14 = vmov 11   ;;  %s2669_s29 = smov 1  }
   0x3   :  { %v4660_v15 = vmov 9   ;;  %v4659_v16 = vmov 12   ;;  %v4658_v17 = vmov 15   ;;  %v4656_v18 = vmov 10   ;;  %s2675_s30 = smov 127   ;;  %s2677_s7 = smov 113  }
   0x4   :  { %v4657_v19 = vmov 18   ;;  %v4654_v20 = vmov 13   ;;  %v4655_v21 = vmov 21   ;;  %v4653_v22 = vmov 24   ;;  %s2684_s8 = smov 112   ;;  %s2688_s9 = smov 111  }
   0x5   :  { %v4652_v23 = vmov 14   ;;  %v4651_v24 = vmov 16   ;;  %v4646_v25 = vmov 17   ;;  %v4647_v26 = vmov 27   ;;  %v2909_v53 = vld [vmem:[%s4626_s5 + $0x10] sm:$0xf0] }
   0x6   :  { %38 = vrot.lane.b32.xlu1 %v2752_v4, %s2657_s25  ;;  %34 = vrot.lane.b32.xlu0 %v2756_v5, %s2657_s25  ;;  %v4644_v27 = vmov 19   ;;  %v4645_v28 = vmov 28   ;;  %v4642_v29 = vmov 20   ;;  %v4643_v30 = vmov 31   ;;  %4702 = vst [vmem:[#allocation2_spill] sm:$0xff] %v2909_v53 }
   0x7   :  { %v4640_v31 = vmov 32   ;;  %v4639_v32 = vmov 22   ;;  %v4638_v33 = vmov 35   ;;  %v4637_v34 = vmov 23   ;;  %v2935_v62 = vld [vmem:[%s4626_s5 + $0x18] sm:$0xf0] }
   0x8   :  { %v4636_v35 = vmov 25   ;;  %v4635_v39 = vmov 26   ;;  %v4634_v42 = vmov 29   ;;  %v40_v48 = vlaneseq  ;;  %4703 = vst [vmem:[#allocation3_spill] sm:$0xff] %v2935_v62  ;;  %v49_v63 = vld [vmem:[%s4626_s5 + $0x10] sm:$0xf] }
   0x9   :  { %v4632_v51 = vmov 30   ;;  %v4633_v56 = vrot.slane %v2909_v53, 4  ;;  %v4631_v58 = vmov 33  }
   0xa   :  { %81 = vperm.xlu1 %2562, %v2765_v6   ;;  %57 = vperm.xlu0 %2561, %v2765_v6   ;;  %v2903_v52 = vand.u32 127, %v40_v48  ;;  %v2924_v59 = vshrl.u32 %v40_v48, 7 }
   0xc   :  { %vm160_vm0 = vcmp.lt.s32.totalorder %v2903_v52, 16  ;;  %vm42_vm1 = vcmp.lt.s32.totalorder %v2903_v52, 17  ;;  %vm305_vm2 = vcmp.lt.s32.totalorder %v2903_v52, 15  ;;  %vm438_vm3 = vcmp.lt.s32.totalorder %v2903_v52, 1 }
   0xd   :  { %vm775_vm4 = vcmp.lt.s32.totalorder %v2903_v52, 127  ;;  %vm920_vm5 = vcmp.lt.s32.totalorder %v2903_v52, 113  ;;  %vm1053_vm6 = vcmp.lt.s32.totalorder %v2903_v52, 112  ;;  %vm1198_vm7 = vcmp.lt.s32.totalorder %v2903_v52, 111 }
   0xe   :  { %2563 = vset.pattern.permute.xlu1 %v4668_v7  ;;  %2564 = vset.pattern.permute.xlu0 %v4666_v8 }
   0xf   :  { %105 = vperm.xlu1 %2563, %v2765_v6   ;;  %129 = vperm.xlu0 %2564, %v2765_v6  }
  0x13   :  { %152 = vrot.lane.b32.xlu1 %v2742_v1, %s2660_s28  ;;  %156 = vrot.lane.b32.xlu0 %v2737_v0, %s2660_s28 }
  0x14   :  { %2565 = vset.pattern.permute.xlu0 %v4667_v9  ;;  %2566 = vset.pattern.permute.xlu1 %v4665_v10 }
  0x17   :  { %154 = vrot.lane.b32.xlu1 %v2756_v5, %s2660_s28  ;;  %186 = vperm.xlu0 %2565, %v2765_v6  }
  0x1b   :  { %158 = vrot.lane.b32.xlu1 %v2752_v4, %s2660_s28  ;;  %2568 = vset.pattern.permute.xlu0 %v4664_v11  ;;  %v729_v11 = vsub.s32 7, %v2924_v59 }
  0x1c   :  { %270 = vperm.xlu0 %2568, %v2765_v6  }
  0x1f   :  { %214 = vperm.xlu1 %2566, %v2765_v6  }
  0x20   :  { %301 = vrot.lane.b32.xlu0 %v2737_v0, %s2664_s1 }
  0x21   :  { %2569 = vset.pattern.permute.xlu0 %v4663_v12 }
  0x23   :  { %2567 = vset.pattern.permute.xlu1 %v4662_v13  ;;  %v633_v13 = vsub.s32 5, %v2924_v59 }
  0x24   :  { %242 = vperm.xlu1 %2567, %v2765_v6   ;;  %319 = vperm.xlu0 %2569, %v2765_v6  }
  0x28   :  { %297 = vrot.lane.b32.xlu1 %v2742_v1, %s2664_s1  ;;  %2572 = vset.pattern.permute.xlu0 %v4661_v14 }
  0x29   :  { %403 = vperm.xlu0 %2572, %v2765_v6   ;;  %2570 = vset.pattern.permute.xlu1 %v4660_v15 }
  0x2c   :  { %299 = vrot.lane.b32.xlu1 %v2756_v5, %s2664_s1 }
  0x2d   :  { %434 = vrot.lane.b32.xlu0 %v2737_v0, %s2669_s29 }
  0x2e   :  { %2573 = vset.pattern.permute.xlu0 %v4659_v16  ;;  %v3123_v16 = vrot.slane %v2742_v1, %v633_v13 }
  0x30   :  { %303 = vrot.lane.b32.xlu1 %v2752_v4, %s2664_s1  ;;  %4716 = vst [vmem:[#allocation16_spill] sm:$0xff] %v3123_v16 }
  0x31   :  { %464 = vperm.xlu0 %2573, %v2765_v6  }
  0x34   :  { %347 = vperm.xlu1 %2570, %v2765_v6  }
  0x35   :  { %2576 = vset.pattern.permute.xlu0 %v4658_v17  ;;  %v3126_v17 = vrot.slane %v2737_v0, %v633_v13 }
  0x36   :  { %548 = vperm.xlu0 %2576, %v2765_v6  }
  0x37   :  { %4717 = vst [vmem:[#allocation17_spill] sm:$0xff] %v3126_v17 }
  0x38   :  { %2571 = vset.pattern.permute.xlu1 %v4656_v18  ;;  %v3134_v18 = vrot.slane %v2742_v1, %v729_v11 }
  0x39   :  { %375 = vperm.xlu1 %2571, %v2765_v6  }
  0x3a   :  { %2579 = vset.pattern.permute.xlu0 %v4657_v19  ;;  %4719 = vst [vmem:[#allocation19_spill] sm:$0xff] %v3134_v18 }
  0x3b   :  { %672 = vperm.xlu0 %2579, %v2765_v6  }
  0x3d   :  { %430 = vrot.lane.b32.xlu1 %v2742_v1, %s2669_s29 }
  0x3e   :  { %2574 = vset.pattern.permute.xlu1 %v4654_v20 }
  0x3f   :  { %769 = vrot.lane.b32.xlu0 %v2756_v5, %s2675_s30 }
  0x40   :  { %2582 = vset.pattern.permute.xlu0 %v4655_v21  ;;  %v3070_v21 = vsub.s32 3, %v2924_v59 }
  0x41   :  { %432 = vrot.lane.b32.xlu1 %v2756_v5, %s2669_s29 }
  0x43   :  { %773 = vrot.lane.b32.xlu0 %v2752_v4, %s2675_s30 }
  0x45   :  { %436 = vrot.lane.b32.xlu1 %v2752_v4, %s2669_s29 }
  0x47   :  { %829 = vperm.xlu0 %2582, %v2765_v6  }
  0x49   :  { %492 = vperm.xlu1 %2574, %v2765_v6  }
  0x4b   :  { %912 = vrot.lane.b32.xlu0 %v2742_v1, %s2677_s7 }
  0x4c   :  { %2585 = vset.pattern.permute.xlu0 %v4653_v22  ;;  %v585_v22 = vsub.s32 4, %v2924_v59 }
  0x4d   :  { %2575 = vset.pattern.permute.xlu1 %v4652_v23 }
  0x4e   :  { %520 = vperm.xlu1 %2575, %v2765_v6   ;;  %v3097_v9 = vrot.slane %v2742_v1, %v585_v22  ;;  %v3102_v7 = vrot.slane %v2737_v0, %v585_v22  ;;  %v48_v22 = vld [vmem:[%s4626_s5 + $0x8] sm:$0xf] }
  0x4f   :  { %916 = vrot.lane.b32.xlu0 %v2737_v0, %s2677_s7 }
  0x50   :  { %4714 = vst [vmem:[#allocation14_spill] sm:$0xff] %v3097_v9  ;;  %4715 = vst [vmem:[#allocation15_spill] sm:$0xff] %v3102_v7 }
  0x52   :  { %2577 = vset.pattern.permute.xlu1 %v4651_v24  ;;  %v3061_v24 = vld [vmem:[%s4626_s5 + $0x38] sm:$0xf0] }
  0x53   :  { %576 = vperm.xlu1 %2577, %v2765_v6   ;;  %934 = vperm.xlu0 %2585, %v2765_v6   ;;  %4709 = vst [vmem:[#allocation9_spill] sm:$0xff] %v3061_v24 }
  0x57   :  { %2578 = vset.pattern.permute.xlu1 %v4646_v25  ;;  %2588 = vset.pattern.permute.xlu0 %v4647_v26  ;;  %v4648_v25 = vmov 34  }
  0x58   :  { %624 = vperm.xlu1 %2578, %v2765_v6   ;;  %1018 = vperm.xlu0 %2588, %v2765_v6  }
  0x5c   :  { %2580 = vset.pattern.permute.xlu1 %v4644_v27  ;;  %1049 = vrot.lane.b32.xlu0 %v2737_v0, %s2684_s8 }
  0x5d   :  { %720 = vperm.xlu1 %2580, %v2765_v6   ;;  %2589 = vset.pattern.permute.xlu0 %v4645_v28 }
  0x60   :  { %1079 = vperm.xlu0 %2589, %v2765_v6  }
  0x61   :  { %767 = vrot.lane.b32.xlu1 %v2742_v1, %s2675_s30 }
  0x62   :  { %2581 = vset.pattern.permute.xlu1 %v4642_v29 }
  0x64   :  { %2592 = vset.pattern.permute.xlu0 %v4643_v30 }
  0x65   :  { %771 = vrot.lane.b32.xlu1 %v2737_v0, %s2675_s30  ;;  %1163 = vperm.xlu0 %2592, %v2765_v6  }
  0x69   :  { %801 = vperm.xlu1 %2581, %v2765_v6   ;;  %1194 = vrot.lane.b32.xlu0 %v2737_v0, %s2688_s9 }
  0x6a   :  { %2593 = vset.pattern.permute.xlu0 %v4640_v31 }
  0x6d   :  { %2583 = vset.pattern.permute.xlu1 %v4639_v32  ;;  %1212 = vperm.xlu0 %2593, %v2765_v6  }
  0x6e   :  { %857 = vperm.xlu1 %2583, %v2765_v6  }
  0x71   :  { %2596 = vset.pattern.permute.xlu0 %v4638_v33 }
  0x72   :  { %2584 = vset.pattern.permute.xlu1 %v4637_v34  ;;  %1296 = vperm.xlu0 %2596, %v2765_v6  }
  0x73   :  { %885 = vperm.xlu1 %2584, %v2765_v6  }
  0x74   :  { %v37_v36 = vpop.permute.xlu1 %36  ;;  %v2872_v37 = vpop.permute.xlu0 %32 }
  0x76   :  { %2598 = vset.pattern.permute.xlu0 %v2655_v2 }
  0x77   :  { %914 = vrot.lane.b32.xlu1 %v2756_v5, %s2677_s7 }
  0x78   :  { %2586 = vset.pattern.permute.xlu1 %v4636_v35  ;;  %v2874_v38 = vpop.permute.xlu1 %38  ;;  %v2880_v41 = vpop.permute.xlu0 %34  ;;  %v312_v35 = vld [vmem:[%s4626_s5 + $0x30] sm:$0xf] }
  0x79   :  { %v44_v2 = vsel %vm42_vm1, %v2880_v41, %v37_v36  ;;  %v46_v12 = vsel %vm42_vm1, %v2874_v38, %v2872_v37  ;;  %v45_v15 = vsel %vm42_vm1, %v2872_v37, %v2880_v41  ;;  %v3158_v37 = vld [vmem:[%s4626_s5 + $0x40] sm:$0xf0] }
  0x7a   :  { %4723 = vst [vmem:[#allocation23_spill] sm:$0xff] %v3158_v37 }
  0x7b   :  { %918 = vrot.lane.b32.xlu1 %v2752_v4, %s2677_s7 }
  0x7f   :  { %962 = vperm.xlu1 %2586, %v2765_v6  }
  0x83   :  { %2587 = vset.pattern.permute.xlu1 %v4635_v39 }
  0x84   :  { %990 = vperm.xlu1 %2587, %v2765_v6  }
  0x85   :  { %v2878_v40 = vpop.permute.xlu1 %81  ;;  %v2885_v43 = vpop.permute.xlu0 %57 }
  0x88   :  { %1045 = vrot.lane.b32.xlu1 %v2742_v1, %s2684_s8 }
  0x89   :  { %2590 = vset.pattern.permute.xlu1 %v4634_v42 }
  0x8a   :  { %v2887_v44 = vpop.permute.xlu1 %105  ;;  %v2893_v46 = vpop.permute.xlu0 %129 }
  0x8c   :  { %1047 = vrot.lane.b32.xlu1 %v2756_v5, %s2684_s8 }
  0x8e   :  { %v2891_v45 = vpop.permute.xlu1 %152  ;;  %v157_v49 = vpop.permute.xlu0 %156 }
  0x90   :  { %1051 = vrot.lane.b32.xlu1 %v2752_v4, %s2684_s8 }
  0x92   :  { %v2897_v47 = vpop.permute.xlu1 %154  ;;  %v2914_v55 = vpop.permute.xlu0 %186 }
  0x93   :  { %v162_v57 = vsel %vm160_vm0, %v2897_v47, %v157_v49 }
  0x94   :  { %1107 = vperm.xlu1 %2590, %v2765_v6   ;;  %v2930_v61 = vmul.f32 %v4633_v56, %v162_v57  ;;  %v2948_v57 = vsub.s32 0, %v2924_v59  ;;  %v2953_v56 = vmul.f32 %v49_v63, %v44_v2  ;;  %v43_v2 = vsel %vm42_vm1, %v37_v36, %v2874_v38 }
  0x95   :  { %v726_v38 = vrot.slane %v2742_v1, %v3070_v21 }
  0x96   :  { %v2900_v50 = vpop.permute.xlu1 %158  ;;  %v71_v33 = vrot.slane %v2953_v56, %v2948_v57  ;;  %v143_v16 = vrot.slane %v2953_v56, %v3070_v21 }
  0x97   :  { %v2945_v48 = vpop.permute.xlu0 %270  ;;  %v161_v42 = vsel %vm160_vm0, %v157_v49, %v2900_v50 }
  0x98   :  { %2591 = vset.pattern.permute.xlu1 %v4632_v51  ;;  %v4641_v51 = vrot.slane %v2935_v62, 4  ;;  %v734_v62 = vrot.slane %v2737_v0, %v3070_v21 }
  0x99   :  { %1135 = vperm.xlu1 %2591, %v2765_v6  }
  0x9a   :  { %v2911_v54 = vpop.permute.xlu1 %214  ;;  %v2970_v63 = vmul.f32 %v4641_v51, %v161_v42  ;;  %v313_v42 = vld [vmem:[%s4626_s5 + $0x38] sm:$0xf]  ;;  %v78_v51 = vmul.f32 %v71_v33, %v2885_v43 }
  0x9b   :  { %v302_v39 = vpop.permute.xlu0 %301 }
  0x9d   :  { %1190 = vrot.lane.b32.xlu1 %v2742_v1, %s2688_s9 }
  0x9e   :  { %2594 = vset.pattern.permute.xlu1 %v4631_v58 }
  0x9f   :  { %v2926_v60 = vpop.permute.xlu1 %242 }
  0xa1   :  { %1192 = vrot.lane.b32.xlu1 %v2756_v5, %s2688_s9  ;;  %v200_v5 = vrot.slane %v2930_v61, %v2948_v57 }
  0xa3   :  { %v2950_v58 = vpop.permute.xlu1 %297  ;;  %v207_v32 = vmul.f32 %v200_v5, %v2914_v55  ;;  %v204_v5 = vrot.slane %v2970_v63, %v2948_v57 }
  0xa5   :  { %1196 = vrot.lane.b32.xlu1 %v2752_v4, %s2688_s9  ;;  %v50_v4 = vld [vmem:[%s4626_s5 + $0x18] sm:$0xf]  ;;  %v211_v27 = vadd.f32 %v207_v32, %v78_v51  ;;  %v208_v32 = vmul.f32 %v204_v5, %v2914_v55  ;;  %v681_v51 = vsub.s32 6, %v2924_v59 }
  0xa6   :  { %v2995_v36 = vmul.f32 %v50_v4, %v43_v2 }
  0xa7   :  { %v2966_v34 = vpop.permute.xlu1 %299  ;;  %v3066_v23 = vrot.slane %v2742_v1, %v681_v51 }
  0xa8   :  { %v307_v49 = vsel %vm305_vm2, %v2966_v34, %v302_v39 }
  0xa9   :  { %v2984_v31 = vmul.f32 %v312_v35, %v307_v49  ;;  %1240 = vperm.xlu1 %2594, %v2765_v6   ;;  %v2999_v35 = vpop.permute.xlu0 %319  ;;  %4710 = vst [vmem:[#allocation10_spill] sm:$0xff] %v3066_v23 }
  0xab   :  { %v333_v29 = vrot.slane %v2984_v31, %v2948_v57  ;;  %v2993_v30 = vpop.permute.xlu1 %303 }
  0xac   :  { %v306_v49 = vsel %vm305_vm2, %v302_v39, %v2993_v30  ;;  %v75_v39 = vrot.slane %v2995_v36, %v2948_v57 }
  0xad   :  { %v340_v28 = vmul.f32 %v333_v29, %v2999_v35  ;;  %v3005_v33 = vmul.f32 %v313_v42, %v306_v49  ;;  %2595 = vset.pattern.permute.xlu1 %v4648_v25  ;;  %v1335_v29 = vld [vmem:[%s4627_s2] sm:$0xf]  ;;  %v3034_v42 = vld [vmem:[%s4626_s5] sm:$0xf0]  ;;  %v3041_v49 = vld [vmem:[%s4626_s5 + $0x28] sm:$0xf0] }
  0xae   :  { %1268 = vperm.xlu1 %2595, %v2765_v6   ;;  %v3023_v6 = vsub.s32 2, %v2924_v59  ;;  %4706 = vst [vmem:[#allocation6_spill] sm:$0xff] %v3034_v42  ;;  %v3049_v25 = vld [vmem:[%s4626_s5 + $0x30] sm:$0xf0] }
  0xaf   :  { %v3009_v4 = vadd.f32 %v340_v28, %v211_v27  ;;  %v337_v2 = vrot.slane %v3005_v33, %v2948_v57  ;;  %v3013_v26 = vpop.permute.xlu1 %347  ;;  %v79_v27 = vmul.f32 %v75_v39, %v2885_v43  ;;  %v3029_v28 = vld [vmem:[%s4626_s5 + $0x8] sm:$0xf0]  ;;  %v3044_v39 = vsub.s32 1, %v2924_v59  ;;  %4707 = vst [vmem:[#allocation7_spill] sm:$0xff] %v3049_v25 }
  0xb0   :  { %4705 = vst [vmem:[#allocation5_spill] sm:$0xff] %v3029_v28  ;;  %v4731_v17 = vrot.slane %v3029_v28, 4  ;;  %v123_v18 = vrot.slane %v2995_v36, %v3023_v6 }
  0xb1   :  { %4704 = vst [vmem:[#allocation4_spill] sm:$0xff] %v3009_v4  ;;  %v341_v5 = vmul.f32 %v337_v2, %v2999_v35  ;;  %v3054_v2 = vld [vmem:[%s4626_s5 + $0x20] sm:$0xf0]  ;;  %v212_v20 = vadd.f32 %v208_v32, %v79_v27  ;;  %v686_v32 = vrot.slane %v2737_v0, %v3023_v6  ;;  %v3084_v27 = vrot.slane %v2737_v0, %v681_v51 }
  0xb2   :  { %2597 = vset.pattern.permute.xlu1 %v4649_v3  ;;  %4708 = vst [vmem:[#allocation8_spill] sm:$0xff] %v3054_v2  ;;  %v590_v51 = vrot.slane %v2737_v0, %v2948_v57  ;;  %v630_v59 = vrot.slane %v2742_v1, %v3044_v39  ;;  %v228_v9 = vrot.slane %v2930_v61, %v3044_v39 }
  0xb3   :  { %1338 = vperm.xlu1 %2597, %v1335_v29   ;;  %v678_v29 = vrot.slane %v2742_v1, %v3023_v6  ;;  %v3077_v14 = vadd.f32 %v341_v5, %v212_v20  ;;  %4712 = vst [vmem:[#allocation12_spill] sm:$0xff] %v3084_v27  ;;  %v582_v5 = vrot.slane %v2742_v1, %v2948_v57  ;;  %v47_v20 = vld [vmem:[%s4626_s5] sm:$0xf] }
  0xb4   :  { %v3056_v3 = vpop.permute.xlu1 %375  ;;  %v3129_v19 = vrot.slane %v686_v32, %v3023_v6  ;;  %v3148_v32 = vrot.slane %v2737_v0, %v729_v11  ;;  %v52_v1 = vmul.f32 %v48_v22, %v45_v15  ;;  %v3151_v4 = vrot.slane %v590_v51, %v2948_v57  ;;  %v3183_v51 = vld [vmem:[%s4626_s5 + $0x50] sm:$0xf0] }
  0xb5   :  { %4711 = vst [vmem:[#allocation11_spill] sm:$0xff] %v3077_v14  ;;  %v3090_v8 = vrot.slane %v678_v29, %v3023_v6  ;;  %v638_v29 = vrot.slane %v2737_v0, %v3044_v39  ;;  %v3143_v13 = vrot.slane %v582_v5, %v2948_v57  ;;  %v51_v14 = vmul.f32 %v47_v20, %v46_v12  ;;  %v3163_v5 = vld [vmem:[%s4626_s5 + $0x58] sm:$0xf0]  ;;  %v3168_v0 = vld [vmem:[%s4626_s5 + $0x48] sm:$0xf0] }
  0xb6   :  { %4718 = vst [vmem:[#allocation18_spill] sm:$0xff] %v3129_v19  ;;  %4721 = vst [vmem:[#allocation21_spill] sm:$0xff] %v3148_v32  ;;  %v3171_v11 = vrot.slane %v630_v59, %v3044_v39  ;;  %v163_v59 = vsel %vm160_vm0, %v2891_v45, %v2897_v47  ;;  %v3190_v22 = vrot.slane %v726_v38, %v3070_v21  ;;  %v3220_v47 = vld [vmem:[%s4626_s5 + $0x60] sm:$0xf0] }
  0xb7   :  { %4713 = vst [vmem:[#allocation13_spill] sm:$0xff] %v3090_v8  ;;  %4720 = vst [vmem:[#allocation20_spill] sm:$0xff] %v3143_v13  ;;  %v3176_v15 = vrot.slane %v638_v29, %v3044_v39  ;;  %v3195_v12 = vrot.slane %v734_v62, %v3070_v21  ;;  %v99_v38 = vrot.slane %v2995_v36, %v3044_v39  ;;  %v3225_v62 = vld [vmem:[%s4626_s5 + $0x68] sm:$0xf0] }
  0xb8   :  { %v3087_v10 = vpop.permute.xlu1 %430  ;;  %4722 = vst [vmem:[#allocation22_spill] sm:$0xff] %v3151_v4  ;;  %4724 = vst [vmem:[#allocation24_spill] sm:$0xff] %v3163_v5  ;;  %v91_v29 = vrot.slane %v52_v1, %v3044_v39  ;;  %v63_v19 = vrot.slane %v51_v14, %v2948_v57  ;;  %v67_v41 = vrot.slane %v52_v1, %v2948_v57 }
  0xb9   :  { %4725 = vst [vmem:[#allocation25_spill] sm:$0xff] %v3168_v0  ;;  %4726 = vst [vmem:[#allocation26_spill] sm:$0xff] %v3171_v11  ;;  %v3215_v32 = vmul.f32 %v4731_v17, %v163_v59  ;;  %v115_v0 = vrot.slane %v52_v1, %v3023_v6  ;;  %v164_v17 = vsel %vm160_vm0, %v2900_v50, %v2891_v45 }
  0xba   :  { %4727 = vst [vmem:[#allocation27_spill] sm:$0xff] %v3176_v15  ;;  %4728 = vst [vmem:[#allocation28_spill] sm:$0xff] %v3183_v51  ;;  %v111_v51 = vrot.slane %v51_v14, %v3023_v6  ;;  %v119_v59 = vrot.slane %v2953_v56, %v3023_v6  ;;  %v135_v28 = vrot.slane %v51_v14, %v3070_v21 }
  0xbb   :  { %4729 = vst [vmem:[#allocation29_spill] sm:$0xff] %v3190_v22  ;;  %4730 = vst [vmem:[#allocation30_spill] sm:$0xff] %v3195_v12  ;;  %v87_v22 = vrot.slane %v51_v14, %v3044_v39  ;;  %v95_v12 = vrot.slane %v2953_v56, %v3044_v39  ;;  %v139_v15 = vrot.slane %v52_v1, %v3070_v21  ;;  %v4735_v1 = vrot.slane %v3034_v42, 4 }
  0xbc   :  { %v3138_v53 = vpop.permute.xlu1 %432  ;;  %4732 = vst [vmem:[#allocation31_spill] sm:$0xff] %v3220_v47  ;;  %4733 = vst [vmem:[#allocation32_spill] sm:$0xff] %v3225_v62  ;;  %v147_v4 = vrot.slane %v2995_v36, %v3070_v21  ;;  %v101_v5 = vmul.f32 %v91_v29, %v2878_v40  ;;  %v196_v56 = vrot.slane %v3215_v32, %v2948_v57 }
  0xbd   :  { %v3244_v7 = vmul.f32 %v87_v22, %v2878_v40  ;;  %v3252_v14 = vmul.f32 %v95_v12, %v2878_v40  ;;  %v181_v37 = vmul.f32 %v4735_v1, %v164_v17  ;;  %v3259_v22 = vmul.f32 %v99_v38, %v2878_v40  ;;  %v3270_v12 = vld [vmem:[%s4626_s5 + $0x70] sm:$0xf0] }
  0xbe   :  { %v3262_v36 = vmul.f32 %v63_v19, %v2885_v43  ;;  %v77_v45 = vmul.f32 %v67_v41, %v2885_v43  ;;  %v280_v29 = vrot.slane %v3215_v32, %v3070_v21  ;;  %4736 = vst [vmem:[#allocation34_spill] sm:$0xff] %v3270_v12  ;;  %v124_v50 = vmul.f32 %v111_v51, %v2887_v44  ;;  %v3283_v43 = vld [vmem:[%s4626_s5 + $0x78] sm:$0xf0]  ;;  %v3290_v51 = vpop.permute.xlu0 %403 }
  0xbf   :  { %v125_v17 = vmul.f32 %v115_v0, %v2887_v44  ;;  %v3275_v40 = vmul.f32 %v119_v59, %v2887_v44  ;;  %v3278_v19 = vmul.f32 %v123_v18, %v2887_v44  ;;  %4737 = vst [vmem:[#allocation35_spill] sm:$0xff] %v3283_v43  ;;  %v148_v41 = vmul.f32 %v135_v28, %v2893_v46 }
  0xc0   :  { %v3197_v20 = vpop.permute.xlu1 %436  ;;  %v149_v38 = vmul.f32 %v139_v15, %v2893_v46  ;;  %v150_v1 = vmul.f32 %v143_v16, %v2893_v46  ;;  %v284_v0 = vrot.slane %v2930_v61, %v3070_v21  ;;  %v151_v18 = vmul.f32 %v147_v4, %v2893_v46  ;;  %v311_v15 = vld [vmem:[%s4626_s5 + $0x28] sm:$0xf] }
  0xc1   :  { %v206_v44 = vmul.f32 %v196_v56, %v2914_v55  ;;  %v276_v42 = vrot.slane %v181_v37, %v3070_v21  ;;  %v288_v28 = vrot.slane %v2970_v63, %v3070_v21  ;;  %v290_v16 = vmul.f32 %v280_v29, %v2945_v48 }
  0xc2   :  { %v308_v46 = vsel %vm305_vm2, %v2950_v58, %v2966_v34  ;;  %v192_v56 = vrot.slane %v181_v37, %v2948_v57  ;;  %v220_v62 = vrot.slane %v181_v37, %v3044_v39  ;;  %v224_v12 = vrot.slane %v3215_v32, %v3044_v39  ;;  %v3322_v43 = vpop.permute.xlu0 %434 }
  0xc3   :  { %v232_v29 = vrot.slane %v2970_v63, %v3044_v39  ;;  %v291_v47 = vmul.f32 %v284_v0, %v2945_v48  ;;  %v252_v34 = vrot.slane %v3215_v32, %v3023_v6  ;;  %v256_v4 = vrot.slane %v2930_v61, %v3023_v6  ;;  %v310_v0 = vld [vmem:[%s4626_s5 + $0x20] sm:$0xf] }
  0xc4   :  { %v3241_v11 = vpop.permute.xlu1 %492  ;;  %v210_v13 = vadd.f32 %v206_v44, %v77_v45  ;;  %v309_v27 = vsel %vm305_vm2, %v2993_v30, %v2950_v58  ;;  %v292_v61 = vmul.f32 %v288_v28, %v2945_v48  ;;  %v294_v45 = vadd.f32 %v290_v16, %v149_v38 }
  0xc5   :  { %4734 = vst [vmem:[#allocation33_spill] sm:$0xff] %v3241_v11  ;;  %v289_v11 = vmul.f32 %v276_v42, %v2945_v48  ;;  %v234_v42 = vmul.f32 %v224_v12, %v2911_v54  ;;  %v248_v44 = vrot.slane %v181_v37, %v3023_v6  ;;  %v235_v23 = vmul.f32 %v228_v9, %v2911_v54 }
  0xc6   :  { %v236_v8 = vmul.f32 %v232_v29, %v2911_v54  ;;  %v260_v30 = vrot.slane %v2970_v63, %v3023_v6  ;;  %v262_v48 = vmul.f32 %v252_v34, %v2926_v60  ;;  %v314_v38 = vmul.f32 %v310_v0, %v309_v27  ;;  %v3354_v63 = vpop.permute.xlu0 %464 }
  0xc7   :  { %v261_v58 = vmul.f32 %v248_v44, %v2926_v60  ;;  %v293_v28 = vadd.f32 %v289_v11, %v148_v41  ;;  %v295_v12 = vadd.f32 %v291_v47, %v150_v1  ;;  %v238_v9 = vadd.f32 %v234_v42, %v101_v5 }
  0xc8   :  { %v264_v16 = vmul.f32 %v260_v30, %v2926_v60  ;;  %v239_v11 = vadd.f32 %v235_v23, %v3252_v14  ;;  %v240_v47 = vadd.f32 %v236_v8, %v3259_v22  ;;  %v417_v41 = vrot.slane %v2984_v31, %v3070_v21 }
  0xc9   :  { %v3292_v59 = vpop.permute.xlu1 %520  ;;  %v265_v1 = vadd.f32 %v261_v58, %v124_v50  ;;  %v409_v5 = vrot.slane %v314_v38, %v3070_v21  ;;  %v325_v29 = vrot.slane %v314_v38, %v2948_v57  ;;  %v353_v50 = vrot.slane %v314_v38, %v3044_v39 }
  0xca   :  { %4738 = vst [vmem:[#allocation36_spill] sm:$0xff] %v3292_v59  ;;  %v3325_v59 = vmul.f32 %v311_v15, %v308_v46  ;;  %v205_v15 = vmul.f32 %v192_v56, %v2914_v55  ;;  %v233_v46 = vmul.f32 %v220_v62, %v2911_v54  ;;  %v296_v62 = vadd.f32 %v292_v61, %v151_v18 }
  0xcb   :  { %v263_v54 = vmul.f32 %v256_v4, %v2926_v60  ;;  %v266_v18 = vadd.f32 %v262_v48, %v125_v17  ;;  %v268_v14 = vadd.f32 %v264_v16, %v3278_v19  ;;  %v361_v17 = vrot.slane %v2984_v31, %v3044_v39 }
  0xcc   :  { %v329_v37 = vrot.slane %v3325_v59, %v2948_v57  ;;  %v413_v55 = vrot.slane %v3325_v59, %v3070_v21  ;;  %v237_v27 = vadd.f32 %v233_v46, %v3244_v7  ;;  %v209_v4 = vadd.f32 %v205_v15, %v3262_v36  ;;  %v3395_v15 = vpop.permute.xlu0 %548 }
  0xcd   :  { %v421_v7 = vrot.slane %v3005_v33, %v3070_v21  ;;  %v267_v8 = vadd.f32 %v263_v54, %v3275_v40  ;;  %v357_v22 = vrot.slane %v3325_v59, %v3044_v39  ;;  %v424_v36 = vmul.f32 %v417_v41, %v3290_v51 }
  0xce   :  { %v3335_v32 = vpop.permute.xlu1 %576  ;;  %v339_v60 = vmul.f32 %v329_v37, %v2999_v35  ;;  %v423_v23 = vmul.f32 %v413_v55, %v3290_v51  ;;  %v365_v34 = vrot.slane %v3005_v33, %v3044_v39  ;;  %v385_v0 = vrot.slane %v3325_v59, %v3023_v6 }
  0xcf   :  { %v422_v40 = vmul.f32 %v409_v5, %v3290_v51  ;;  %v389_v19 = vrot.slane %v2984_v31, %v3023_v6  ;;  %v440_v42 = vsel %vm438_vm3, %v3138_v53, %v3322_v43  ;;  %v441_v44 = vsel %vm438_vm3, %v3087_v10, %v3138_v53 }
  0xd0   :  { %v3397_v59 = vadd.f32 %v339_v60, %v210_v13  ;;  %v338_v46 = vmul.f32 %v325_v29, %v2999_v35  ;;  %v425_v30 = vmul.f32 %v421_v7, %v3290_v51  ;;  %v3401_v58 = vadd.f32 %v423_v23, %v294_v45 }
  0xd1   :  { %v366_v31 = vmul.f32 %v353_v50, %v3013_v26  ;;  %v367_v48 = vmul.f32 %v357_v22, %v3013_v26  ;;  %v368_v37 = vmul.f32 %v361_v17, %v3013_v26  ;;  %v381_v55 = vrot.slane %v314_v38, %v3023_v6 }
  0xd2   :  { %v369_v53 = vmul.f32 %v365_v34, %v3013_v26  ;;  %v393_v13 = vrot.slane %v3005_v33, %v3023_v6  ;;  %v4739_v54 = vrot.slane %v3041_v49, 4  ;;  %v4740_v51 = vrot.slane %v3049_v25, 4  ;;  %v673_v26 = vpop.permute.xlu0 %672 }
  0xd3   :  { %v3356_v56 = vpop.permute.xlu1 %624  ;;  %v3416_v41 = vadd.f32 %v422_v40, %v293_v28  ;;  %v3418_v5 = vadd.f32 %v424_v36, %v295_v12  ;;  %v394_v60 = vmul.f32 %v381_v55, %v3056_v3  ;;  %v395_v38 = vmul.f32 %v385_v0, %v3056_v3 }
  0xd4   :  { %v460_v35 = vmul.f32 %v4739_v54, %v441_v44  ;;  %v461_v45 = vmul.f32 %v4740_v51, %v440_v42  ;;  %v396_v29 = vmul.f32 %v389_v19, %v3056_v3  ;;  %v397_v33 = vmul.f32 %v393_v13, %v3056_v3  ;;  %v4743_v19 = vld [vmem:[#allocation13_spill] sm:$0xff]  ;;  %v4744_v44 = vld [vmem:[#allocation10_spill] sm:$0xff] }
  0xd5   :  { %v439_v7 = vsel %vm438_vm3, %v3322_v43, %v3197_v20  ;;  %v442_v28 = vsel %vm438_vm3, %v3197_v20, %v3087_v10  ;;  %v3432_v12 = vadd.f32 %v425_v30, %v296_v62  ;;  %v3434_v23 = vadd.f32 %v366_v31, %v237_v27 }
  0xd6   :  { %v371_v50 = vadd.f32 %v367_v48, %v238_v9  ;;  %v372_v22 = vadd.f32 %v368_v37, %v239_v11  ;;  %v3436_v36 = vadd.f32 %v369_v53, %v240_v47  ;;  %v474_v3 = vrot.slane %v460_v35, %v2948_v57  ;;  %v3448_v9 = vpop.permute.xlu0 %769  ;;  %v4747_v48 = vld [vmem:[#allocation12_spill] sm:$0xff] }
  0xd7   :  { %v478_v17 = vrot.slane %v461_v45, %v2948_v57  ;;  %v3440_v34 = vadd.f32 %v338_v46, %v209_v4  ;;  %v398_v0 = vadd.f32 %v394_v60, %v265_v1  ;;  %v399_v40 = vadd.f32 %v395_v38, %v266_v18  ;;  %v4746_v18 = vld [vmem:[#allocation18_spill] sm:$0xff] }
  0xd8   :  { %v3382_v61 = vpop.permute.xlu1 %720  ;;  %v4741_v10 = vrot.slane %v3054_v2, 4  ;;  %v4742_v62 = vrot.slane %v3061_v24, 4  ;;  %v400_v11 = vadd.f32 %v396_v29, %v267_v8  ;;  %v401_v47 = vadd.f32 %v397_v33, %v268_v14  ;;  %v4751_v2 = vld [vmem:[#allocation4_spill] sm:$0xff] }
  0xd9   :  { %v711_v42 = vmul.f32 %v4743_v19, %v673_v26  ;;  %v4745_v4 = vrot.slane %v4744_v44, %v3023_v6  ;;  %v558_v30 = vrot.slane %v460_v35, %v3070_v21  ;;  %v562_v1 = vrot.slane %v461_v45, %v3070_v21 }
  0xda   :  { %v459_v20 = vmul.f32 %v4741_v10, %v442_v28  ;;  %v462_v27 = vmul.f32 %v4742_v62, %v439_v7  ;;  %v713_v31 = vmul.f32 %v4746_v18, %v673_v26  ;;  %v4748_v37 = vrot.slane %v4747_v48, %v3023_v6  ;;  %v4749_v10 = vld [vmem:[#allocation36_spill] sm:$0xff]  ;;  %v774_v44 = vpop.permute.xlu0 %773  ;;  %v4750_v18 = vld [vmem:[#allocation33_spill] sm:$0xff] }
  0xdb   :  { %v712_v46 = vmul.f32 %v4745_v4, %v673_v26  ;;  %v484_v8 = vmul.f32 %v474_v3, %v3354_v63  ;;  %v485_v14 = vmul.f32 %v478_v17, %v3354_v63  ;;  %v502_v53 = vrot.slane %v460_v35, %v3044_v39 }
  0xdc   :  { %v3414_v16 = vpop.permute.xlu1 %767  ;;  %v714_v55 = vmul.f32 %v4748_v37, %v673_v26  ;;  %v506_v13 = vrot.slane %v461_v45, %v3044_v39  ;;  %v554_v51 = vrot.slane %v459_v20, %v3070_v21  ;;  %v566_v60 = vrot.slane %v462_v27, %v3070_v21 }
  0xdd   :  { %v526_v38 = vrot.slane %v459_v20, %v3023_v6  ;;  %v530_v26 = vrot.slane %v460_v35, %v3023_v6  ;;  %v470_v29 = vrot.slane %v459_v20, %v2948_v57  ;;  %v498_v33 = vrot.slane %v459_v20, %v3044_v39 }
  0xde   :  { %v510_v7 = vrot.slane %v462_v27, %v3044_v39  ;;  %v534_v28 = vrot.slane %v461_v45, %v3023_v6  ;;  %v482_v3 = vrot.slane %v462_v27, %v2948_v57  ;;  %v538_v17 = vrot.slane %v462_v27, %v3023_v6 }
  0xdf   :  { %v539_v62 = vmul.f32 %v526_v38, %v4749_v10  ;;  %v540_v19 = vmul.f32 %v530_v26, %v4749_v10  ;;  %v568_v4 = vmul.f32 %v558_v30, %v3395_v15  ;;  %v569_v35 = vmul.f32 %v562_v1, %v3395_v15 }
  0xe0   :  { %v3442_v43 = vpop.permute.xlu1 %771  ;;  %v512_v48 = vmul.f32 %v502_v53, %v4750_v18  ;;  %v541_v20 = vmul.f32 %v534_v28, %v4749_v10  ;;  %v567_v37 = vmul.f32 %v554_v51, %v3395_v15  ;;  %v570_v45 = vmul.f32 %v566_v60, %v3395_v15 }
  0xe1   :  { %v513_v24 = vmul.f32 %v506_v13, %v4750_v18  ;;  %v542_v27 = vmul.f32 %v538_v17, %v4749_v10  ;;  %v488_v26 = vadd.f32 %v484_v8, %v3397_v59  ;;  %v489_v30 = vadd.f32 %v485_v14, %v4751_v2 }
  0xe2   :  { %v511_v1 = vmul.f32 %v498_v33, %v4750_v18  ;;  %v514_v53 = vmul.f32 %v510_v7, %v4750_v18  ;;  %v543_v25 = vadd.f32 %v539_v62, %v398_v0  ;;  %v544_v28 = vadd.f32 %v540_v19, %v399_v40  ;;  %v830_v33 = vpop.permute.xlu0 %829  ;;  %v4763_v18 = vld [vmem:[#allocation26_spill] sm:$0xff] }
  0xe3   :  { %v483_v51 = vmul.f32 %v470_v29, %v3354_v63  ;;  %v486_v15 = vmul.f32 %v482_v3, %v3354_v63  ;;  %v572_v13 = vadd.f32 %v568_v4, %v3401_v58  ;;  %v573_v60 = vadd.f32 %v569_v35, %v3418_v5  ;;  %v4758_v3 = vld [vmem:[#allocation24_spill] sm:$0xff] }
  0xe4   :  { %v3465_v54 = vpop.permute.xlu1 %801  ;;  %v516_v17 = vadd.f32 %v512_v48, %v371_v50  ;;  %v545_v10 = vadd.f32 %v541_v20, %v400_v11  ;;  %v571_v59 = vadd.f32 %v567_v37, %v3416_v41  ;;  %v574_v2 = vadd.f32 %v570_v45, %v3432_v12  ;;  %v4764_v20 = vld [vmem:[#allocation16_spill] sm:$0xff] }
  0xe5   :  { %v517_v8 = vadd.f32 %v513_v24, %v372_v22  ;;  %v546_v14 = vadd.f32 %v542_v27, %v401_v47  ;;  %v515_v0 = vadd.f32 %v511_v1, %v3434_v23  ;;  %v518_v40 = vadd.f32 %v514_v53, %v3436_v36  ;;  %v4752_v23 = vld [vmem:[#allocation11_spill] sm:$0xff]  ;;  %v4753_v36 = vld [vmem:[#allocation20_spill] sm:$0xff] }
  0xe6   :  { %v778_v63 = vsel %vm775_vm4, %v3414_v16, %v3448_v9  ;;  %v779_v58 = vsel %vm775_vm4, %v774_v44, %v3414_v16  ;;  %v3510_v41 = vadd.f32 %v711_v42, %v543_v25  ;;  %v3512_v24 = vadd.f32 %v712_v46, %v544_v28  ;;  %v4766_v1 = vld [vmem:[#allocation27_spill] sm:$0xff]  ;;  %v4767_v28 = vld [vmem:[#allocation17_spill] sm:$0xff] }
  0xe7   :  { %v487_v12 = vadd.f32 %v483_v51, %v3440_v34  ;;  %v490_v50 = vadd.f32 %v486_v15, %v4752_v23  ;;  %v3516_v22 = vadd.f32 %v713_v31, %v545_v10  ;;  %v615_v11 = vmul.f32 %v4753_v36, %v3335_v32  ;;  %v4754_v34 = vld [vmem:[#allocation14_spill] sm:$0xff]  ;;  %v4756_v31 = vld [vmem:[#allocation23_spill] sm:$0xff]  ;;  %v4769_v10 = vld [vmem:[#allocation25_spill] sm:$0xff] }
  0xe8   :  { %v776_v47 = vsel %vm775_vm4, %v3442_v43, %v774_v44  ;;  %v777_v25 = vsel %vm775_vm4, %v3448_v9, %v3442_v43  ;;  %v3527_v16 = vadd.f32 %v714_v55, %v546_v14  ;;  %v4755_v42 = vrot.slane %v4754_v34, %v2948_v57  ;;  %v3541_v44 = vpop.permute.xlu0 %912  ;;  %v4760_v43 = vld [vmem:[#allocation22_spill] sm:$0xff]  ;;  %v4761_v55 = vld [vmem:[#allocation15_spill] sm:$0xff]  ;;  %v4773_v34 = vld [vmem:[#allocation29_spill] sm:$0xff] }
  0xe9   :  { %v3487_v38 = vpop.permute.xlu1 %857  ;;  %v4757_v29 = vrot.slane %v4756_v31, 4  ;;  %v4759_v62 = vrot.slane %v4758_v3, 4  ;;  %v617_v9 = vmul.f32 %v4760_v43, %v3335_v32  ;;  %v4762_v4 = vrot.slane %v4761_v55, %v2948_v57  ;;  %v4776_v55 = vld [vmem:[#allocation30_spill] sm:$0xff] }
  0xea   :  { %v616_v46 = vmul.f32 %v4755_v42, %v3335_v32  ;;  %v663_v48 = vmul.f32 %v4763_v18, %v3356_v56  ;;  %v4765_v37 = vrot.slane %v4764_v20, %v3044_v39  ;;  %v665_v53 = vmul.f32 %v4766_v1, %v3356_v56 }
  0xeb   :  { %v3535_v7 = vmul.f32 %v4757_v29, %v778_v63  ;;  %v3539_v19 = vmul.f32 %v4759_v62, %v779_v58  ;;  %v618_v35 = vmul.f32 %v4762_v4, %v3335_v32  ;;  %v4768_v51 = vrot.slane %v4767_v28, %v3044_v39  ;;  %v4771_v63 = vld [vmem:[#allocation28_spill] sm:$0xff]  ;;  %v4774_v29 = vld [vmem:[#allocation19_spill] sm:$0xff] }
  0xec   :  { %v664_v45 = vmul.f32 %v4765_v37, %v3356_v56  ;;  %v4770_v14 = vrot.slane %v4769_v10, 4  ;;  %v4772_v58 = vrot.slane %v4771_v63, 4  ;;  %v619_v36 = vadd.f32 %v615_v11, %v487_v12 }
  0xed   :  { %v666_v15 = vmul.f32 %v4768_v51, %v3356_v56  ;;  %v759_v42 = vmul.f32 %v4773_v34, %v3382_v61  ;;  %v4775_v62 = vrot.slane %v4774_v29, %v3070_v21  ;;  %v761_v56 = vmul.f32 %v4776_v55, %v3382_v61 }
  0xee   :  { %v3508_v5 = vpop.permute.xlu1 %885  ;;  %v3564_v32 = vmul.f32 %v4770_v14, %v777_v25  ;;  %v3568_v23 = vmul.f32 %v4772_v58, %v776_v47  ;;  %v3578_v4 = vadd.f32 %v616_v46, %v488_v26  ;;  %v4777_v25 = vld [vmem:[#allocation21_spill] sm:$0xff]  ;;  %v835_v12 = vrot.slane %v3535_v7, %v3044_v39  ;;  %v917_v58 = vpop.permute.xlu0 %916 }
  0xef   :  { %v760_v43 = vmul.f32 %v4775_v62, %v3382_v61  ;;  %v4778_v18 = vrot.slane %v4777_v25, %v3070_v21  ;;  %v847_v11 = vrot.slane %v3539_v19, %v3044_v39  ;;  %v3588_v20 = vadd.f32 %v617_v9, %v489_v30 }
  0xf0   :  { %v622_v37 = vadd.f32 %v618_v35, %v490_v50  ;;  %v667_v1 = vadd.f32 %v663_v48, %v515_v0  ;;  %v668_v28 = vadd.f32 %v664_v45, %v516_v17  ;;  %v669_v14 = vadd.f32 %v665_v53, %v517_v8 }
  0xf1   :  { %v762_v47 = vmul.f32 %v4778_v18, %v3382_v61  ;;  %v670_v26 = vadd.f32 %v666_v15, %v518_v40  ;;  %v839_v46 = vrot.slane %v3564_v32, %v3044_v39  ;;  %v843_v61 = vrot.slane %v3568_v23, %v3044_v39 }
  0xf2   :  { %v915_v27 = vpop.permute.xlu1 %914  ;;  %v3594_v34 = vadd.f32 %v759_v42, %v571_v59  ;;  %v3596_v29 = vadd.f32 %v760_v43, %v572_v13  ;;  %v3598_v62 = vadd.f32 %v761_v56, %v573_v60  ;;  %v819_v30 = vrot.slane %v3539_v19, %v2948_v57  ;;  %v925_v42 = vld [vmem:[%s4626_s5 + $0x60] sm:$0xf]  ;;  %v926_v43 = vld [vmem:[%s4626_s5 + $0x68] sm:$0xf]  ;;  %v3641_v18 = vpop.permute.xlu0 %934 }
  0xf3   :  { %v3602_v17 = vadd.f32 %v762_v47, %v574_v2  ;;  %v848_v8 = vmul.f32 %v835_v12, %v830_v33  ;;  %v851_v0 = vmul.f32 %v847_v11, %v830_v33  ;;  %v807_v40 = vrot.slane %v3535_v7, %v2948_v57 }
  0xf4   :  { %v811_v50 = vrot.slane %v3564_v32, %v2948_v57  ;;  %v815_v59 = vrot.slane %v3568_v23, %v2948_v57  ;;  %v823_v13 = vmul.f32 %v819_v30, %v3465_v54  ;;  %v863_v60 = vrot.slane %v3535_v7, %v3023_v6 }
  0xf5   :  { %v849_v2 = vmul.f32 %v839_v46, %v830_v33  ;;  %v850_v35 = vmul.f32 %v843_v61, %v830_v33  ;;  %v875_v48 = vrot.slane %v3539_v19, %v3023_v6  ;;  %v891_v45 = vrot.slane %v3535_v7, %v3070_v21 }
  0xf6   :  { %v919_v51 = vpop.permute.xlu1 %918  ;;  %v820_v53 = vmul.f32 %v807_v40, %v3465_v54  ;;  %v903_v15 = vrot.slane %v3539_v19, %v3070_v21  ;;  %v922_v33 = vsel %vm920_vm5, %v915_v27, %v917_v58  ;;  %v923_v7 = vsel %vm920_vm5, %v3541_v44, %v915_v27 }
  0xf7   :  { %v3633_v55 = vadd.f32 %v848_v8, %v667_v1  ;;  %v3635_v56 = vadd.f32 %v851_v0, %v670_v26  ;;  %v867_v19 = vrot.slane %v3564_v32, %v3023_v6  ;;  %v871_v25 = vrot.slane %v3568_v23, %v3023_v6 }
  0xf8   :  { %v821_v47 = vmul.f32 %v811_v50, %v3465_v54  ;;  %v822_v12 = vmul.f32 %v815_v59, %v3465_v54  ;;  %v3645_v11 = vadd.f32 %v823_v13, %v622_v37  ;;  %v895_v27 = vrot.slane %v3564_v32, %v3070_v21  ;;  %v927_v32 = vld [vmem:[%s4626_s5 + $0x70] sm:$0xf] }
  0xf9   :  { %v3649_v1 = vadd.f32 %v849_v2, %v668_v28  ;;  %v3651_v26 = vadd.f32 %v850_v35, %v669_v14  ;;  %v3653_v46 = vmul.f32 %v925_v42, %v923_v7  ;;  %v3655_v61 = vmul.f32 %v926_v43, %v922_v33  ;;  %v928_v28 = vld [vmem:[%s4626_s5 + $0x78] sm:$0xf]  ;;  %v1019_v35 = vpop.permute.xlu0 %1018 }
  0xfa   :  { %v3613_v9 = vpop.permute.xlu1 %962  ;;  %v899_v54 = vrot.slane %v3568_v23, %v3070_v21  ;;  %v824_v37 = vadd.f32 %v820_v53, %v619_v36  ;;  %v921_v14 = vsel %vm920_vm5, %v917_v58, %v919_v51  ;;  %v924_v8 = vsel %vm920_vm5, %v919_v51, %v3541_v44 }
  0xfb   :  { %v876_v0 = vmul.f32 %v863_v60, %v3487_v38  ;;  %v877_v23 = vmul.f32 %v867_v19, %v3487_v38  ;;  %v878_v36 = vmul.f32 %v871_v25, %v3487_v38  ;;  %v879_v40 = vmul.f32 %v875_v48, %v3487_v38 }
  0xfc   :  { %v904_v50 = vmul.f32 %v891_v45, %v3508_v5  ;;  %v905_v59 = vmul.f32 %v895_v27, %v3508_v5  ;;  %v906_v13 = vmul.f32 %v899_v54, %v3508_v5  ;;  %v907_v58 = vmul.f32 %v903_v15, %v3508_v5 }
  0xfd   :  { %v940_v2 = vrot.slane %v3653_v46, %v2948_v57  ;;  %v944_v44 = vrot.slane %v3655_v61, %v2948_v57  ;;  %v3685_v51 = vmul.f32 %v927_v32, %v921_v14  ;;  %v3687_v60 = vmul.f32 %v928_v28, %v924_v8 }
  0xfe   :  { %v3690_v48 = vadd.f32 %v822_v12, %v3588_v20  ;;  %v825_v45 = vadd.f32 %v821_v47, %v3578_v4  ;;  %v1024_v5 = vrot.slane %v3653_v46, %v3070_v21  ;;  %v1028_v53 = vrot.slane %v3655_v61, %v3070_v21 }
  0xff   :  { %v3657_v30 = vpop.permute.xlu1 %990  ;;  %v3698_v15 = vadd.f32 %v876_v0, %v3510_v41  ;;  %v3701_v42 = vadd.f32 %v877_v23, %v3512_v24  ;;  %v3704_v43 = vadd.f32 %v878_v36, %v3516_v22  ;;  %v3707_v20 = vadd.f32 %v879_v40, %v3527_v16  ;;  %v1050_v16 = vpop.permute.xlu0 %1049 }
 0x100   :  { %v908_v4 = vadd.f32 %v904_v50, %v3594_v34  ;;  %v909_v33 = vadd.f32 %v905_v59, %v3596_v29  ;;  %v910_v7 = vadd.f32 %v906_v13, %v3598_v62  ;;  %v911_v19 = vadd.f32 %v907_v58, %v3602_v17 }
 0x101   :  { %v953_v41 = vmul.f32 %v940_v2, %v3641_v18  ;;  %v954_v25 = vmul.f32 %v944_v44, %v3641_v18  ;;  %v1032_v24 = vrot.slane %v3685_v51, %v3070_v21  ;;  %v1036_v22 = vrot.slane %v3687_v60, %v3070_v21  ;;  %v4779_v2 = vld [vmem:[#allocation31_spill] sm:$0xff] }
 0x102   :  { %v1037_v12 = vmul.f32 %v1024_v5, %v1019_v35  ;;  %v1038_v34 = vmul.f32 %v1028_v53, %v1019_v35  ;;  %v968_v29 = vrot.slane %v3653_v46, %v3044_v39  ;;  %v972_v62 = vrot.slane %v3655_v61, %v3044_v39  ;;  %v4781_v53 = vld [vmem:[#allocation32_spill] sm:$0xff] }
 0x103   :  { %v1046_v38 = vpop.permute.xlu1 %1045  ;;  %v948_v17 = vrot.slane %v3685_v51, %v2948_v57  ;;  %v952_v27 = vrot.slane %v3687_v60, %v2948_v57  ;;  %v996_v54 = vrot.slane %v3653_v46, %v3023_v6  ;;  %v1000_v32 = vrot.slane %v3655_v61, %v3023_v6 }
 0x104   :  { %v976_v28 = vrot.slane %v3685_v51, %v3044_v39  ;;  %v980_v14 = vrot.slane %v3687_v60, %v3044_v39  ;;  %v3739_v23 = vadd.f32 %v953_v41, %v824_v37  ;;  %v3741_v36 = vadd.f32 %v954_v25, %v825_v45  ;;  %v1080_v45 = vpop.permute.xlu0 %1079 }
 0x105   :  { %v1039_v46 = vmul.f32 %v1032_v24, %v1019_v35  ;;  %v1040_v40 = vmul.f32 %v1036_v22, %v1019_v35  ;;  %v3743_v61 = vadd.f32 %v1037_v12, %v908_v4  ;;  %v3745_v59 = vadd.f32 %v1038_v34, %v909_v33 }
 0x106   :  { %v981_v13 = vmul.f32 %v968_v29, %v3613_v9  ;;  %v982_v58 = vmul.f32 %v972_v62, %v3613_v9  ;;  %v4780_v44 = vrot.slane %v4779_v2, 4  ;;  %v4782_v37 = vrot.slane %v4781_v53, 4 }
 0x107   :  { %v1048_v47 = vpop.permute.xlu1 %1047  ;;  %v955_v33 = vmul.f32 %v948_v17, %v3641_v18  ;;  %v956_v25 = vmul.f32 %v952_v27, %v3641_v18  ;;  %v983_v24 = vmul.f32 %v976_v28, %v3613_v9  ;;  %v984_v22 = vmul.f32 %v980_v14, %v3613_v9  ;;  %v4783_v17 = vld [vmem:[#allocation34_spill] sm:$0xff]  ;;  %v4785_v27 = vld [vmem:[#allocation35_spill] sm:$0xff] }
 0x108   :  { %v1055_v8 = vsel %vm1053_vm6, %v1048_v47, %v1050_v16  ;;  %v1056_v0 = vsel %vm1053_vm6, %v1046_v38, %v1048_v47  ;;  %v1043_v47 = vadd.f32 %v1039_v46, %v910_v7  ;;  %v1044_v12 = vadd.f32 %v1040_v40, %v911_v19  ;;  %v1164_v46 = vpop.permute.xlu0 %1163 }
 0x109   :  { %v3751_v5 = vmul.f32 %v4780_v44, %v1056_v0  ;;  %v3755_v41 = vmul.f32 %v4782_v37, %v1055_v8  ;;  %v1004_v34 = vrot.slane %v3685_v51, %v3023_v6  ;;  %v1008_v29 = vrot.slane %v3687_v60, %v3023_v6 }
 0x10a   :  { %v1009_v62 = vmul.f32 %v996_v54, %v3657_v30  ;;  %v4784_v8 = vrot.slane %v4783_v17, 4  ;;  %v4786_v28 = vrot.slane %v4785_v27, 4  ;;  %v985_v7 = vadd.f32 %v981_v13, %v3633_v55 }
 0x10b   :  { %v1052_v50 = vpop.permute.xlu1 %1051  ;;  %v986_v51 = vadd.f32 %v982_v58, %v3649_v1  ;;  %v1085_v60 = vrot.slane %v3751_v5, %v2948_v57  ;;  %v1089_v19 = vrot.slane %v3755_v41, %v2948_v57  ;;  %v3786_v54 = vadd.f32 %v983_v24, %v3651_v26 }
 0x10c   :  { %v1054_v35 = vsel %vm1053_vm6, %v1050_v16, %v1052_v50  ;;  %v1057_v4 = vsel %vm1053_vm6, %v1052_v50, %v1046_v38  ;;  %v1010_v38 = vmul.f32 %v1000_v32, %v3657_v30  ;;  %v3789_v32 = vadd.f32 %v984_v22, %v3635_v56 }
 0x10d   :  { %v3773_v18 = vmul.f32 %v4784_v8, %v1054_v35  ;;  %v3777_v9 = vmul.f32 %v4786_v28, %v1057_v4  ;;  %v1169_v14 = vrot.slane %v3751_v5, %v3070_v21  ;;  %v1173_v55 = vrot.slane %v3755_v41, %v3070_v21 }
 0x10e   :  { %v1011_v1 = vmul.f32 %v1004_v34, %v3657_v30  ;;  %v1012_v0 = vmul.f32 %v1008_v29, %v3657_v30  ;;  %v959_v40 = vadd.f32 %v955_v33, %v3690_v48  ;;  %v960_v26 = vadd.f32 %v956_v25, %v3645_v11  ;;  %v1195_v34 = vpop.permute.xlu0 %1194 }
 0x10f   :  { %v1108_v16 = vpop.permute.xlu1 %1107  ;;  %v1177_v56 = vrot.slane %v3773_v18, %v3070_v21  ;;  %v1181_v50 = vrot.slane %v3777_v9, %v3070_v21  ;;  %v1013_v58 = vadd.f32 %v1009_v62, %v3698_v15  ;;  %v1014_v44 = vadd.f32 %v1010_v38, %v3701_v42 }
 0x110   :  { %v1098_v37 = vmul.f32 %v1085_v60, %v1080_v45  ;;  %v1099_v35 = vmul.f32 %v1089_v19, %v1080_v45  ;;  %v1113_v30 = vrot.slane %v3751_v5, %v3044_v39  ;;  %v1117_v48 = vrot.slane %v3755_v41, %v3044_v39 }
 0x111   :  { %v1093_v11 = vrot.slane %v3773_v18, %v2948_v57  ;;  %v1097_v4 = vrot.slane %v3777_v9, %v2948_v57  ;;  %v1182_v33 = vmul.f32 %v1169_v14, %v1164_v46  ;;  %v1183_v25 = vmul.f32 %v1173_v55, %v1164_v46 }
 0x112   :  { %v1125_v15 = vrot.slane %v3777_v9, %v3044_v39  ;;  %v1121_v42 = vrot.slane %v3773_v18, %v3044_v39  ;;  %v1015_v24 = vadd.f32 %v1011_v1, %v3704_v43  ;;  %v1016_v22 = vadd.f32 %v1012_v0, %v3707_v20 }
 0x113   :  { %v1184_v29 = vmul.f32 %v1177_v56, %v1164_v46  ;;  %v1185_v62 = vmul.f32 %v1181_v50, %v1164_v46  ;;  %v1126_v38 = vmul.f32 %v1113_v30, %v1108_v16  ;;  %v1127_v8 = vmul.f32 %v1117_v48, %v1108_v16 }
 0x114   :  { %v1136_v13 = vpop.permute.xlu1 %1135  ;;  %v1102_v60 = vadd.f32 %v1098_v37, %v3739_v23  ;;  %v1103_v19 = vadd.f32 %v1099_v35, %v3741_v36  ;;  %v1141_v14 = vrot.slane %v3751_v5, %v3023_v6  ;;  %v1145_v55 = vrot.slane %v3755_v41, %v3023_v6  ;;  %v1203_v5 = vld [vmem:[%s4626_s5 + $0x80] sm:$0xf]  ;;  %v1213_v41 = vpop.permute.xlu0 %1212 }
 0x115   :  { %v1100_v27 = vmul.f32 %v1093_v11, %v1080_v45  ;;  %v1101_v43 = vmul.f32 %v1097_v4, %v1080_v45  ;;  %v3827_v20 = vadd.f32 %v1182_v33, %v3743_v61  ;;  %v3830_v1 = vadd.f32 %v1183_v25, %v3745_v59  ;;  %v1204_v61 = vld [vmem:[%s4626_s5 + $0x88] sm:$0xf] }
 0x116   :  { %v1128_v0 = vmul.f32 %v1121_v42, %v1108_v16  ;;  %v1129_v46 = vmul.f32 %v1125_v15, %v1108_v16  ;;  %v1153_v23 = vrot.slane %v3777_v9, %v3023_v6  ;;  %v1149_v36 = vrot.slane %v3773_v18, %v3023_v6 }
 0x117   :  { %v3842_v45 = vadd.f32 %v1184_v29, %v1043_v47  ;;  %v3844_v59 = vadd.f32 %v1185_v62, %v1044_v12  ;;  %v1130_v56 = vadd.f32 %v1126_v38, %v985_v7  ;;  %v1131_v50 = vadd.f32 %v1127_v8, %v986_v51  ;;  %v1205_v47 = vld [vmem:[%s4626_s5 + $0x90] sm:$0xf]  ;;  %v1206_v12 = vld [vmem:[%s4626_s5 + $0x98] sm:$0xf] }
 0x118   :  { %v1191_v28 = vpop.permute.xlu1 %1190  ;;  %v1154_v9 = vmul.f32 %v1141_v14, %v1136_v13  ;;  %v1155_v37 = vmul.f32 %v1145_v55, %v1136_v13  ;;  %v1156_v30 = vmul.f32 %v1149_v36, %v1136_v13  ;;  %v1157_v48 = vmul.f32 %v1153_v23, %v1136_v13 }
 0x119   :  { %v1132_v7 = vadd.f32 %v1128_v0, %v3786_v54  ;;  %v1133_v51 = vadd.f32 %v1129_v46, %v3789_v32  ;;  %v1104_v33 = vadd.f32 %v1100_v27, %v959_v40  ;;  %v1105_v25 = vadd.f32 %v1101_v43, %v960_v26  ;;  %v1297_v32 = vpop.permute.xlu0 %1296 }
 0x11a   :  { %v1158_v38 = vadd.f32 %v1154_v9, %v1013_v58  ;;  %v1159_v8 = vadd.f32 %v1155_v37, %v1014_v44  ;;  %v1160_v43 = vadd.f32 %v1156_v30, %v1015_v24  ;;  %v1161_v0 = vadd.f32 %v1157_v48, %v1016_v22 }
 0x11c   :  { %v1193_v16 = vpop.permute.xlu1 %1192 }
 0x11d   :  { %v1200_v18 = vsel %vm1198_vm7, %v1193_v16, %v1195_v34  ;;  %v1201_v35 = vsel %vm1198_vm7, %v1191_v28, %v1193_v16 }
 0x11e   :  { %v1207_v11 = vmul.f32 %v1203_v5, %v1201_v35  ;;  %v1208_v4 = vmul.f32 %v1204_v61, %v1200_v18 }
 0x120   :  { %v1218_v15 = vrot.slane %v1207_v11, %v2948_v57  ;;  %v1222_v13 = vrot.slane %v1208_v4, %v2948_v57  ;;  %v1197_v42 = vpop.permute.xlu1 %1196  ;;  %v1302_v29 = vrot.slane %v1207_v11, %v3070_v21  ;;  %v1306_v62 = vrot.slane %v1208_v4, %v3070_v21 }
 0x121   :  { %v1199_v14 = vsel %vm1198_vm7, %v1195_v34, %v1197_v42  ;;  %v1202_v54 = vsel %vm1198_vm7, %v1197_v42, %v1191_v28  ;;  %v1246_v46 = vrot.slane %v1207_v11, %v3044_v39  ;;  %v1250_v23 = vrot.slane %v1208_v4, %v3044_v39 }
 0x122   :  { %v1231_v27 = vmul.f32 %v1218_v15, %v1213_v41  ;;  %v1232_v40 = vmul.f32 %v1222_v13, %v1213_v41  ;;  %v1209_v26 = vmul.f32 %v1205_v47, %v1199_v14  ;;  %v1210_v55 = vmul.f32 %v1206_v12, %v1202_v54 }
 0x123   :  { %v1315_v36 = vmul.f32 %v1302_v29, %v1297_v32  ;;  %v1316_v34 = vmul.f32 %v1306_v62, %v1297_v32  ;;  %v1274_v16 = vrot.slane %v1207_v11, %v3023_v6  ;;  %v1278_v24 = vrot.slane %v1208_v4, %v3023_v6 }
 0x124   :  { %v1226_v58 = vrot.slane %v1209_v26, %v2948_v57  ;;  %v1230_v44 = vrot.slane %v1210_v55, %v2948_v57  ;;  %v1241_v5 = vpop.permute.xlu1 %1240  ;;  %v1310_v28 = vrot.slane %v1209_v26, %v3070_v21  ;;  %v1314_v61 = vrot.slane %v1210_v55, %v3070_v21 }
 0x125   :  { %v1235_v22 = vadd.f32 %v1231_v27, %v1102_v60  ;;  %v1236_v9 = vadd.f32 %v1232_v40, %v1103_v19  ;;  %v1258_v37 = vrot.slane %v1210_v55, %v3044_v39  ;;  %v1254_v18 = vrot.slane %v1209_v26, %v3044_v39 }
 0x126   :  { %v1233_v35 = vmul.f32 %v1226_v58, %v1213_v41  ;;  %v1234_v30 = vmul.f32 %v1230_v44, %v1213_v41  ;;  %v1259_v48 = vmul.f32 %v1246_v46, %v1241_v5  ;;  %v1260_v47 = vmul.f32 %v1250_v23, %v1241_v5 }
 0x127   :  { %v1317_v12 = vmul.f32 %v1310_v28, %v1297_v32  ;;  %v1318_v15 = vmul.f32 %v1314_v61, %v1297_v32  ;;  %v1261_v13 = vmul.f32 %v1254_v18, %v1241_v5  ;;  %v1262_v42 = vmul.f32 %v1258_v37, %v1241_v5 }
 0x128   :  { %v1263_v29 = vadd.f32 %v1259_v48, %v1130_v56  ;;  %v1264_v62 = vadd.f32 %v1260_v47, %v1131_v50  ;;  %v1286_v11 = vrot.slane %v1210_v55, %v3023_v6  ;;  %v1282_v60 = vrot.slane %v1209_v26, %v3023_v6  ;;  %v3901_v47 = vld [vmem:[%s4628_s3] sm:$0xf] }
 0x129   :  { %v1269_v14 = vpop.permute.xlu1 %1268  ;;  %v1265_v19 = vadd.f32 %v1261_v13, %v1132_v7  ;;  %v1266_v4 = vadd.f32 %v1262_v42, %v1133_v51  ;;  %v1237_v41 = vadd.f32 %v1233_v35, %v1104_v33  ;;  %v1238_v46 = vadd.f32 %v1234_v30, %v1105_v25 }
 0x12a   :  { %v1287_v54 = vmul.f32 %v1274_v16, %v1269_v14  ;;  %v1288_v27 = vmul.f32 %v1278_v24, %v1269_v14  ;;  %v1289_v40 = vmul.f32 %v1282_v60, %v1269_v14  ;;  %v1290_v58 = vmul.f32 %v1286_v11, %v1269_v14 }
 0x12b   :  { %v1319_v23 = vadd.f32 %v1315_v36, %v3827_v20  ;;  %v1320_v32 = vadd.f32 %v1316_v34, %v3830_v1  ;;  %v1321_v50 = vadd.f32 %v1317_v12, %v3842_v45  ;;  %v1322_v55 = vadd.f32 %v1318_v15, %v3844_v59 }
 0x12c   :  { %v1291_v44 = vadd.f32 %v1287_v54, %v1158_v38  ;;  %v1292_v56 = vadd.f32 %v1288_v27, %v1159_v8  ;;  %v1293_v5 = vadd.f32 %v1289_v40, %v1160_v43  ;;  %v1294_v26 = vadd.f32 %v1290_v58, %v1161_v0 }
 0x12d   :  { %v1323_v7 = vadd.f32 %v1263_v29, %v1235_v22  ;;  %v1324_v51 = vadd.f32 %v1264_v62, %v1236_v9  ;;  %v1325_v24 = vadd.f32 %v1265_v19, %v1237_v41  ;;  %v1326_v33 = vadd.f32 %v1266_v4, %v1238_v46 }
 0x12e   :  { %v1327_v28 = vadd.f32 %v1319_v23, %v1291_v44  ;;  %v1328_v61 = vadd.f32 %v1320_v32, %v1292_v56  ;;  %v1339_v16 = vpop.permute.xlu1 %1338  ;;  %v1329_v25 = vadd.f32 %v1321_v50, %v1293_v5  ;;  %v1330_v37 = vadd.f32 %v1322_v55, %v1294_v26 }
 0x12f   :  { %v4787_v12 = vmov 2   ;;  %v4788_v15 = vmov 4   ;;  %v4789_v13 = vmov 3   ;;  %v4790_v42 = vmov 5  }
 0x130   :  { %v1331_v20 = vadd.f32 %v1327_v28, %v1323_v7  ;;  %v1332_v36 = vadd.f32 %v1328_v61, %v1324_v51  ;;  %v1333_v1 = vadd.f32 %v1329_v25, %v1325_v24  ;;  %v1334_v38 = vadd.f32 %v1330_v37, %v1326_v33 }
 0x131   :  { %v4791_v29 = vmov 7   ;;  %v4792_v62 = vmov 8   ;;  %v4793_v11 = vmov 6   ;;  %v4794_v14 = vmov 11  }
 0x132   :  { %v1341_v8 = vadd.f32 %v1339_v16, %v1331_v20  ;;  %v1342_v34 = vadd.f32 %v1339_v16, %v1332_v36  ;;  %v1343_v45 = vadd.f32 %v1339_v16, %v1333_v1  ;;  %v1344_v18 = vadd.f32 %v1339_v16, %v1334_v38 }
 0x133   :  { %v4795_v60 = vmov 9   ;;  %v4796_v19 = vmov 12   ;;  %v4797_v4 = vmov 15   ;;  %v4798_v54 = vmov 18  }
 0x134   :  { %v1345_v59 = vmul.f32 0.2, %v1341_v8  ;;  %v1346_v43 = vmul.f32 0.2, %v1342_v34  ;;  %v1347_v0 = vmul.f32 0.2, %v1343_v45 }
 0x135   :  { %v1348_v22 = vmul.f32 0.2, %v1344_v18  ;;  %v4799_v27 = vmov 10   ;;  %v4800_v40 = vmov 21   ;;  %v4801_v58 = vmov 13  }
 0x136   :  { %v3882_v9 = vmax.f32 %v1341_v8, %v1345_v59  ;;  %v3884_v35 = vmax.f32 %v1342_v34, %v1346_v43  ;;  %v3890_v30 = vmax.f32 %v1343_v45, %v1347_v0  ;;  %v4802_v41 = vmov 24   ;;  %v2637_v8 = vld [vmem:[%s4626_s5 + $0x8] sm:$0xf]  ;;  %v2638_v45 = vld [vmem:[%s4626_s5] sm:$0xf] }
 0x137   :  { %v3892_v48 = vmax.f32 %v1344_v18, %v1348_v22  ;;  %v4803_v46 = vmov 14   ;;  %v4804_v23 = vmov 16   ;;  %v4805_v32 = vmov 27   ;;  %v2639_v59 = vld [vmem:[%s4626_s5 + $0x10] sm:$0xf] }
 0x138   :  { %1356 = vrot.lane.b32.xlu0 %v3884_v35, %s2657_s25  ;;  %1354 = vrot.lane.b32.xlu1 %v3882_v9, %s2657_s25  ;;  %v4806_v44 = vmov 17   ;;  %v4807_v56 = vmov 28   ;;  %v4808_v50 = vmov 19   ;;  %v4809_v55 = vmov 31   ;;  %v2640_v0 = vld [vmem:[%s4626_s5 + $0x18] sm:$0xf] }
 0x139   :  { %v4810_v5 = vmov 20   ;;  %v4811_v26 = vmov 32   ;;  %v4812_v7 = vmov 22   ;;  %v4813_v51 = vmov 35  }
 0x13a   :  { %v4814_v28 = vmov 23   ;;  %v4815_v33 = vmov 0   ;;  %v4816_v38 = vmov 25  }
 0x13c   :  { %1360 = vrot.lane.b32.xlu0 %v3892_v48, %s2657_s25  ;;  %1358 = vrot.lane.b32.xlu1 %v3890_v30, %s2657_s25 }
 0x140   :  { %1396 = vperm.xlu0 %2598, %v3901_v47   ;;  %1372 = vperm.xlu1 %2597, %v3901_v47  }
 0x144   :  { %1467 = vrot.lane.b32.xlu0 %v3882_v9, %s2660_s28  ;;  %2599 = vset.pattern.permute.xlu1 %v4787_v12  ;;  %v4817_v12 = vmov 26  }
 0x145   :  { %1420 = vperm.xlu1 %2599, %v3901_v47   ;;  %2601 = vset.pattern.permute.xlu0 %v4788_v15 }
 0x148   :  { %1471 = vrot.lane.b32.xlu0 %v3890_v30, %s2660_s28 }
 0x149   :  { %2600 = vset.pattern.permute.xlu1 %v4789_v13 }
 0x14a   :  { %1444 = vperm.xlu1 %2600, %v3901_v47  }
 0x14c   :  { %1484 = vperm.xlu0 %2601, %v3901_v47  }
 0x14e   :  { %1469 = vrot.lane.b32.xlu1 %v3884_v35, %s2660_s28 }
 0x14f   :  { %2602 = vset.pattern.permute.xlu1 %v4790_v42 }
 0x150   :  { %2604 = vset.pattern.permute.xlu0 %v4791_v29 }
 0x151   :  { %1568 = vperm.xlu0 %2604, %v3901_v47  }
 0x152   :  { %1473 = vrot.lane.b32.xlu1 %v3892_v48, %s2660_s28 }
 0x155   :  { %1599 = vrot.lane.b32.xlu0 %v3890_v30, %s2664_s1 }
 0x156   :  { %1512 = vperm.xlu1 %2602, %v3901_v47   ;;  %2605 = vset.pattern.permute.xlu0 %v4792_v62 }
 0x159   :  { %1612 = vperm.xlu0 %2605, %v3901_v47  }
 0x15a   :  { %2603 = vset.pattern.permute.xlu1 %v4793_v11 }
 0x15b   :  { %1540 = vperm.xlu1 %2603, %v3901_v47  }
 0x15d   :  { %2608 = vset.pattern.permute.xlu0 %v4794_v14 }
 0x15e   :  { %1696 = vperm.xlu0 %2608, %v3901_v47  }
 0x15f   :  { %1595 = vrot.lane.b32.xlu1 %v3882_v9, %s2664_s1 }
 0x160   :  { %2606 = vset.pattern.permute.xlu1 %v4795_v60 }
 0x162   :  { %1727 = vrot.lane.b32.xlu0 %v3890_v30, %s2669_s29 }
 0x163   :  { %1597 = vrot.lane.b32.xlu1 %v3884_v35, %s2664_s1  ;;  %2609 = vset.pattern.permute.xlu0 %v4796_v19 }
 0x166   :  { %1740 = vperm.xlu0 %2609, %v3901_v47  }
 0x167   :  { %1601 = vrot.lane.b32.xlu1 %v3892_v48, %s2664_s1 }
 0x16a   :  { %2612 = vset.pattern.permute.xlu0 %v4797_v4 }
 0x16b   :  { %1824 = vperm.xlu0 %2612, %v3901_v47   ;;  %1640 = vperm.xlu1 %2606, %v3901_v47  }
 0x16f   :  { %2615 = vset.pattern.permute.xlu0 %v4798_v54  ;;  %2607 = vset.pattern.permute.xlu1 %v4799_v27 }
 0x170   :  { %1908 = vperm.xlu0 %2615, %v3901_v47   ;;  %1668 = vperm.xlu1 %2607, %v3901_v47  }
 0x174   :  { %1965 = vrot.lane.b32.xlu0 %v3884_v35, %s2675_s30  ;;  %1723 = vrot.lane.b32.xlu1 %v3882_v9, %s2669_s29 }
 0x175   :  { %2618 = vset.pattern.permute.xlu0 %v4800_v40  ;;  %2610 = vset.pattern.permute.xlu1 %v4801_v58 }
 0x178   :  { %1969 = vrot.lane.b32.xlu0 %v3892_v48, %s2675_s30  ;;  %1725 = vrot.lane.b32.xlu1 %v3884_v35, %s2669_s29 }
 0x17c   :  { %2008 = vperm.xlu0 %2618, %v3901_v47   ;;  %1729 = vrot.lane.b32.xlu1 %v3892_v48, %s2669_s29 }
 0x180   :  { %2091 = vrot.lane.b32.xlu0 %v3882_v9, %s2677_s7  ;;  %1768 = vperm.xlu1 %2610, %v3901_v47  }
 0x181   :  { %2621 = vset.pattern.permute.xlu0 %v4802_v41 }
 0x184   :  { %2095 = vrot.lane.b32.xlu0 %v3890_v30, %s2677_s7  ;;  %2611 = vset.pattern.permute.xlu1 %v4803_v46 }
 0x185   :  { %1796 = vperm.xlu1 %2611, %v3901_v47  }
 0x188   :  { %2108 = vperm.xlu0 %2621, %v3901_v47  }
 0x189   :  { %2613 = vset.pattern.permute.xlu1 %v4804_v23 }
 0x18a   :  { %1852 = vperm.xlu1 %2613, %v3901_v47  }
 0x18c   :  { %2624 = vset.pattern.permute.xlu0 %v4805_v32 }
 0x18d   :  { %2192 = vperm.xlu0 %2624, %v3901_v47  }
 0x18e   :  { %2614 = vset.pattern.permute.xlu1 %v4806_v44 }
 0x18f   :  { %1880 = vperm.xlu1 %2614, %v3901_v47  }
 0x191   :  { %2223 = vrot.lane.b32.xlu0 %v3890_v30, %s2684_s8 }
 0x192   :  { %2625 = vset.pattern.permute.xlu0 %v4807_v56 }
 0x193   :  { %2616 = vset.pattern.permute.xlu1 %v4808_v50 }
 0x194   :  { %1936 = vperm.xlu1 %2616, %v3901_v47  }
 0x195   :  { %2236 = vperm.xlu0 %2625, %v3901_v47  }
 0x198   :  { %1963 = vrot.lane.b32.xlu1 %v3882_v9, %s2675_s30 }
 0x199   :  { %2628 = vset.pattern.permute.xlu0 %v4809_v55  ;;  %2617 = vset.pattern.permute.xlu1 %v4810_v5 }
 0x19a   :  { %2320 = vperm.xlu0 %2628, %v3901_v47  }
 0x19c   :  { %1967 = vrot.lane.b32.xlu1 %v3890_v30, %s2675_s30 }
 0x19e   :  { %2351 = vrot.lane.b32.xlu0 %v3890_v30, %s2688_s9 }
 0x19f   :  { %2629 = vset.pattern.permute.xlu0 %v4811_v26 }
 0x1a0   :  { %1980 = vperm.xlu1 %2617, %v3901_v47  }
 0x1a2   :  { %2364 = vperm.xlu0 %2629, %v3901_v47  }
 0x1a4   :  { %2619 = vset.pattern.permute.xlu1 %v4812_v7  ;;  %v4818_v7 = vmov 29  }
 0x1a5   :  { %2036 = vperm.xlu1 %2619, %v3901_v47  }
 0x1a6   :  { %2632 = vset.pattern.permute.xlu0 %v4813_v51 }
 0x1a7   :  { %2448 = vperm.xlu0 %2632, %v3901_v47  }
 0x1a9   :  { %2620 = vset.pattern.permute.xlu1 %v4814_v28 }
 0x1aa   :  { %v1357_v61 = vpop.permute.xlu0 %1356  ;;  %2064 = vperm.xlu1 %2620, %v3901_v47   ;;  %v1355_v16 = vpop.permute.xlu1 %1354 }
 0x1ab   :  { %v1364_v24 = vsel %vm42_vm1, %v1355_v16, %v1357_v61  ;;  %2634 = vset.pattern.permute.xlu0 %v4815_v33 }
 0x1ac   :  { %v1367_v34 = vmul.f32 %v2637_v8, %v1364_v24 }
 0x1ae   :  { %v1361_v25 = vpop.permute.xlu0 %1360  ;;  %2093 = vrot.lane.b32.xlu1 %v3884_v35, %s2677_s7  ;;  %v1359_v37 = vpop.permute.xlu1 %1358  ;;  %v1406_v13 = vrot.slane %v1367_v34, %v3044_v39  ;;  %v1382_v14 = vrot.slane %v1367_v34, %v2948_v57  ;;  %v1430_v50 = vrot.slane %v1367_v34, %v3023_v6 }
 0x1af   :  { %v1365_v20 = vsel %vm42_vm1, %v1361_v25, %v1355_v16  ;;  %v1362_v36 = vsel %vm42_vm1, %v1359_v37, %v1361_v25  ;;  %v1363_v1 = vsel %vm42_vm1, %v1357_v61, %v1359_v37  ;;  %2622 = vset.pattern.permute.xlu1 %v4816_v38  ;;  %v1454_v37 = vrot.slane %v1367_v34, %v3070_v21 }
 0x1b0   :  { %v1366_v18 = vmul.f32 %v2638_v45, %v1365_v20  ;;  %v1368_v43 = vmul.f32 %v2639_v59, %v1363_v1  ;;  %v1369_v22 = vmul.f32 %v2640_v0, %v1362_v36 }
 0x1b2   :  { %2097 = vrot.lane.b32.xlu1 %v3892_v48, %s2677_s7  ;;  %v1402_v15 = vrot.slane %v1366_v18, %v3044_v39  ;;  %v1410_v42 = vrot.slane %v1368_v43, %v3044_v39  ;;  %v1414_v29 = vrot.slane %v1369_v22, %v3044_v39  ;;  %v1378_v11 = vrot.slane %v1366_v18, %v2948_v57 }
 0x1b3   :  { %v1386_v60 = vrot.slane %v1368_v43, %v2948_v57  ;;  %v1390_v19 = vrot.slane %v1369_v22, %v2948_v57  ;;  %v1426_v56 = vrot.slane %v1366_v18, %v3023_v6  ;;  %v1434_v55 = vrot.slane %v1368_v43, %v3023_v6 }
 0x1b4   :  { %v1438_v5 = vrot.slane %v1369_v22, %v3023_v6  ;;  %v1450_v25 = vrot.slane %v1366_v18, %v3070_v21  ;;  %v1458_v20 = vrot.slane %v1368_v43, %v3070_v21  ;;  %v1462_v36 = vrot.slane %v1369_v22, %v3070_v21  ;;  %v4819_v43 = vld [vmem:[#allocation5_spill] sm:$0xff] }
 0x1b5   :  { %v4820_v22 = vrot.slane %v4819_v43, 4 }
 0x1b6   :  { %2136 = vperm.xlu1 %2622, %v3901_v47  }
 0x1ba   :  { %2623 = vset.pattern.permute.xlu1 %v4817_v12 }
 0x1bb   :  { %v1397_v62 = vpop.permute.xlu0 %1396  ;;  %2164 = vperm.xlu1 %2623, %v3901_v47   ;;  %v1373_v4 = vpop.permute.xlu1 %1372 }
 0x1bc   :  { %v4038_v54 = vmul.f32 %v1402_v15, %v1397_v62  ;;  %v4040_v27 = vmul.f32 %v1406_v13, %v1397_v62  ;;  %v4042_v40 = vmul.f32 %v1410_v42, %v1397_v62  ;;  %v4044_v58 = vmul.f32 %v1414_v29, %v1397_v62  ;;  %v4821_v13 = vld [vmem:[#allocation2_spill] sm:$0xff] }
 0x1bd   :  { %v4046_v41 = vmul.f32 %v1378_v11, %v1373_v4  ;;  %v1392_v46 = vmul.f32 %v1382_v14, %v1373_v4  ;;  %v1393_v23 = vmul.f32 %v1386_v60, %v1373_v4  ;;  %v4048_v32 = vmul.f32 %v1390_v19, %v1373_v4 }
 0x1be   :  { %v4822_v42 = vrot.slane %v4821_v13, 4 }
 0x1bf   :  { %v1468_v44 = vpop.permute.xlu0 %1467  ;;  %2219 = vrot.lane.b32.xlu1 %v3882_v9, %s2684_s8 }
 0x1c0   :  { %v1421_v26 = vpop.permute.xlu1 %1420  ;;  %2626 = vset.pattern.permute.xlu1 %v4818_v7 }
 0x1c1   :  { %v4057_v51 = vmul.f32 %v1426_v56, %v1421_v26  ;;  %v4059_v28 = vmul.f32 %v1430_v50, %v1421_v26  ;;  %v4061_v61 = vmul.f32 %v1434_v55, %v1421_v26  ;;  %v4063_v16 = vmul.f32 %v1438_v5, %v1421_v26 }
 0x1c3   :  { %v1472_v24 = vpop.permute.xlu0 %1471  ;;  %2221 = vrot.lane.b32.xlu1 %v3884_v35, %s2684_s8 }
 0x1c5   :  { %v1445_v1 = vpop.permute.xlu1 %1444 }
 0x1c6   :  { %v4071_v38 = vmul.f32 %v1450_v25, %v1445_v1  ;;  %v1464_v8 = vmul.f32 %v1454_v37, %v1445_v1  ;;  %v1465_v45 = vmul.f32 %v1458_v20, %v1445_v1  ;;  %v4073_v59 = vmul.f32 %v1462_v36, %v1445_v1  ;;  %v4824_v36 = vld [vmem:[#allocation6_spill] sm:$0xff] }
 0x1c7   :  { %2225 = vrot.lane.b32.xlu1 %v3892_v48, %s2684_s8  ;;  %v1485_v0 = vpop.permute.xlu0 %1484  ;;  %v4823_v20 = vmov 30   ;;  %v4825_v1 = vrot.slane %v4824_v36, 4  ;;  %v4828_v36 = vmov 33  }
 0x1c9   :  { %v1470_v12 = vpop.permute.xlu1 %1469 }
 0x1ca   :  { %v1476_v18 = vsel %vm160_vm0, %v1470_v12, %v1472_v24  ;;  %v1477_v34 = vsel %vm160_vm0, %v1468_v44, %v1470_v12 }
 0x1cb   :  { %v1480_v15 = vmul.f32 %v1477_v34, %v4820_v22  ;;  %v1481_v29 = vmul.f32 %v1476_v18, %v4822_v42  ;;  %2264 = vperm.xlu1 %2626, %v3901_v47   ;;  %v4826_v18 = vld [vmem:[#allocation3_spill] sm:$0xff] }
 0x1cc   :  { %v1569_v4 = vpop.permute.xlu0 %1568  ;;  %v4827_v34 = vrot.slane %v4826_v18, 4 }
 0x1cd   :  { %v1494_v62 = vrot.slane %v1480_v15, %v2948_v57  ;;  %v1498_v11 = vrot.slane %v1481_v29, %v2948_v57  ;;  %v1578_v14 = vrot.slane %v1480_v15, %v3070_v21  ;;  %v1582_v60 = vrot.slane %v1481_v29, %v3070_v21  ;;  %v1474_v19 = vpop.permute.xlu1 %1473 }
 0x1ce   :  { %v1475_v56 = vsel %vm160_vm0, %v1472_v24, %v1474_v19  ;;  %v1478_v50 = vsel %vm160_vm0, %v1474_v19, %v1468_v44  ;;  %v1522_v55 = vrot.slane %v1480_v15, %v3044_v39  ;;  %v1526_v5 = vrot.slane %v1481_v29, %v3044_v39 }
 0x1cf   :  { %v1504_v26 = vmul.f32 %v1494_v62, %v1485_v0  ;;  %v1505_v7 = vmul.f32 %v1498_v11, %v1485_v0  ;;  %v1588_v25 = vmul.f32 %v1578_v14, %v1569_v4  ;;  %v1589_v37 = vmul.f32 %v1582_v60, %v1569_v4  ;;  %2627 = vset.pattern.permute.xlu1 %v4823_v20 }
 0x1d0   :  { %v1479_v12 = vmul.f32 %v1478_v50, %v4825_v1  ;;  %v1482_v43 = vmul.f32 %v1475_v56, %v4827_v34  ;;  %2292 = vperm.xlu1 %2627, %v3901_v47   ;;  %v1550_v44 = vrot.slane %v1480_v15, %v3023_v6  ;;  %v1554_v24 = vrot.slane %v1481_v29, %v3023_v6  ;;  %v1600_v18 = vpop.permute.xlu0 %1599 }
 0x1d1   :  { %v4104_v22 = vadd.f32 %v1588_v25, %v1464_v8  ;;  %v4106_v13 = vadd.f32 %v1589_v37, %v1465_v45  ;;  %v1513_v42 = vpop.permute.xlu1 %1512  ;;  %v4108_v62 = vadd.f32 %v1504_v26, %v1392_v46  ;;  %v4110_v11 = vadd.f32 %v1505_v7, %v1393_v23 }
 0x1d2   :  { %v1490_v14 = vrot.slane %v1479_v12, %v2948_v57  ;;  %v1502_v60 = vrot.slane %v1482_v43, %v2948_v57  ;;  %v1574_v19 = vrot.slane %v1479_v12, %v3070_v21  ;;  %v1586_v56 = vrot.slane %v1482_v43, %v3070_v21 }
 0x1d3   :  { %v1518_v15 = vrot.slane %v1479_v12, %v3044_v39  ;;  %v1530_v8 = vrot.slane %v1482_v43, %v3044_v39  ;;  %v1532_v29 = vmul.f32 %v1522_v55, %v1513_v42  ;;  %v1533_v45 = vmul.f32 %v1526_v5, %v1513_v42 }
 0x1d4   :  { %v1503_v50 = vmul.f32 %v1490_v14, %v1485_v0  ;;  %v1506_v25 = vmul.f32 %v1502_v60, %v1485_v0  ;;  %v1587_v46 = vmul.f32 %v1574_v19, %v1569_v4  ;;  %v1590_v26 = vmul.f32 %v1586_v56, %v1569_v4  ;;  %2347 = vrot.lane.b32.xlu1 %v3882_v9, %s2688_s9 }
 0x1d5   :  { %v1531_v23 = vmul.f32 %v1518_v15, %v1513_v42  ;;  %v1534_v7 = vmul.f32 %v1530_v8, %v1513_v42  ;;  %v4121_v37 = vadd.f32 %v1532_v29, %v4040_v27  ;;  %v4124_v20 = vadd.f32 %v1533_v45, %v4042_v40  ;;  %2630 = vset.pattern.permute.xlu1 %v4828_v36 }
 0x1d6   :  { %v1546_v55 = vrot.slane %v1479_v12, %v3023_v6  ;;  %v1558_v5 = vrot.slane %v1482_v43, %v3023_v6  ;;  %v1541_v0 = vpop.permute.xlu1 %1540  ;;  %v4130_v4 = vadd.f32 %v1503_v50, %v4046_v41  ;;  %v4133_v1 = vadd.f32 %v1506_v25, %v4048_v32 }
 0x1d7   :  { %v4136_v27 = vadd.f32 %v1531_v23, %v4038_v54  ;;  %v4139_v40 = vadd.f32 %v1534_v7, %v4044_v58  ;;  %v1560_v34 = vmul.f32 %v1550_v44, %v1541_v0  ;;  %v1561_v42 = vmul.f32 %v1554_v24, %v1541_v0 }
 0x1d8   :  { %v1559_v14 = vmul.f32 %v1546_v55, %v1541_v0  ;;  %v1562_v12 = vmul.f32 %v1558_v5, %v1541_v0  ;;  %2349 = vrot.lane.b32.xlu1 %v3884_v35, %s2688_s9  ;;  %v4144_v41 = vadd.f32 %v1587_v46, %v4071_v38  ;;  %v4147_v32 = vadd.f32 %v1590_v26, %v4073_v59  ;;  %v1613_v38 = vpop.permute.xlu0 %1612  ;;  %v2643_v5 = vld [vmem:[%s4626_s5 + $0x20] sm:$0xf] }
 0x1d9   :  { %v4150_v43 = vadd.f32 %v1560_v34, %v4059_v28  ;;  %v4153_v54 = vadd.f32 %v1561_v42, %v4061_v61  ;;  %v4829_v55 = vmov 34   ;;  %v2644_v34 = vld [vmem:[%s4626_s5 + $0x38] sm:$0xf] }
 0x1da   :  { %v4156_v58 = vadd.f32 %v1559_v14, %v4057_v51  ;;  %v4159_v44 = vadd.f32 %v1562_v12, %v4063_v16  ;;  %v1596_v24 = vpop.permute.xlu1 %1595  ;;  %v2641_v51 = vld [vmem:[%s4626_s5 + $0x28] sm:$0xf]  ;;  %v2642_v16 = vld [vmem:[%s4626_s5 + $0x30] sm:$0xf] }
 0x1dc   :  { %2353 = vrot.lane.b32.xlu1 %v3892_v48, %s2688_s9  ;;  %v1697_v50 = vpop.permute.xlu0 %1696 }
 0x1de   :  { %v1598_v60 = vpop.permute.xlu1 %1597 }
 0x1df   :  { %v1604_v59 = vsel %vm305_vm2, %v1598_v60, %v1600_v18  ;;  %v1605_v28 = vsel %vm305_vm2, %v1596_v24, %v1598_v60 }
 0x1e0   :  { %v1608_v61 = vmul.f32 %v2641_v51, %v1605_v28  ;;  %v1609_v19 = vmul.f32 %v2642_v16, %v1604_v59  ;;  %2392 = vperm.xlu1 %2630, %v3901_v47  }
 0x1e2   :  { %v1622_v56 = vrot.slane %v1608_v61, %v2948_v57  ;;  %v1626_v15 = vrot.slane %v1609_v19, %v2948_v57  ;;  %v1706_v8 = vrot.slane %v1608_v61, %v3070_v21  ;;  %v1710_v29 = vrot.slane %v1609_v19, %v3070_v21  ;;  %v1602_v45 = vpop.permute.xlu1 %1601 }
 0x1e3   :  { %v1603_v25 = vsel %vm305_vm2, %v1600_v18, %v1602_v45  ;;  %v1606_v46 = vsel %vm305_vm2, %v1602_v45, %v1596_v24  ;;  %v1650_v18 = vrot.slane %v1608_v61, %v3044_v39  ;;  %v1654_v14 = vrot.slane %v1609_v19, %v3044_v39 }
 0x1e4   :  { %v1632_v26 = vmul.f32 %v1622_v56, %v1613_v38  ;;  %v1633_v23 = vmul.f32 %v1626_v15, %v1613_v38  ;;  %v1716_v7 = vmul.f32 %v1706_v8, %v1697_v50  ;;  %v1717_v36 = vmul.f32 %v1710_v29, %v1697_v50  ;;  %2631 = vset.pattern.permute.xlu1 %v4829_v55 }
 0x1e5   :  { %v1607_v0 = vmul.f32 %v2643_v5, %v1606_v46  ;;  %v1610_v42 = vmul.f32 %v2644_v34, %v1603_v25  ;;  %2420 = vperm.xlu1 %2631, %v3901_v47   ;;  %v1678_v55 = vrot.slane %v1608_v61, %v3023_v6 }
 0x1e6   :  { %v1641_v12 = vpop.permute.xlu1 %1640  ;;  %v4193_v24 = vadd.f32 %v1632_v26, %v4108_v62  ;;  %v4196_v60 = vadd.f32 %v1633_v23, %v4110_v11  ;;  %v4199_v59 = vadd.f32 %v1716_v7, %v4104_v22  ;;  %v4202_v28 = vadd.f32 %v1717_v36, %v4106_v13  ;;  %v2487_v62 = vld [vmem:[%s4629_s4] sm:$0xf] }
 0x1e7   :  { %v1618_v51 = vrot.slane %v1607_v0, %v2948_v57  ;;  %v1630_v47 = vrot.slane %v1610_v42, %v2948_v57  ;;  %v1702_v16 = vrot.slane %v1607_v0, %v3070_v21  ;;  %v1714_v56 = vrot.slane %v1610_v42, %v3070_v21 }
 0x1e8   :  { %v1646_v11 = vrot.slane %v1607_v0, %v3044_v39  ;;  %v1658_v22 = vrot.slane %v1610_v42, %v3044_v39  ;;  %v1660_v15 = vmul.f32 %v1650_v18, %v1641_v12  ;;  %v1661_v8 = vmul.f32 %v1654_v14, %v1641_v12 }
 0x1e9   :  { %v1631_v13 = vmul.f32 %v1618_v51, %v1613_v38  ;;  %v1634_v29 = vmul.f32 %v1630_v47, %v1613_v38  ;;  %v1715_v45 = vmul.f32 %v1702_v16, %v1697_v50  ;;  %v1718_v25 = vmul.f32 %v1714_v56, %v1697_v50  ;;  %2633 = vset.pattern.permute.xlu1 %v4815_v33 }
 0x1ea   :  { %v1659_v46 = vmul.f32 %v1646_v11, %v1641_v12  ;;  %v1662_v26 = vmul.f32 %v1658_v22, %v1641_v12  ;;  %v4215_v23 = vadd.f32 %v1660_v15, %v4121_v37  ;;  %v4218_v7 = vadd.f32 %v1661_v8, %v4124_v20  ;;  %2490 = vperm.xlu1 %2633, %v2487_v62   ;;  %v4831_v62 = vld [vmem:[#allocation7_spill] sm:$0xff] }
 0x1eb   :  { %v1674_v36 = vrot.slane %v1607_v0, %v3023_v6  ;;  %v1669_v5 = vpop.permute.xlu1 %1668  ;;  %v1635_v38 = vadd.f32 %v1631_v13, %v4130_v4  ;;  %v1638_v50 = vadd.f32 %v1634_v29, %v4133_v1  ;;  %v1682_v37 = vrot.slane %v1609_v19, %v3023_v6  ;;  %v1728_v4 = vpop.permute.xlu0 %1727 }
 0x1ec   :  { %v1663_v33 = vadd.f32 %v1659_v46, %v4136_v27  ;;  %v1666_v34 = vadd.f32 %v1662_v26, %v4139_v40  ;;  %v1686_v18 = vrot.slane %v1610_v42, %v3023_v6  ;;  %v1688_v14 = vmul.f32 %v1678_v55, %v1669_v5  ;;  %v4833_v46 = vld [vmem:[#allocation8_spill] sm:$0xff]  ;;  %v4835_v55 = vld [vmem:[#allocation9_spill] sm:$0xff] }
 0x1ed   :  { %v1687_v20 = vmul.f32 %v1674_v36, %v1669_v5  ;;  %v1689_v12 = vmul.f32 %v1682_v37, %v1669_v5  ;;  %v1719_v0 = vadd.f32 %v1715_v45, %v4144_v41  ;;  %v4230_v61 = vadd.f32 %v1718_v25, %v4147_v32 }
 0x1ee   :  { %v1690_v51 = vmul.f32 %v1686_v18, %v1669_v5  ;;  %v4236_v27 = vadd.f32 %v1688_v14, %v4150_v43  ;;  %v4830_v56 = vrot.slane %v3041_v49, 4  ;;  %v4832_v11 = vrot.slane %v4831_v62, 4 }
 0x1ef   :  { %v4233_v1 = vadd.f32 %v1687_v20, %v4156_v58  ;;  %v1724_v40 = vpop.permute.xlu1 %1723  ;;  %v1693_v19 = vadd.f32 %v1689_v12, %v4153_v54  ;;  %v1741_v47 = vpop.permute.xlu0 %1740  ;;  %v4834_v26 = vrot.slane %v4833_v46, 4  ;;  %v4836_v5 = vrot.slane %v4835_v55, 4 }
 0x1f0   :  { %v1694_v42 = vadd.f32 %v1690_v51, %v4159_v44 }
 0x1f3   :  { %v1726_v16 = vpop.permute.xlu1 %1725  ;;  %v1825_v25 = vpop.permute.xlu0 %1824 }
 0x1f4   :  { %v1732_v41 = vsel %vm438_vm3, %v1726_v16, %v1728_v4  ;;  %v1733_v32 = vsel %vm438_vm3, %v1724_v40, %v1726_v16 }
 0x1f5   :  { %v1736_v58 = vmul.f32 %v1733_v32, %v4830_v56  ;;  %v1737_v43 = vmul.f32 %v1732_v41, %v4832_v11 }
 0x1f7   :  { %v1750_v22 = vrot.slane %v1736_v58, %v2948_v57  ;;  %v1754_v54 = vrot.slane %v1737_v43, %v2948_v57  ;;  %v1834_v44 = vrot.slane %v1736_v58, %v3070_v21  ;;  %v1838_v15 = vrot.slane %v1737_v43, %v3070_v21  ;;  %v1730_v8 = vpop.permute.xlu1 %1729 }
 0x1f8   :  { %v1731_v13 = vsel %vm438_vm3, %v1728_v4, %v1730_v8  ;;  %v1734_v29 = vsel %vm438_vm3, %v1730_v8, %v1724_v40  ;;  %v1778_v49 = vrot.slane %v1736_v58, %v3044_v39  ;;  %v1782_v45 = vrot.slane %v1737_v43, %v3044_v39 }
 0x1f9   :  { %v1735_v36 = vmul.f32 %v1734_v29, %v4834_v26  ;;  %v1738_v37 = vmul.f32 %v1731_v13, %v4836_v5  ;;  %v1806_v18 = vrot.slane %v1736_v58, %v3023_v6  ;;  %v1810_v20 = vrot.slane %v1737_v43, %v3023_v6 }
 0x1fa   :  { %v1760_v14 = vmul.f32 %v1750_v22, %v1741_v47  ;;  %v1761_v12 = vmul.f32 %v1754_v54, %v1741_v47  ;;  %v1844_v51 = vmul.f32 %v1834_v44, %v1825_v25  ;;  %v1845_v4 = vmul.f32 %v1838_v15, %v1825_v25 }
 0x1fb   :  { %v1746_v40 = vrot.slane %v1735_v36, %v2948_v57  ;;  %v1758_v16 = vrot.slane %v1738_v37, %v2948_v57  ;;  %v1830_v41 = vrot.slane %v1735_v36, %v3070_v21  ;;  %v1842_v32 = vrot.slane %v1738_v37, %v3070_v21  ;;  %v1769_v56 = vpop.permute.xlu1 %1768 }
 0x1fc   :  { %v1774_v62 = vrot.slane %v1735_v36, %v3044_v39  ;;  %v1786_v11 = vrot.slane %v1738_v37, %v3044_v39  ;;  %v1788_v58 = vmul.f32 %v1778_v49, %v1769_v56  ;;  %v1789_v8 = vmul.f32 %v1782_v45, %v1769_v56 }
 0x1fd   :  { %v1802_v43 = vrot.slane %v1735_v36, %v3023_v6  ;;  %v1814_v22 = vrot.slane %v1738_v37, %v3023_v6  ;;  %v1759_v54 = vmul.f32 %v1746_v40, %v1741_v47  ;;  %v1762_v44 = vmul.f32 %v1758_v16, %v1741_v47 }
 0x1fe   :  { %v1787_v15 = vmul.f32 %v1774_v62, %v1769_v56  ;;  %v1790_v13 = vmul.f32 %v1786_v11, %v1769_v56  ;;  %v1792_v29 = vadd.f32 %v1788_v58, %v4215_v23  ;;  %v1793_v46 = vadd.f32 %v1789_v8, %v4218_v7 }
 0x1ff   :  { %v1763_v26 = vadd.f32 %v1759_v54, %v1635_v38  ;;  %v1764_v55 = vadd.f32 %v1760_v14, %v4193_v24  ;;  %v1765_v5 = vadd.f32 %v1761_v12, %v4196_v60  ;;  %v1766_v17 = vadd.f32 %v1762_v44, %v1638_v50 }
 0x200   :  { %v1791_v49 = vadd.f32 %v1787_v15, %v1663_v33  ;;  %v1794_v45 = vadd.f32 %v1790_v13, %v1666_v34  ;;  %v1797_v53 = vpop.permute.xlu1 %1796  ;;  %v1843_v36 = vmul.f32 %v1830_v41, %v1825_v25  ;;  %v1846_v2 = vmul.f32 %v1842_v32, %v1825_v25  ;;  %v1909_v41 = vpop.permute.xlu0 %1908 }
 0x201   :  { %v1815_v37 = vmul.f32 %v1802_v43, %v1797_v53  ;;  %v1816_v40 = vmul.f32 %v1806_v18, %v1797_v53  ;;  %v1817_v47 = vmul.f32 %v1810_v20, %v1797_v53  ;;  %v1818_v16 = vmul.f32 %v1814_v22, %v1797_v53 }
 0x202   :  { %v1847_v56 = vadd.f32 %v1843_v36, %v1719_v0  ;;  %v1848_v23 = vadd.f32 %v1844_v51, %v4199_v59  ;;  %v1849_v7 = vadd.f32 %v1845_v4, %v4202_v28  ;;  %v1850_v38 = vadd.f32 %v1846_v2, %v4230_v61 }
 0x203   :  { %v4280_v24 = vadd.f32 %v1815_v37, %v4233_v1  ;;  %v4283_v60 = vadd.f32 %v1816_v40, %v4236_v27  ;;  %v4285_v50 = vadd.f32 %v1817_v47, %v1693_v19  ;;  %v4287_v33 = vadd.f32 %v1818_v16, %v1694_v42 }
 0x204   :  { %v1862_v53 = vrot.slane %v3884_v35, %v2948_v57  ;;  %v1866_v59 = vrot.slane %v3890_v30, %v2948_v57  ;;  %v1870_v28 = vrot.slane %v3892_v48, %v2948_v57  ;;  %v1858_v2 = vrot.slane %v3882_v9, %v2948_v57 }
 0x205   :  { %v1853_v34 = vpop.permute.xlu1 %1852  ;;  %v1890_v20 = vrot.slane %v3884_v35, %v3044_v39  ;;  %v1894_v14 = vrot.slane %v3890_v30, %v3044_v39  ;;  %v1898_v12 = vrot.slane %v3892_v48, %v3044_v39  ;;  %v1886_v51 = vrot.slane %v3882_v9, %v3044_v39 }
 0x206   :  { %v1871_v0 = vmul.f32 %v1858_v2, %v1853_v34  ;;  %v1872_v61 = vmul.f32 %v1862_v53, %v1853_v34  ;;  %v1873_v1 = vmul.f32 %v1866_v59, %v1853_v34  ;;  %v1874_v27 = vmul.f32 %v1870_v28, %v1853_v34 }
 0x207   :  { %v1946_v54 = vrot.slane %v3884_v35, %v3070_v21  ;;  %v1950_v44 = vrot.slane %v3890_v30, %v3070_v21  ;;  %v1954_v15 = vrot.slane %v3892_v48, %v3070_v21  ;;  %v1942_v13 = vrot.slane %v3882_v9, %v3070_v21 }
 0x208   :  { %v4297_v19 = vadd.f32 %v1871_v0, %v1763_v26  ;;  %v4299_v42 = vadd.f32 %v1872_v61, %v1764_v55  ;;  %v4301_v25 = vadd.f32 %v1873_v1, %v1765_v5  ;;  %v4303_v18 = vadd.f32 %v1874_v27, %v1766_v17 }
 0x209   :  { %v1918_v61 = vrot.slane %v3884_v35, %v3023_v6  ;;  %v1922_v1 = vrot.slane %v3890_v30, %v3023_v6 }
 0x20a   :  { %v1881_v4 = vpop.permute.xlu1 %1880 }
 0x20b   :  { %v1899_v32 = vmul.f32 %v1886_v51, %v1881_v4  ;;  %v1900_v62 = vmul.f32 %v1890_v20, %v1881_v4  ;;  %v1901_v11 = vmul.f32 %v1894_v14, %v1881_v4  ;;  %v1902_v58 = vmul.f32 %v1898_v12, %v1881_v4 }
 0x20c   :  { %v4837_v20 = vrot.slane %v4769_v10, 4  ;;  %v4838_v12 = vrot.slane %v4771_v63, 4 }
 0x20d   :  { %v4313_v17 = vadd.f32 %v1899_v32, %v1791_v49  ;;  %v4315_v8 = vadd.f32 %v1900_v62, %v1792_v29  ;;  %v4317_v43 = vadd.f32 %v1901_v11, %v1793_v46  ;;  %v4319_v22 = vadd.f32 %v1902_v58, %v1794_v45  ;;  %v1966_v49 = vpop.permute.xlu0 %1965 }
 0x20e   :  { %v1926_v32 = vrot.slane %v3892_v48, %v3023_v6  ;;  %v1914_v62 = vrot.slane %v3882_v9, %v3023_v6  ;;  %v4839_v11 = vrot.slane %v4756_v31, 4  ;;  %v4840_v58 = vrot.slane %v4758_v3, 4 }
 0x20f   :  { %v1937_v26 = vpop.permute.xlu1 %1936 }
 0x210   :  { %v1955_v55 = vmul.f32 %v1942_v13, %v1937_v26  ;;  %v1956_v29 = vmul.f32 %v1946_v54, %v1937_v26  ;;  %v1957_v5 = vmul.f32 %v1950_v44, %v1937_v26  ;;  %v1958_v46 = vmul.f32 %v1954_v15, %v1937_v26 }
 0x211   :  { %v1970_v16 = vpop.permute.xlu0 %1969  ;;  %v1928_v54 = vmul.f32 %v1918_v61, %v1909_v41  ;;  %v1929_v44 = vmul.f32 %v1922_v1, %v1909_v41  ;;  %v1927_v10 = vmul.f32 %v1914_v62, %v1909_v41  ;;  %v1930_v15 = vmul.f32 %v1926_v32, %v1909_v41 }
 0x212   :  { %v4329_v45 = vadd.f32 %v1955_v55, %v1847_v56  ;;  %v4331_v36 = vadd.f32 %v1956_v29, %v1848_v23  ;;  %v4333_v37 = vadd.f32 %v1957_v5, %v1849_v7  ;;  %v4335_v40 = vadd.f32 %v1958_v46, %v1850_v38 }
 0x213   :  { %v1964_v47 = vpop.permute.xlu1 %1963  ;;  %v1932_v26 = vadd.f32 %v1928_v54, %v4283_v60  ;;  %v4371_v48 = vadd.f32 %v1929_v44, %v4285_v50  ;;  %v1934_v41 = vadd.f32 %v1930_v15, %v4287_v33  ;;  %v1931_v50 = vadd.f32 %v1927_v10, %v4280_v24 }
 0x214   :  { %v1973_v7 = vsel %vm775_vm4, %v1964_v47, %v1966_v49  ;;  %v1974_v38 = vsel %vm775_vm4, %v1970_v16, %v1964_v47 }
 0x215   :  { %v2009_v28 = vpop.permute.xlu0 %2008  ;;  %v1975_v35 = vmul.f32 %v1973_v7, %v4839_v11  ;;  %v1978_v30 = vmul.f32 %v1974_v38, %v4840_v58 }
 0x217   :  { %v1968_v53 = vpop.permute.xlu1 %1967  ;;  %v2014_v31 = vrot.slane %v1975_v35, %v3044_v39  ;;  %v2026_v55 = vrot.slane %v1978_v30, %v3044_v39  ;;  %v1986_v3 = vrot.slane %v1975_v35, %v2948_v57  ;;  %v1998_v29 = vrot.slane %v1978_v30, %v2948_v57 }
 0x218   :  { %v1971_v56 = vsel %vm775_vm4, %v1968_v53, %v1970_v16  ;;  %v1972_v23 = vsel %vm775_vm4, %v1966_v49, %v1968_v53  ;;  %v2042_v46 = vrot.slane %v1975_v35, %v3023_v6  ;;  %v2054_v60 = vrot.slane %v1978_v30, %v3023_v6 }
 0x219   :  { %v4339_v34 = vpop.permute.xlu0 %2091  ;;  %v1976_v14 = vmul.f32 %v1972_v23, %v4837_v20  ;;  %v1977_v51 = vmul.f32 %v1971_v56, %v4838_v12  ;;  %v2070_v7 = vrot.slane %v1975_v35, %v3070_v21  ;;  %v2082_v38 = vrot.slane %v1978_v30, %v3070_v21 }
 0x21a   :  { %v2027_v20 = vmul.f32 %v2014_v31, %v2009_v28  ;;  %v2030_v24 = vmul.f32 %v2026_v55, %v2009_v28 }
 0x21b   :  { %v1981_v59 = vpop.permute.xlu1 %1980  ;;  %v1990_v63 = vrot.slane %v1976_v14, %v2948_v57  ;;  %v1994_v13 = vrot.slane %v1977_v51, %v2948_v57  ;;  %v2018_v49 = vrot.slane %v1976_v14, %v3044_v39  ;;  %v2022_v47 = vrot.slane %v1977_v51, %v3044_v39 }
 0x21c   :  { %v1999_v16 = vmul.f32 %v1986_v3, %v1981_v59  ;;  %v2002_v53 = vmul.f32 %v1998_v29, %v1981_v59  ;;  %v2046_v33 = vrot.slane %v1976_v14, %v3023_v6  ;;  %v2050_v1 = vrot.slane %v1977_v51, %v3023_v6 }
 0x21d   :  { %v2096_v27 = vpop.permute.xlu0 %2095  ;;  %v2000_v56 = vmul.f32 %v1990_v63, %v1981_v59  ;;  %v2001_v23 = vmul.f32 %v1994_v13, %v1981_v59  ;;  %v2074_v12 = vrot.slane %v1976_v14, %v3070_v21  ;;  %v2078_v32 = vrot.slane %v1977_v51, %v3070_v21 }
 0x21e   :  { %v4399_v11 = vadd.f32 %v1999_v16, %v4297_v19  ;;  %v4402_v35 = vadd.f32 %v2002_v53, %v4303_v18  ;;  %v2028_v58 = vmul.f32 %v2018_v49, %v2009_v28  ;;  %v2029_v30 = vmul.f32 %v2022_v47, %v2009_v28  ;;  %v2645_v19 = vld [vmem:[%s4626_s5 + $0x60] sm:$0xf]  ;;  %v2646_v28 = vld [vmem:[%s4626_s5 + $0x68] sm:$0xf] }
 0x21f   :  { %v4407_v14 = vadd.f32 %v2000_v56, %v4299_v42  ;;  %v4410_v51 = vadd.f32 %v2001_v23, %v4301_v25 }
 0x220   :  { %v4337_v2 = vpop.permute.xlu1 %2036  ;;  %v2032_v49 = vadd.f32 %v2028_v58, %v4315_v8 }
 0x221   :  { %v4377_v5 = vpop.permute.xlu0 %2108  ;;  %v2055_v44 = vmul.f32 %v2042_v46, %v4337_v2  ;;  %v2057_v63 = vmul.f32 %v2050_v1, %v4337_v2  ;;  %v2058_v13 = vmul.f32 %v2054_v60, %v4337_v2  ;;  %v2031_v46 = vadd.f32 %v2027_v20, %v4313_v17 }
 0x223   :  { %v4451_v47 = vadd.f32 %v2055_v44, %v1931_v50  ;;  %v4460_v23 = vadd.f32 %v2057_v63, %v4371_v48 }
 0x225   :  { %v4341_v0 = vpop.permute.xlu1 %2064  ;;  %v4404_v54 = vpop.permute.xlu0 %2192 }
 0x226   :  { %v2083_v31 = vmul.f32 %v2070_v7, %v4341_v0  ;;  %v2084_v55 = vmul.f32 %v2074_v12, %v4341_v0  ;;  %v2085_v3 = vmul.f32 %v2078_v32, %v4341_v0  ;;  %v2086_v29 = vmul.f32 %v2082_v38, %v4341_v0 }
 0x227   :  { %v2033_v0 = vadd.f32 %v2029_v30, %v4317_v43  ;;  %v4462_v7 = vadd.f32 %v2058_v13, %v1934_v41 }
 0x228   :  { %v2087_v8 = vadd.f32 %v2083_v31, %v4329_v45  ;;  %v2088_v43 = vadd.f32 %v2084_v55, %v4331_v36  ;;  %v2090_v50 = vadd.f32 %v2086_v29, %v4335_v40 }
 0x229   :  { %v2094_v4 = vpop.permute.xlu1 %2093  ;;  %v2224_v56 = vpop.permute.xlu0 %2223 }
 0x22a   :  { %v2100_v62 = vsel %vm920_vm5, %v2094_v4, %v2096_v27  ;;  %v2101_v59 = vsel %vm920_vm5, %v4339_v34, %v2094_v4  ;;  %v2056_v4 = vmul.f32 %v2046_v33, %v4337_v2  ;;  %v2648_v2 = vld [vmem:[%s4626_s5 + $0x78] sm:$0xf] }
 0x22b   :  { %v4417_v18 = vmul.f32 %v2645_v19, %v2101_v59  ;;  %v4422_v10 = vmul.f32 %v2646_v28, %v2100_v62 }
 0x22d   :  { %v2098_v9 = vpop.permute.xlu1 %2097  ;;  %v2114_v17 = vrot.slane %v4417_v18, %v2948_v57  ;;  %v2118_v16 = vrot.slane %v4422_v10, %v2948_v57  ;;  %v2198_v38 = vrot.slane %v4417_v18, %v3070_v21  ;;  %v2202_v33 = vrot.slane %v4422_v10, %v3070_v21  ;;  %v4498_v19 = vpop.permute.xlu0 %2236 }
 0x22e   :  { %v2099_v42 = vsel %vm920_vm5, %v2096_v27, %v2098_v9  ;;  %v2102_v25 = vsel %vm920_vm5, %v2098_v9, %v4339_v34  ;;  %v2034_v27 = vadd.f32 %v2030_v24, %v4319_v22  ;;  %v2647_v34 = vld [vmem:[%s4626_s5 + $0x70] sm:$0xf]  ;;  %v4453_v22 = vadd.f32 %v2056_v4, %v1932_v26 }
 0x22f   :  { %v4442_v9 = vmul.f32 %v2647_v34, %v2099_v42  ;;  %v4447_v60 = vmul.f32 %v2648_v2, %v2102_v25  ;;  %v2089_v26 = vadd.f32 %v2085_v3, %v4333_v37  ;;  %v2142_v45 = vrot.slane %v4417_v18, %v3044_v39 }
 0x230   :  { %v2146_v36 = vrot.slane %v4422_v10, %v3044_v39  ;;  %v2127_v37 = vmul.f32 %v2114_v17, %v4377_v5  ;;  %v2128_v40 = vmul.f32 %v2118_v16, %v4377_v5  ;;  %v2170_v62 = vrot.slane %v4417_v18, %v3023_v6 }
 0x231   :  { %v4387_v61 = vpop.permute.xlu1 %2136  ;;  %v2122_v48 = vrot.slane %v4442_v9, %v2948_v57  ;;  %v2126_v41 = vrot.slane %v4447_v60, %v2948_v57  ;;  %v2150_v1 = vrot.slane %v4442_v9, %v3044_v39  ;;  %v2154_v20 = vrot.slane %v4447_v60, %v3044_v39 }
 0x232   :  { %v2155_v12 = vmul.f32 %v2142_v45, %v4387_v61  ;;  %v2156_v32 = vmul.f32 %v2146_v36, %v4387_v61  ;;  %v2174_v59 = vrot.slane %v4422_v10, %v3023_v6  ;;  %v2206_v58 = vrot.slane %v4442_v9, %v3070_v21 }
 0x233   :  { %v2210_v30 = vrot.slane %v4447_v60, %v3070_v21  ;;  %v2211_v44 = vmul.f32 %v2198_v38, %v4404_v54  ;;  %v2212_v4 = vmul.f32 %v2202_v33, %v4404_v54  ;;  %v2129_v28 = vmul.f32 %v2122_v48, %v4377_v5 }
 0x234   :  { %v2130_v42 = vmul.f32 %v2126_v41, %v4377_v5  ;;  %v2178_v18 = vrot.slane %v4442_v9, %v3023_v6  ;;  %v2182_v10 = vrot.slane %v4447_v60, %v3023_v6  ;;  %v2157_v25 = vmul.f32 %v2150_v1, %v4387_v61 }
 0x235   :  { %v2158_v63 = vmul.f32 %v2154_v20, %v4387_v61  ;;  %v2159_v3 = vadd.f32 %v2155_v12, %v2031_v46  ;;  %v2160_v29 = vadd.f32 %v2156_v32, %v2032_v49  ;;  %v2131_v5 = vadd.f32 %v2127_v37, %v4399_v11  ;;  %v4841_v46 = vld [vmem:[#allocation31_spill] sm:$0xff]  ;;  %v4843_v11 = vld [vmem:[#allocation32_spill] sm:$0xff] }
 0x236   :  { %v4429_v15 = vpop.permute.xlu1 %2164  ;;  %v2132_v34 = vadd.f32 %v2128_v40, %v4407_v14  ;;  %v2213_v61 = vmul.f32 %v2206_v58, %v4404_v54  ;;  %v2214_v60 = vmul.f32 %v2210_v30, %v4404_v54  ;;  %v4842_v49 = vrot.slane %v4841_v46, 4  ;;  %v4845_v40 = vld [vmem:[#allocation34_spill] sm:$0xff] }
 0x237   :  { %v2183_v17 = vmul.f32 %v2170_v62, %v4429_v15  ;;  %v2184_v16 = vmul.f32 %v2174_v59, %v4429_v15  ;;  %v4844_v33 = vrot.slane %v4843_v11, 4  ;;  %v2161_v48 = vadd.f32 %v2157_v25, %v2033_v0 }
 0x238   :  { %v2162_v41 = vadd.f32 %v2158_v63, %v2034_v27  ;;  %v2215_v45 = vadd.f32 %v2211_v44, %v2087_v8  ;;  %v2216_v36 = vadd.f32 %v2212_v4, %v2088_v43  ;;  %v2185_v37 = vmul.f32 %v2178_v18, %v4429_v15 }
 0x239   :  { %v2186_v54 = vmul.f32 %v2182_v10, %v4429_v15  ;;  %v4846_v1 = vrot.slane %v4845_v40, 4  ;;  %v2217_v62 = vadd.f32 %v2213_v61, %v2089_v26  ;;  %v2218_v59 = vadd.f32 %v2214_v60, %v2090_v50 }
 0x23a   :  { %v2220_v53 = vpop.permute.xlu1 %2219  ;;  %v2133_v58 = vadd.f32 %v2129_v28, %v4410_v51  ;;  %v2134_v27 = vadd.f32 %v2130_v42, %v4402_v35  ;;  %v2187_v0 = vadd.f32 %v2183_v17, %v4451_v47  ;;  %v2188_v8 = vadd.f32 %v2184_v16, %v4453_v22 }
 0x23b   :  { %v2189_v28 = vadd.f32 %v2185_v37, %v4460_v23  ;;  %v2190_v42 = vadd.f32 %v2186_v54, %v4462_v7 }
 0x23e   :  { %v2222_v24 = vpop.permute.xlu1 %2221 }
 0x23f   :  { %v2228_v13 = vsel %vm1053_vm6, %v2222_v24, %v2224_v56  ;;  %v2229_v31 = vsel %vm1053_vm6, %v2220_v53, %v2222_v24  ;;  %v4847_v24 = vld [vmem:[#allocation35_spill] sm:$0xff] }
 0x240   :  { %v2231_v38 = vmul.f32 %v2229_v31, %v4842_v49  ;;  %v2232_v14 = vmul.f32 %v2228_v13, %v4844_v33  ;;  %v4848_v12 = vrot.slane %v4847_v24, 4 }
 0x242   :  { %v2226_v55 = vpop.permute.xlu1 %2225  ;;  %v2242_v43 = vrot.slane %v2231_v38, %v2948_v57  ;;  %v2246_v15 = vrot.slane %v2232_v14, %v2948_v57  ;;  %v2326_v30 = vrot.slane %v2231_v38, %v3070_v21  ;;  %v2330_v44 = vrot.slane %v2232_v14, %v3070_v21 }
 0x243   :  { %v2227_v9 = vsel %vm1053_vm6, %v2224_v56, %v2226_v55  ;;  %v2230_v2 = vsel %vm1053_vm6, %v2226_v55, %v2220_v53  ;;  %v2321_v53 = vpop.permute.xlu0 %2320  ;;  %v2270_v4 = vrot.slane %v2231_v38, %v3044_v39  ;;  %v2274_v26 = vrot.slane %v2232_v14, %v3044_v39 }
 0x244   :  { %v2233_v20 = vmul.f32 %v2227_v9, %v4846_v1  ;;  %v2234_v32 = vmul.f32 %v2230_v2, %v4848_v12  ;;  %v2255_v31 = vmul.f32 %v2242_v43, %v4498_v19  ;;  %v2256_v55 = vmul.f32 %v2246_v15, %v4498_v19 }
 0x245   :  { %v2298_v9 = vrot.slane %v2231_v38, %v3023_v6  ;;  %v2302_v2 = vrot.slane %v2232_v14, %v3023_v6  ;;  %v2339_v61 = vmul.f32 %v2326_v30, %v2321_v53  ;;  %v2340_v60 = vmul.f32 %v2330_v44, %v2321_v53 }
 0x246   :  { %v2265_v56 = vpop.permute.xlu1 %2264  ;;  %v2250_v51 = vrot.slane %v2233_v20, %v2948_v57  ;;  %v2254_v35 = vrot.slane %v2234_v32, %v2948_v57  ;;  %v2278_v47 = vrot.slane %v2233_v20, %v3044_v39  ;;  %v2282_v22 = vrot.slane %v2234_v32, %v3044_v39 }
 0x247   :  { %v2334_v18 = vrot.slane %v2233_v20, %v3070_v21  ;;  %v2338_v10 = vrot.slane %v2234_v32, %v3070_v21  ;;  %v2352_v25 = vpop.permute.xlu0 %2351  ;;  %v2283_v63 = vmul.f32 %v2270_v4, %v2265_v56  ;;  %v2284_v13 = vmul.f32 %v2274_v26, %v2265_v56 }
 0x248   :  { %v2257_v23 = vmul.f32 %v2250_v51, %v4498_v19  ;;  %v2258_v7 = vmul.f32 %v2254_v35, %v4498_v19  ;;  %v2285_v17 = vmul.f32 %v2278_v47, %v2265_v56  ;;  %v2286_v16 = vmul.f32 %v2282_v22, %v2265_v56 }
 0x249   :  { %v2306_v49 = vrot.slane %v2233_v20, %v3023_v6  ;;  %v2310_v11 = vrot.slane %v2234_v32, %v3023_v6  ;;  %v2341_v33 = vmul.f32 %v2334_v18, %v2321_v53  ;;  %v2342_v37 = vmul.f32 %v2338_v10, %v2321_v53 }
 0x24a   :  { %v4558_v54 = vadd.f32 %v2283_v63, %v2159_v3  ;;  %v4560_v38 = vadd.f32 %v2284_v13, %v2160_v29  ;;  %v2259_v40 = vadd.f32 %v2255_v31, %v2131_v5  ;;  %v2260_v1 = vadd.f32 %v2256_v55, %v2132_v34  ;;  %v2649_v34 = vld [vmem:[%s4626_s5 + $0x80] sm:$0xf] }
 0x24b   :  { %v2293_v50 = vpop.permute.xlu1 %2292  ;;  %v4562_v14 = vpop.permute.xlu0 %2364  ;;  %v4564_v56 = vadd.f32 %v2285_v17, %v2161_v48  ;;  %v4566_v15 = vadd.f32 %v2286_v16, %v2162_v41  ;;  %v2343_v32 = vadd.f32 %v2339_v61, %v2215_v45  ;;  %v2344_v30 = vadd.f32 %v2340_v60, %v2216_v36  ;;  %v2650_v48 = vld [vmem:[%s4626_s5 + $0x88] sm:$0xf] }
 0x24c   :  { %v2311_v24 = vmul.f32 %v2298_v9, %v2293_v50  ;;  %v2312_v12 = vmul.f32 %v2302_v2, %v2293_v50  ;;  %v2313_v19 = vmul.f32 %v2306_v49, %v2293_v50  ;;  %v2314_v43 = vmul.f32 %v2310_v11, %v2293_v50 }
 0x24d   :  { %v2345_v53 = vadd.f32 %v2341_v33, %v2217_v62  ;;  %v2346_v5 = vadd.f32 %v2342_v37, %v2218_v59  ;;  %v2261_v45 = vadd.f32 %v2257_v23, %v2133_v58  ;;  %v2262_v36 = vadd.f32 %v2258_v7, %v2134_v27 }
 0x24e   :  { %v2315_v4 = vadd.f32 %v2311_v24, %v2187_v0  ;;  %v2316_v26 = vadd.f32 %v2312_v12, %v2188_v8  ;;  %v2317_v51 = vadd.f32 %v2313_v19, %v2189_v28  ;;  %v2318_v35 = vadd.f32 %v2314_v43, %v2190_v42  ;;  %v2651_v42 = vld [vmem:[%s4626_s5 + $0x90] sm:$0xf] }
 0x24f   :  { %v2348_v46 = vpop.permute.xlu1 %2347  ;;  %v2449_v22 = vpop.permute.xlu0 %2448 }
 0x253   :  { %v2350_v20 = vpop.permute.xlu1 %2349 }
 0x254   :  { %v2356_v3 = vsel %vm1198_vm7, %v2350_v20, %v2352_v25  ;;  %v2357_v29 = vsel %vm1198_vm7, %v2348_v46, %v2350_v20 }
 0x255   :  { %v2359_v44 = vmul.f32 %v2649_v34, %v2357_v29  ;;  %v2360_v41 = vmul.f32 %v2650_v48, %v2356_v3 }
 0x257   :  { %v2370_v47 = vrot.slane %v2359_v44, %v2948_v57  ;;  %v2374_v62 = vrot.slane %v2360_v41, %v2948_v57  ;;  %v2354_v59 = vpop.permute.xlu1 %2353  ;;  %v2454_v50 = vrot.slane %v2359_v44, %v3070_v21  ;;  %v2458_v18 = vrot.slane %v2360_v41, %v3070_v21 }
 0x258   :  { %v2355_v10 = vsel %vm1198_vm7, %v2352_v25, %v2354_v59  ;;  %v2358_v58 = vsel %vm1198_vm7, %v2354_v59, %v2348_v46  ;;  %v2398_v27 = vrot.slane %v2359_v44, %v3044_v39  ;;  %v2402_v0 = vrot.slane %v2360_v41, %v3044_v39  ;;  %v2652_v25 = vld [vmem:[%s4626_s5 + $0x98] sm:$0xf] }
 0x259   :  { %v2383_v8 = vmul.f32 %v2370_v47, %v4562_v14  ;;  %v2384_v28 = vmul.f32 %v2374_v62, %v4562_v14  ;;  %v2361_v63 = vmul.f32 %v2651_v42, %v2355_v10  ;;  %v2362_v13 = vmul.f32 %v2652_v25, %v2358_v58 }
 0x25a   :  { %v2467_v52 = vmul.f32 %v2454_v50, %v2449_v22  ;;  %v2468_v31 = vmul.f32 %v2458_v18, %v2449_v22  ;;  %v2426_v55 = vrot.slane %v2359_v44, %v3023_v6  ;;  %v2430_v9 = vrot.slane %v2360_v41, %v3023_v6 }
 0x25b   :  { %v2387_v2 = vadd.f32 %v2383_v8, %v2259_v40  ;;  %v2388_v61 = vadd.f32 %v2384_v28, %v2260_v1  ;;  %v2378_v60 = vrot.slane %v2361_v63, %v2948_v57  ;;  %v2382_v23 = vrot.slane %v2362_v13, %v2948_v57  ;;  %v2393_v7 = vpop.permute.xlu1 %2392 }
 0x25c   :  { %v2462_v17 = vrot.slane %v2361_v63, %v3070_v21  ;;  %v2466_v16 = vrot.slane %v2362_v13, %v3070_v21  ;;  %v2471_v46 = vadd.f32 %v2467_v52, %v2343_v32  ;;  %v2472_v49 = vadd.f32 %v2468_v31, %v2344_v30  ;;  %v2653_v31 = vld [vmem:[%s4624_s0] sm:$0xff] }
 0x25d   :  { %v2406_v11 = vrot.slane %v2361_v63, %v3044_v39  ;;  %v2410_v33 = vrot.slane %v2362_v13, %v3044_v39  ;;  %v2411_v37 = vmul.f32 %v2398_v27, %v2393_v7  ;;  %v2412_v24 = vmul.f32 %v2402_v0, %v2393_v7 }
 0x25e   :  { %v2469_v12 = vmul.f32 %v2462_v17, %v2449_v22  ;;  %v2470_v40 = vmul.f32 %v2466_v16, %v2449_v22  ;;  %v2434_v1 = vrot.slane %v2361_v63, %v3023_v6  ;;  %v2438_v19 = vrot.slane %v2362_v13, %v3023_v6 }
 0x25f   :  { %v2413_v57 = vmul.f32 %v2406_v11, %v2393_v7  ;;  %v2414_v43 = vmul.f32 %v2410_v33, %v2393_v7  ;;  %v2415_v20 = vadd.f32 %v2411_v37, %v4558_v54  ;;  %v2416_v21 = vadd.f32 %v2412_v24, %v4560_v38 }
 0x260   :  { %v2473_v32 = vadd.f32 %v2469_v12, %v2345_v53  ;;  %v2474_v30 = vadd.f32 %v2470_v40, %v2346_v5  ;;  %v2421_v3 = vpop.permute.xlu1 %2420  ;;  %v2385_v29 = vmul.f32 %v2378_v60, %v4562_v14  ;;  %v2386_v39 = vmul.f32 %v2382_v23, %v4562_v14 }
 0x261   :  { %v2417_v34 = vadd.f32 %v2413_v57, %v4564_v56  ;;  %v2418_v44 = vadd.f32 %v2414_v43, %v4566_v15  ;;  %v2439_v48 = vmul.f32 %v2426_v55, %v2421_v3  ;;  %v2440_v41 = vmul.f32 %v2430_v9, %v2421_v3  ;;  %v2654_v9 = vld [vmem:[%s4624_s0 + $0x8] sm:$0xff] }
 0x262   :  { %v2441_v6 = vmul.f32 %v2434_v1, %v2421_v3  ;;  %v2442_v47 = vmul.f32 %v2438_v19, %v2421_v3  ;;  %v2389_v62 = vadd.f32 %v2385_v29, %v2261_v45  ;;  %v2390_v59 = vadd.f32 %v2386_v39, %v2262_v36 }
 0x263   :  { %v2443_v54 = vadd.f32 %v2439_v48, %v2315_v4  ;;  %v2444_v22 = vadd.f32 %v2440_v41, %v2316_v26  ;;  %v2476_v38 = vadd.f32 %v2416_v21, %v2388_v61  ;;  %v2475_v53 = vadd.f32 %v2415_v20, %v2387_v2 }
 0x264   :  { %v2445_v5 = vadd.f32 %v2441_v6, %v2317_v51  ;;  %v2446_v50 = vadd.f32 %v2442_v47, %v2318_v35  ;;  %v2477_v18 = vadd.f32 %v2417_v34, %v2389_v62  ;;  %v2478_v10 = vadd.f32 %v2418_v44, %v2390_v59 }
 0x265   :  { %v2480_v58 = vadd.f32 %v2472_v49, %v2444_v22  ;;  %v2479_v14 = vadd.f32 %v2471_v46, %v2443_v54  ;;  %v2491_v0 = vpop.permute.xlu1 %2490 }
 0x266   :  { %v2481_v27 = vadd.f32 %v2473_v32, %v2445_v5  ;;  %v2482_v56 = vadd.f32 %v2474_v30, %v2446_v50 }
 0x267   :  { %v2484_v15 = vadd.f32 %v2480_v58, %v2476_v38  ;;  %v2483_v8 = vadd.f32 %v2479_v14, %v2475_v53 }
 0x268   :  { %v2485_v28 = vadd.f32 %v2481_v27, %v2477_v18  ;;  %v2486_v42 = vadd.f32 %v2482_v56, %v2478_v10 }
 0x269   :  { %v2493_v63 = vadd.f32 %v2491_v0, %v2483_v8  ;;  %v2494_v45 = vadd.f32 %v2491_v0, %v2484_v15 }
 0x26a   :  { %v2495_v36 = vadd.f32 %v2491_v0, %v2485_v28  ;;  %v2496_v4 = vadd.f32 %v2491_v0, %v2486_v42 }
 0x26b   :  { %v2497_v26 = vmul.f32 0.1, %v2493_v63  ;;  %v2498_v25 = vmul.f32 0.1, %v2494_v45 }
 0x26c   :  { %v2499_v13 = vmul.f32 0.1, %v2495_v36  ;;  %v2500_v51 = vmul.f32 0.1, %v2496_v4 }
 0x26d   :  { %v2505_v35 = vcombine.low %v2497_v26, %v2498_v25 }
 0x26e   :  { %v2506_v52 = vcombine.low %v2499_v13, %v2500_v51 }
 0x26f   :  { %v2509_v55 = vadd.f32 %v2653_v31, %v2505_v35 }
 0x270   :  { %v2510_v2 = vadd.f32 %v2654_v9, %v2506_v52 }
 0x271   :  { %2511 = vst [vmem:[%s4630_s6] sm:$0xff] %v2509_v55 }
 0x272   :  { %2512 = vst [vmem:[%s4630_s6 + $0x8] sm:$0xff] %v2510_v2 }

</bundles_post_ra>
